<compile_context>
chip_gen: v5e
topology: v5e:2x2
jax: 0.10.0
libtpu: 0.0.40
codegen_flags: <defaults>
</compile_context>

<pallas_src>
import jax
import jax.numpy as jnp
from jax.experimental import pallas as pl
from jax.experimental.pallas import tpu as pltpu


# ----------------------------------------------------------------------------
# Fused (fc1 + bias + SiLU + fc2 partial-sum) Pallas kernel
# ----------------------------------------------------------------------------
def _fused_mlp_kernel(x_ref, w1_ref, b1_ref, w2_ref, b2_ref, o_ref):
    """One grid step handles one tn1-wide panel of the hidden dimension:

         h_j     = SiLU(x @ w1[:, panel_j] + b1[panel_j])    -> (B, tn1)
         o_ref  += h_j @ w2[panel_j, :]                       -> (B, D_out), f32

       The last step adds b2.  o_ref is VMEM-resident across the whole grid
       (constant output block index) and is written back to HBM only once.
    """
    j = pl.program_id(0)

    @pl.when(j == 0)
    def _():
        o_ref[...] = jnp.zeros_like(o_ref)

    # fc1 panel: full-K bf16 matmul with f32 accumulation, bias + SiLU in f32.
    # x is tiny (10 KiB) and resident; cast to the MXU-native bf16 in-kernel.
    xb = x_ref[...].astype(jnp.bfloat16)
    h = jnp.dot(xb, w1_ref[...], preferred_element_type=jnp.float32)
    # b1 is resident as (H//tn1, tn1); row j is this panel's bias.
    h = h + b1_ref[pl.ds(j, 1), :].astype(jnp.float32)
    h = h * jax.nn.sigmoid(h)                      # SiLU(x) = x * sigmoid(x)

    # fc2 partial product over this hidden panel, accumulated in the f32 output.
    o_ref[...] += jnp.dot(
        h.astype(w2_ref.dtype), w2_ref[...], preferred_element_type=jnp.float32
    )

    @pl.when(j == pl.num_programs(0) - 1)
    def _():
        o_ref[...] = o_ref[...] + b2_ref[...].astype(jnp.float32)


def fused_mlp(x_flat, w1, b1, w2, b2, *, tn1=1024):
    """SiLU-MLP: (x @ w1 + b1) -> SiLU -> (@ w2 + b2), one pallas_call.

    tn1=1024 -> 2 grid steps over the hidden dim (safe on all generations);
    tn1=2048 (single step) also fits on v6e/v7x scoped-VMEM defaults.
    """
    B, K = x_flat.shape
    K1, H = w1.shape
    H2, N = w2.shape
    assert K == K1, (K, K1)
    assert H == H2, (H, H2)
    tn1 = min(tn1, H)
    assert H % tn1 == 0, "hidden dim must tile by tn1"
    assert K % 128 == 0 and N % 128 == 0, "feature dims must be lane-aligned"

    b1_2d = b1.reshape(H // tn1, tn1)   # resident; row j = bias of panel j
    b2_2d = b2.reshape(1, N)

    return pl.pallas_call(
        _fused_mlp_kernel,
        out_shape=jax.ShapeDtypeStruct((B, N), jnp.float32),
        grid_spec=pltpu.PrefetchScalarGridSpec(
            num_scalar_prefetch=0,
            grid=(H // tn1,),
            in_specs=[
                pl.BlockSpec((B, K), lambda j: (0, 0)),          # x: tiny, resident (f32)
                pl.BlockSpec((K, tn1), lambda j: (0, j)),        # w1 panel, streamed (bf16)
                pl.BlockSpec((H // tn1, tn1), lambda j: (0, 0)), # b1: resident, sliced in-kernel
                pl.BlockSpec((tn1, N), lambda j: (j, 0)),        # w2 panel, streamed (bf16)
                pl.BlockSpec((1, N), lambda j: (0, 0)),          # b2: resident
            ],
            out_specs=pl.BlockSpec((B, N), lambda j: (0, 0)),    # resident f32 accumulator
        ),
        compiler_params=pltpu.CompilerParams(
            # Single grid axis is a reduction over hidden panels (output block
            # index is constant), so it must be "arbitrary".
            dimension_semantics=("arbitrary",),
        ),
    )(x_flat, w1, b1_2d, w2, b2_2d)


# ----------------------------------------------------------------------------
# FrameToSignalNet forward (Pallas-backed)
# ----------------------------------------------------------------------------
def frame_to_signal_net(x, params, *, tn1=1024):
    """x: (B, n_frames*frame_step, input_size) -> (B, 1, output_size) f32."""
    B = x.shape[0]
    x_flat = x.reshape(B, -1)                        # view/flatten (cast happens in-kernel)
    y = fused_mlp(
        x_flat, params["w1"], params["b1"], params["w2"], params["b2"], tn1=tn1
    )
    return y[:, None, :]                             # unsqueeze(1)


def init_params(key, in_features, hidden, out_features):
    """nn.Linear-style U(-1/sqrt(fan_in), 1/sqrt(fan_in)); weights stored bf16."""
    k1, k2, k3, k4 = jax.random.split(key, 4)
    lim1 = 1.0 / jnp.sqrt(in_features)
    lim2 = 1.0 / jnp.sqrt(hidden)
    return {
        "w1": jax.random.uniform(k1, (in_features, hidden), jnp.float32,
                                 -lim1, lim1).astype(jnp.bfloat16),
        "b1": jax.random.uniform(k2, (hidden,), jnp.float32, -lim1, lim1),
        "w2": jax.random.uniform(k3, (hidden, out_features), jnp.float32,
                                 -lim2, lim2).astype(jnp.bfloat16),
        "b2": jax.random.uniform(k4, (out_features,), jnp.float32, -lim2, lim2),
    }


def reference_forward(x, params):
    """Plain-JAX reference with the same bf16-input / f32-accumulate numerics."""
    B = x.shape[0]
    xf = x.reshape(B, -1).astype(jnp.bfloat16)
    h = jnp.dot(xf, params["w1"], preferred_element_type=jnp.float32)
    h = h + params["b1"].astype(jnp.float32)
    h = h * jax.nn.sigmoid(h)
    y = jnp.dot(h.astype(jnp.bfloat16), params["w2"],
                preferred_element_type=jnp.float32)
    y = y + params["b2"].astype(jnp.float32)
    return y[:, None, :]


if __name__ == "__main__":
    # Small shapes consistent with the module (hidden stays at the module's 2048):
    #   input_size=128, n_input_frames=5, frame_step=2 -> in_features=1280
    B = 2
    input_size = 128
    n_input_frames = 5
    frame_step = 2
    hidden = 2048
    output_size = 128
    in_features = n_input_frames * frame_step * input_size

    key = jax.random.PRNGKey(0)
    kx, kp = jax.random.split(key)
    x = jax.random.normal(kx, (B, n_input_frames * frame_step, input_size),
                          dtype=jnp.float32)
    params = init_params(kp, in_features, hidden, output_size)

    out = frame_to_signal_net(x, params)
    out = jax.block_until_ready(out)

    ref = reference_forward(x, params)
    assert out.shape == (B, 1, output_size), out.shape
    assert jnp.allclose(out, ref, atol=5e-3, rtol=5e-3), "mismatch vs JAX reference"

    print("KERNEL_OK")
</pallas_src>

<mosaic_0001>
module attributes {stable_mosaic.version = 11 : i64} {
  func.func @_fused_mlp_kernel(%arg0: i32, %arg1: memref<2x1280xf32, #tpu.memory_space<vmem>>, %arg2: memref<1280x1024xbf16, #tpu.memory_space<vmem>>, %arg3: memref<2x1024xf32, #tpu.memory_space<vmem>>, %arg4: memref<1024x128xbf16, #tpu.memory_space<vmem>>, %arg5: memref<1x128xf32, #tpu.memory_space<vmem>>, %arg6: memref<2x128xf32, #tpu.memory_space<vmem>>) attributes {dimension_semantics = [#tpu.dimension_semantics<arbitrary>], iteration_bounds = array<i64: 2>, scalar_prefetch = 0 : i64, scratch_operands = 0 : i64, tpu.core_type = #tpu.core_type<tc>, window_params = [{pipeline_mode = #tpu.pipeline_mode<synchronous>, transform_indices = @transform_0, window_bounds = array<i64: 2, 1280>}, {transform_indices = @transform_1, window_bounds = array<i64: 1280, 1024>}, {pipeline_mode = #tpu.pipeline_mode<synchronous>, transform_indices = @transform_2, window_bounds = array<i64: 2, 1024>}, {transform_indices = @transform_3, window_bounds = array<i64: 1024, 128>}, {pipeline_mode = #tpu.pipeline_mode<synchronous>, transform_indices = @transform_4, window_bounds = array<i64: 1, 128>}, {pipeline_mode = #tpu.pipeline_mode<synchronous>, transform_indices = @transform_5, window_bounds = array<i64: 2, 128>}]} {
    %c0_i32 = arith.constant 0 : i32
    %0 = arith.cmpi eq, %arg0, %c0_i32 : i32
    %1 = arith.extui %0 : i1 to i32
    %c0_i32_0 = arith.constant 0 : i32
    %2 = arith.cmpi ne, %1, %c0_i32_0 : i32
    scf.if %2 {
      %cst_14 = arith.constant 0.000000e+00 : f32
      %26 = vector.broadcast %cst_14 : f32 to vector<2x128xf32>
      %c0_15 = arith.constant 0 : index
      %c0_16 = arith.constant 0 : index
      %27 = vector.load %arg6[%c0_15, %c0_16] : memref<2x128xf32, #tpu.memory_space<vmem>>, vector<2x128xf32>
      tpu.vector_store %arg6[%c0_15, %c0_16], %26 {strides = array<i32>} : memref<2x128xf32, #tpu.memory_space<vmem>>, vector<2x128xf32>,
    } else {
    }
    %c0 = arith.constant 0 : index
    %c0_1 = arith.constant 0 : index
    %3 = vector.load %arg1[%c0, %c0_1] : memref<2x1280xf32, #tpu.memory_space<vmem>>, vector<2x1280xf32>
    %4 = arith.truncf %3 : vector<2x1280xf32> to vector<2x1280xbf16>
    %c0_2 = arith.constant 0 : index
    %c0_3 = arith.constant 0 : index
    %5 = vector.load %arg2[%c0_2, %c0_3] : memref<1280x1024xbf16, #tpu.memory_space<vmem>>, vector<1280x1024xbf16>
    %cst = arith.constant dense<0.000000e+00> : vector<2x1024xf32>
    %6 = tpu.matmul %4, %5, %cst {dimension_numbers = #tpu.dot_dimension_numbers<[1], [0], [0], [1], [0, 0, 1, 1], [], []>} : vector<2x1280xbf16>, vector<1280x1024xbf16>, vector<2x1024xf32> -> vector<2x1024xf32>
    %7 = arith.index_cast %arg0 : i32 to index
    %c0_4 = arith.constant 0 : index
    %8 = vector.load %arg3[%7, %c0_4] : memref<2x1024xf32, #tpu.memory_space<vmem>>, vector<1x1024xf32>
    %9 = vector.broadcast %8 : vector<1x1024xf32> to vector<2x1024xf32>
    %10 = arith.addf %6, %9 : vector<2x1024xf32>
    %11 = arith.negf %10 : vector<2x1024xf32>
    %12 = math.exp %11 : vector<2x1024xf32>
    %cst_5 = arith.constant 1.000000e+00 : f32
    %13 = vector.broadcast %cst_5 : f32 to vector<2x1024xf32>
    %14 = arith.addf %13, %12 : vector<2x1024xf32>
    %15 = arith.divf %13, %14 : vector<2x1024xf32>
    %16 = arith.mulf %10, %15 : vector<2x1024xf32>
    %c0_6 = arith.constant 0 : index
    %c0_7 = arith.constant 0 : index
    %17 = vector.load %arg6[%c0_6, %c0_7] : memref<2x128xf32, #tpu.memory_space<vmem>>, vector<2x128xf32>
    %18 = arith.truncf %16 : vector<2x1024xf32> to vector<2x1024xbf16>
    %c0_8 = arith.constant 0 : index
    %c0_9 = arith.constant 0 : index
    %19 = vector.load %arg4[%c0_8, %c0_9] : memref<1024x128xbf16, #tpu.memory_space<vmem>>, vector<1024x128xbf16>
    %cst_10 = arith.constant dense<0.000000e+00> : vector<2x128xf32>
    %20 = tpu.matmul %18, %19, %cst_10 {dimension_numbers = #tpu.dot_dimension_numbers<[1], [0], [0], [1], [0, 0, 1, 1], [], []>} : vector<2x1024xbf16>, vector<1024x128xbf16>, vector<2x128xf32> -> vector<2x128xf32>
    %21 = arith.addf %17, %20 : vector<2x128xf32>
    %c0_11 = arith.constant 0 : index
    %c0_12 = arith.constant 0 : index
    %22 = vector.load %arg6[%c0_11, %c0_12] : memref<2x128xf32, #tpu.memory_space<vmem>>, vector<2x128xf32>
    tpu.vector_store %arg6[%c0_11, %c0_12], %21 {strides = array<i32>} : memref<2x128xf32, #tpu.memory_space<vmem>>, vector<2x128xf32>,
    %c1_i32 = arith.constant 1 : i32
    %23 = arith.cmpi eq, %arg0, %c1_i32 : i32
    %24 = arith.extui %23 : i1 to i32
    %c0_i32_13 = arith.constant 0 : i32
    %25 = arith.cmpi ne, %24, %c0_i32_13 : i32
    scf.if %25 {
      %c0_14 = arith.constant 0 : index
      %c0_15 = arith.constant 0 : index
      %26 = vector.load %arg6[%c0_14, %c0_15] : memref<2x128xf32, #tpu.memory_space<vmem>>, vector<2x128xf32>
      %c0_16 = arith.constant 0 : index
      %c0_17 = arith.constant 0 : index
      %27 = vector.load %arg5[%c0_16, %c0_17] : memref<1x128xf32, #tpu.memory_space<vmem>>, vector<1x128xf32>
      %28 = vector.broadcast %27 : vector<1x128xf32> to vector<2x128xf32>
      %29 = arith.addf %26, %28 : vector<2x128xf32>
      %c0_18 = arith.constant 0 : index
      %c0_19 = arith.constant 0 : index
      %30 = vector.load %arg6[%c0_18, %c0_19] : memref<2x128xf32, #tpu.memory_space<vmem>>, vector<2x128xf32>
      tpu.vector_store %arg6[%c0_18, %c0_19], %29 {strides = array<i32>} : memref<2x128xf32, #tpu.memory_space<vmem>>, vector<2x128xf32>,
    } else {
    }
    return
  }
  func.func @transform_0(%arg0: i32) -> (i32, i32) {
    %c0_i32 = arith.constant 0 : i32
    %c0_i32_0 = arith.constant 0 : i32
    %c0_i32_1 = arith.constant 0 : i32
    return %c0_i32, %c0_i32_0 : i32, i32
  }
  func.func @transform_1(%arg0: i32) -> (i32, i32) {
    %c0_i32 = arith.constant 0 : i32
    %c0_i32_0 = arith.constant 0 : i32
    return %c0_i32, %arg0 : i32, i32
  }
  func.func @transform_2(%arg0: i32) -> (i32, i32) {
    %c0_i32 = arith.constant 0 : i32
    %c0_i32_0 = arith.constant 0 : i32
    %c0_i32_1 = arith.constant 0 : i32
    return %c0_i32, %c0_i32_0 : i32, i32
  }
  func.func @transform_3(%arg0: i32) -> (i32, i32) {
    %c0_i32 = arith.constant 0 : i32
    %c0_i32_0 = arith.constant 0 : i32
    return %arg0, %c0_i32 : i32, i32
  }
  func.func @transform_4(%arg0: i32) -> (i32, i32) {
    %c0_i32 = arith.constant 0 : i32
    %c0_i32_0 = arith.constant 0 : i32
    %c0_i32_1 = arith.constant 0 : i32
    return %c0_i32, %c0_i32_0 : i32, i32
  }
  func.func @transform_5(%arg0: i32) -> (i32, i32) {
    %c0_i32 = arith.constant 0 : i32
    %c0_i32_0 = arith.constant 0 : i32
    %c0_i32_1 = arith.constant 0 : i32
    return %c0_i32, %c0_i32_0 : i32, i32
  }
}

</mosaic_0001>

<bundles_post_ra>
// kernel: tpu_custom_call.1
= control target key start
LH: loop header
LB: loop body
LE: loop exit
PB: predicated region body
PF: predicated region fallthrough
CT: control target
= control target key end

     0   :  { %s12009_s0 = inlined_call_operand.hbm [shape: f32[2,1280], index: 0, kind: input, shape index: {}]   ;;  %s12010_s1 = inlined_call_operand.hbm [shape: bf16[1280,2048], index: 1, kind: input, shape index: {}]   ;;  %s12011_s2 = inlined_call_operand.hbm [shape: f32[2,1024], index: 2, kind: input, shape index: {}]   ;;  %s12012_s3 = inlined_call_operand.hbm [shape: bf16[2048,128], index: 3, kind: input, shape index: {}]   ;;  %s12013_s4 = inlined_call_operand.hbm [shape: f32[1,128], index: 4, kind: input, shape index: {}]   ;;  %s12014_s5 = inlined_call_operand.hbm [shape: f32[2,128], index: 5, kind: output, shape index: {}]  }
   0x1   :  { %12015 = sst [smem:[#allocation18_spill]] %s12009_s0 }
   0x2   :  { %12016 = sst [smem:[#allocation19_spill]] %s12010_s1 }
   0x3   :  { %12017 = sst [smem:[#allocation20_spill]] %s12011_s2 }
   0x4   :  { %10 = vsyncpa [#allocation3], 0 }
   0x5   :  { %11 = vsyncpa [#allocation6], 0 }
   0x6   :  { %13 = vsyncpa [#allocation6 + $0x1], 0 }
   0x7   :  { %14 = vsyncpa [#allocation9], 0 }
   0x8   :  { %16 = vsyncpa [#allocation9 + $0x1], 0 }
   0x9   :  { %17 = vsyncpa [#allocation4], 0  ;;  %s10139_s18 = smov 0   ;;  %s10141_s19 = smov 0  }
   0xa   :  { %s10143_s20 = smov 0   ;;  %s10145_s21 = smov 0  }
   0xb LB: > { %s10158_s22 = sadd.s32 4294967295, %s10097_s21   ;;  %s10161_s23 = sadd.s32 1, %s10097_s21   ;;  %s10097_s21 = sphi %s10145_s21, %s12043_s21   ;;  %s10093_s20 = sphi %s10143_s20, %s12042_s20   ;;  %s10089_s19 = sphi %s10141_s19, %s12041_s19   ;;  %s10085_s18 = sphi %s10139_s18, %s12040_s18  }
   0xc   : > { %s48_s24 = ssub.s32 %s10097_s21, %s10161_s23  ;;  %s51_s25 = sadd.s32 1, %s10093_s20 }
   0xd   : > { %p49_p0 = scmp.eq.s32.totalorder %s48_s24, 0  ;;  %p58_p1 = scmp.ne.s32.totalorder %s10093_s20, %s10089_s19 }
   0xe   : > { %p59_p2 = scmp.eq.s32.totalorder %s10097_s21, 0  ;;  %p64_p3 = scmp.ne.s32.totalorder %s10089_s19, %s10085_s18 }
   0xf   : > { %s10171_s26 = scalar_select %p49_p0, %s10093_s20, %s51_s25  }
  0x10   : > { %p10173_p4 = por %p59_p2, %p58_p1  ;;  %p65_p5 = scmp.eq.s32.totalorder %s10158_s22, 0 }
  0x11   : > { %p6185_p6 = scmp.ge.s32.totalorder %s10097_s21, 1  ;;  %p164_p7 = scmp.lt.s32.totalorder %s10097_s21, 3 }
  0x12   : > { %p10182_p8 = por %p65_p5, %p64_p3  ;;  %p6186_p9 = scmp.ne.s32.totalorder %s10158_s22, 0 }
  0x13   : > { %p10187_p10 = pnand %p6185_p6, %p164_p7  ;;  %s12021_s2 = sld [smem:[#allocation20_spill]] }
  0x14   : > { %s10099_s8 = smov [#allocation7]   ;;  %p9781_p13 = scmp.lt.s32.totalorder %s10097_s21, 2 }
  0x15   : > { %p9761_p11 = pneg %p10187_p10  ;;  %s190_s9 = sshll.u32 %s10099_s8, 4  ;;  %s191_s9 = int_to_ptr.vmem [resolvable:$true] %s190_s9 }
  0x16   : > { %s200_s13 = sshll.u32 %s12013_s4, 4  ;;  %p10208_p0 = pnand %p9781_p13, %p10173_p4  ;;  %s201_s13 = int_to_ptr.hbm [resolvable:$true] %s200_s13 }
  0x17   : > { %p10198_p12 = pnand %p9761_p11, %p65_p5  ;;  %s10100_s15 = smov [#allocation10]  }
  0x18   : > { %s202_s16 = sshll.u32 %s10100_s15, 4  ;;  %s12024_s0 = sld [smem:[#allocation18_spill]]  ;;  %s203_s16 = int_to_ptr.vmem [resolvable:$true] %s202_s16 }
  0x19   : > { %s188_s7 = sshll.u32 %s12021_s2, 4  ;;  %s213_s25 = sand.u32 1, %s10097_s21   ;;  %s189_s7 = int_to_ptr.hbm [resolvable:$true] %s188_s7 }
  0x1a   : > { %9767 = dma.hbm_to_vmem [thread:$0]  (!%p10198_p12), %s189_s7, 256, %s191_s9, [#allocation6]  }
  0x1b   : > { %9770 = dma.hbm_to_vmem [thread:$0]  (!%p10198_p12), %s201_s13, 16, %s203_s16, [#allocation9]  }
  0x1c   : > { %s10101_s27 = smov [#allocation2]   ;;  %s215_s6 = sand.u32 1, %s10093_s20  }
  0x1d   : > { %s178_s30 = sshll.u32 %s10101_s27, 4  ;;  %s9739_s7 = smul.u32 5120, %s215_s6  ;;  %s179_s30 = int_to_ptr.vmem [resolvable:$true] %s178_s30 }
  0x1e   : > { %s176_s24 = sshll.u32 %s12024_s0, 4  ;;  %s9032_s8 = sshll.u32 %s10097_s21, 5  ;;  %s177_s24 = int_to_ptr.hbm [resolvable:$true] %s176_s24 }
  0x1f   : > { %9764 = dma.hbm_to_vmem [thread:$0]  (!%p10198_p12), %s177_s24, 320, %s179_s30, [#allocation3]  }
  0x20   : > { %s12025_s1 = sld [smem:[#allocation19_spill]]  ;;  %s217_s17 = scalar_lea.vmem [#allocation5], %s9739_s7 }
  0x21   : > { %s225_s13 = sshll.u32 %s217_s17, 4  ;;  %s214_s16 = scalar_lea.sflag [#allocation6], %s213_s25  ;;  %s226_s13 = int_to_ptr.vmem [resolvable:$true] %s225_s13 }
  0x22   : > { %p9959_p2 = pneg %p10208_p0 }
  0x26   : > { %s222_s12 = scalar_lea.hbm %s12025_s1, %s9032_s8  ;;  %s9962_s30 = scalar_lea.hbm %s12025_s1, 10240 }
  0x27   : > { %s223_s15 = sshll.u32 %s222_s12, 4  ;;  %s224_s15 = int_to_ptr.hbm [resolvable:$true] %s223_s15 }
  0x28   : > { %s9955_s18 = sshra.s32 %s224_s15, 4  ;;  %s9956_s18 = int_to_ptr.hbm [resolvable:$true] %s9955_s18 }
  0x29   : > { %s9957_s27 = scalar_lea.hbm %s9956_s18, 5120  ;;  %p9963_p6 = scmp.lt.s32.totalorder %s9956_s18, %s12025_s1 }
  0x2a   : > { %p9958_p1 = scmp.ne.s32.totalorder %s9956_s18, %s9957_s27  ;;  %p9964_p7 = scmp.lt.s32.totalorder %s9962_s30, %s9957_s27 }
  0x2c   : > { %p9960_p3 = pnand %p9959_p2, %p9958_p1  ;;  %p9965_p11 = por %p9964_p7, %p9963_p6 }
  0x2e   : > { %p9961_p4 = pneg %p9960_p3 }
  0x30   : > { %p9966_p12 = pnand %p9965_p11, %p9961_p4 }
  0x32   : > { %9969 = shalt.err (!%p9966_p12)
}
  0x33   : > { %s10102_s9 = smov 1024   ;;  %s10103_s11 = smov 512  }
  0x34   : > { %s10104_s12 = smov 32   ;;  %s6192_s17 = sshll.u32 %s215_s6, 9 }
  0x35   : > { %9774 = dma.hbm_to_vmem [thread:$0]  (!%p10208_p0), %s224_s15, 81920, %s226_s13, %s214_s16, %s10102_s9, %s10103_s11, %s10104_s12  }
  0x36   : > { %s9033_s10 = sshll.u32 %s10097_s21, 9  ;;  %s239_s30 = scalar_lea.vmem [#allocation8], %s6192_s17 }
  0x37   : > { %s244_s18 = scalar_lea.hbm %s12012_s3, %s9033_s10  ;;  %s247_s7 = sshll.u32 %s239_s30, 4  ;;  %s248_s7 = int_to_ptr.vmem [resolvable:$true] %s247_s7 }
  0x38   : > { %s245_s27 = sshll.u32 %s244_s18, 4  ;;  %s236_s0 = scalar_lea.sflag [#allocation9], %s213_s25  ;;  %s246_s27 = int_to_ptr.hbm [resolvable:$true] %s245_s27 }
  0x39   : > { %s9985_s1 = sshra.s32 %s246_s27, 4  ;;  %s9992_s13 = scalar_lea.hbm %s12012_s3, 1024  ;;  %s9986_s1 = int_to_ptr.hbm [resolvable:$true] %s9985_s1 }
  0x3a   : > { %s9987_s2 = scalar_lea.hbm %s9986_s1, 512  ;;  %p9993_p4 = scmp.lt.s32.totalorder %s9986_s1, %s12012_s3 }
  0x3b   : > { %p9988_p13 = scmp.ne.s32.totalorder %s9986_s1, %s9987_s2  ;;  %p9994_p6 = scmp.lt.s32.totalorder %s9992_s13, %s9987_s2 }
  0x3d   : > { %p9990_p1 = pnand %p9988_p13, %p9959_p2  ;;  %p9995_p7 = por %p9994_p6, %p9993_p4 }
  0x3f   : > { %p9991_p3 = pneg %p9990_p1 }
  0x41   : > { %p9996_p11 = pnand %p9995_p7, %p9991_p3 }
  0x43   : > { %9999 = shalt.err (!%p9996_p11)
}
  0x44   : > { %s10105_s21 = smov 64   ;;  %s10106_s25 = smov 4  }
  0x45   : > { %9777 = dma.hbm_to_vmem [thread:$0]  (!%p10208_p0), %s246_s27, 8192, %s248_s7, %s236_s0, %s10105_s21, %s10105_s21, %s10106_s25  }
  0x46   : > { %259 = sbr.rel (%p10187_p10) target bundleno = 1400 (0x578), region = 40 }
  0x4b   : > { %10060 = dma.done.wait (%p65_p5), [#allocation3], 320  }
  0x4c   : > { %10062 = vsyncadd (%p65_p5), [#allocation3], 4294966976  ;;  %s10270_s1 = sand.u32 1, %s10158_s22   ;;  %s268_s2 = sand.u32 1, %s10089_s19  }
  0x4d   : > { %s9740_s11 = smul.u32 5120, %s268_s2  ;;  %s267_s12 = scalar_lea.sflag [#allocation6], %s10270_s1 }
  0x4f   : > { %s10274_s14 = scalar_lea.vmem [#allocation5], %s9740_s11 }
  0x50   : > { %10064 = dma.done.wait (%p10182_p8), %s267_s12, 81920  }
  0x51   : > { %10066 = vsyncadd (%p10182_p8), %s267_s12, 4294885376 }
  0x52   : > { %10068 = dma.done.wait (%p65_p5), [#allocation6], 256  }
  0x53   : > { %10070 = vsyncadd (%p65_p5), [#allocation6], 4294967040  ;;  %s6198_s0 = sshll.u32 %s268_s2, 9  ;;  %s282_s29 = scalar_lea.sflag [#allocation9], %s10270_s1 }
  0x54   : > { %s10285_s17 = scalar_lea.vmem [#allocation8], %s6198_s0 }
  0x55   : > { %10072 = dma.done.wait (%p10182_p8), %s282_s29, 8192  }
  0x56   : > { %10074 = vsyncadd (%p10182_p8), %s282_s29, 4294959104 }
  0x57   : > { %10076 = dma.done.wait (%p65_p5), [#allocation9], 16  }
  0x58   : > { %10078 = vsyncadd (%p65_p5), [#allocation9], 4294967280  ;;  %323 = sbr.rel (%p6186_p9) target bundleno = 95 (0x5f), region = 64 }
  0x5d   : > { %v10107_v0 = vmov 0.0  }
  0x5e   : > { %324 = vst [vmem:[#allocation11] sm:$0x3] %v10107_v0 }
  0x5f PF: > { %v6429_v1 = vld [vmem:[%s10274_s14 + $0x1c0] sm:$0xf]  ;;  %s1005_s28 = sshra.s32 %s10158_s22, 1  ;;  %p9027_p5 = scmp.ne.s32.totalorder %s10158_s22, 1 }
  0x60   : > { %v9094_v2 = vld [vmem:[%s10274_s14 + $0x1dc] sm:$0xf0]  ;;  %s10682_s10 = sshll.u32 %s1005_s28, 4 }
  0x61   : > { %v6685_v3 = vld [vmem:[%s10274_s14 + $0x3c0] sm:$0xf]  ;;  %v6430_v4 = vor.u32 %v9094_v2, %v6429_v1  ;;  %s1011_s24 = sadd.s32 %s10682_s10, %s10270_s1 }
  0x62   : > { %v9158_v5 = vld [vmem:[%s10274_s14 + $0x3dc] sm:$0xf0]  ;;  %s10708_s8 = scalar_lea.vmem [#allocation7], %s1011_s24 }
  0x63   : > { %v6941_v6 = vld [vmem:[%s10274_s14 + $0x5c0] sm:$0xf]  ;;  %v6686_v8 = vor.u32 %v9158_v5, %v6685_v3  ;;  %4231 = vmatpush.bf16.msra.mxu0 %v6430_v4 }
  0x64   : > { %v9222_v7 = vld [vmem:[%s10274_s14 + $0x5dc] sm:$0xf0] }
  0x65   : > { %v6942_v9 = vor.u32 %v9222_v7, %v6941_v6  ;;  %v7197_v10 = vld [vmem:[%s10274_s14 + $0x7c0] sm:$0xf]  ;;  %4244 = vmatpush.bf16.msra.mxu1 %v6686_v8 }
  0x66   : > { %v9286_v11 = vld [vmem:[%s10274_s14 + $0x7dc] sm:$0xf0] }
  0x67   : > { %v6397_v12 = vld [vmem:[%s10274_s14 + $0x180] sm:$0xf]  ;;  %v7198_v13 = vor.u32 %v9286_v11, %v7197_v10  ;;  %4257 = vmatpush.bf16.msra.mxu2 %v6942_v9 }
  0x68   : > { %v9086_v14 = vld [vmem:[%s10274_s14 + $0x19c] sm:$0xf0] }
  0x69   : > { %v6653_v15 = vld [vmem:[%s10274_s14 + $0x380] sm:$0xf]  ;;  %v6398_v17 = vor.u32 %v9086_v14, %v6397_v12  ;;  %4270 = vmatpush.bf16.msra.mxu3 %v7198_v13 }
  0x6a   : > { %v9150_v16 = vld [vmem:[%s10274_s14 + $0x39c] sm:$0xf0] }
  0x6b   : > { %v6654_v18 = vor.u32 %v9150_v16, %v6653_v15  ;;  %v6909_v19 = vld [vmem:[%s10274_s14 + $0x580] sm:$0xf]  ;;  %4232 = vmatpush.bf16.msra.mxu0 %v6398_v17 }
  0x6c   : > { %v9214_v20 = vld [vmem:[%s10274_s14 + $0x59c] sm:$0xf0] }
  0x6d   : > { %v7165_v21 = vld [vmem:[%s10274_s14 + $0x780] sm:$0xf]  ;;  %v6910_v22 = vor.u32 %v9214_v20, %v6909_v19  ;;  %4245 = vmatpush.bf16.msra.mxu1 %v6654_v18 }
  0x6e   : > { %v9278_v23 = vld [vmem:[%s10274_s14 + $0x79c] sm:$0xf0] }
  0x6f   : > { %v6365_v24 = vld [vmem:[%s10274_s14 + $0x140] sm:$0xf]  ;;  %v7166_v26 = vor.u32 %v9278_v23, %v7165_v21  ;;  %4258 = vmatpush.bf16.msra.mxu2 %v6910_v22 }
  0x70   : > { %v9078_v25 = vld [vmem:[%s10274_s14 + $0x15c] sm:$0xf0] }
  0x71   : > { %v6621_v27 = vld [vmem:[%s10274_s14 + $0x340] sm:$0xf]  ;;  %v6366_v30 = vor.u32 %v9078_v25, %v6365_v24  ;;  %4271 = vmatpush.bf16.msra.mxu3 %v7166_v26 }
  0x72   : > { %v9142_v28 = vld [vmem:[%s10274_s14 + $0x35c] sm:$0xf0] }
  0x73   : > { %v6877_v29 = vld [vmem:[%s10274_s14 + $0x540] sm:$0xf]  ;;  %v6622_v34 = vor.u32 %v9142_v28, %v6621_v27  ;;  %4233 = vmatpush.bf16.msra.mxu0 %v6366_v30 }
  0x74   : > { %v9206_v31 = vld [vmem:[%s10274_s14 + $0x55c] sm:$0xf0] }
  0x75   : > { %v7133_v32 = vld [vmem:[%s10274_s14 + $0x740] sm:$0xf]  ;;  %v6878_v35 = vor.u32 %v9206_v31, %v6877_v29  ;;  %4246 = vmatpush.bf16.msra.mxu1 %v6622_v34 }
  0x76   : > { %v9270_v33 = vld [vmem:[%s10274_s14 + $0x75c] sm:$0xf0] }
  0x77   : > { %v6333_v36 = vld [vmem:[%s10274_s14 + $0x100] sm:$0xf]  ;;  %v7134_v39 = vor.u32 %v9270_v33, %v7133_v32  ;;  %4259 = vmatpush.bf16.msra.mxu2 %v6878_v35 }
  0x78   : > { %v9070_v37 = vld [vmem:[%s10274_s14 + $0x11c] sm:$0xf0] }
  0x79   : > { %v6589_v38 = vld [vmem:[%s10274_s14 + $0x300] sm:$0xf]  ;;  %v6334_v45 = vor.u32 %v9070_v37, %v6333_v36  ;;  %4272 = vmatpush.bf16.msra.mxu3 %v7134_v39 }
  0x7a   : > { %v9134_v40 = vld [vmem:[%s10274_s14 + $0x31c] sm:$0xf0] }
  0x7b   : > { %v6845_v41 = vld [vmem:[%s10274_s14 + $0x500] sm:$0xf]  ;;  %v6590_v46 = vor.u32 %v9134_v40, %v6589_v38  ;;  %4234 = vmatpush.bf16.msra.mxu0 %v6334_v45 }
  0x7c   : > { %v9198_v42 = vld [vmem:[%s10274_s14 + $0x51c] sm:$0xf0] }
  0x7d   : > { %v7101_v43 = vld [vmem:[%s10274_s14 + $0x700] sm:$0xf]  ;;  %v6846_v47 = vor.u32 %v9198_v42, %v6845_v41  ;;  %4247 = vmatpush.bf16.msra.mxu1 %v6590_v46 }
  0x7e   : > { %v9262_v44 = vld [vmem:[%s10274_s14 + $0x71c] sm:$0xf0] }
  0x7f   : > { %v6301_v48 = vld [vmem:[%s10274_s14 + $0xc0] sm:$0xf]  ;;  %v7102_v51 = vor.u32 %v9262_v44, %v7101_v43  ;;  %4260 = vmatpush.bf16.msra.mxu2 %v6846_v47 }
  0x80   : > { %v9062_v49 = vld [vmem:[%s10274_s14 + $0xdc] sm:$0xf0] }
  0x81   : > { %v6557_v50 = vld [vmem:[%s10274_s14 + $0x2c0] sm:$0xf]  ;;  %v6302_v57 = vor.u32 %v9062_v49, %v6301_v48  ;;  %4273 = vmatpush.bf16.msra.mxu3 %v7102_v51 }
  0x82   : > { %v9126_v52 = vld [vmem:[%s10274_s14 + $0x2dc] sm:$0xf0] }
  0x83   : > { %v6813_v53 = vld [vmem:[%s10274_s14 + $0x4c0] sm:$0xf]  ;;  %v6558_v58 = vor.u32 %v9126_v52, %v6557_v50  ;;  %4235 = vmatpush.bf16.msra.mxu0 %v6302_v57 }
  0x84   : > { %v9190_v54 = vld [vmem:[%s10274_s14 + $0x4dc] sm:$0xf0] }
  0x85   : > { %v7069_v55 = vld [vmem:[%s10274_s14 + $0x6c0] sm:$0xf]  ;;  %v6814_v59 = vor.u32 %v9190_v54, %v6813_v53  ;;  %4248 = vmatpush.bf16.msra.mxu1 %v6558_v58 }
  0x86   : > { %v9254_v56 = vld [vmem:[%s10274_s14 + $0x6dc] sm:$0xf0] }
  0x87   : > { %v6269_v60 = vld [vmem:[%s10274_s14 + $0x80] sm:$0xf]  ;;  %v7070_v63 = vor.u32 %v9254_v56, %v7069_v55  ;;  %4261 = vmatpush.bf16.msra.mxu2 %v6814_v59 }
  0x88   : > { %v9054_v61 = vld [vmem:[%s10274_s14 + $0x9c] sm:$0xf0] }
  0x89   : > { %v6525_v62 = vld [vmem:[%s10274_s14 + $0x280] sm:$0xf]  ;;  %v6270_v5 = vor.u32 %v9054_v61, %v6269_v60  ;;  %4274 = vmatpush.bf16.msra.mxu3 %v7070_v63 }
  0x8a   : > { %v9118_v0 = vld [vmem:[%s10274_s14 + $0x29c] sm:$0xf0] }
  0x8b   : > { %v6781_v1 = vld [vmem:[%s10274_s14 + $0x480] sm:$0xf]  ;;  %v6526_v6 = vor.u32 %v9118_v0, %v6525_v62  ;;  %4236 = vmatpush.bf16.msra.mxu0 %v6270_v5 }
  0x8c   : > { %v9182_v2 = vld [vmem:[%s10274_s14 + $0x49c] sm:$0xf0] }
  0x8d   : > { %v7037_v3 = vld [vmem:[%s10274_s14 + $0x680] sm:$0xf]  ;;  %v6782_v7 = vor.u32 %v9182_v2, %v6781_v1  ;;  %4249 = vmatpush.bf16.msra.mxu1 %v6526_v6 }
  0x8e   : > { %v9246_v4 = vld [vmem:[%s10274_s14 + $0x69c] sm:$0xf0] }
  0x8f   : > { %v6237_v8 = vld [vmem:[%s10274_s14 + $0x40] sm:$0xf]  ;;  %v7038_v11 = vor.u32 %v9246_v4, %v7037_v3  ;;  %4262 = vmatpush.bf16.msra.mxu2 %v6782_v7  ;;  %v325_v3 = vld [vmem:[#allocation2] sm:$0xff] }
  0x90   : > { %v9046_v9 = vld [vmem:[%s10274_s14 + $0x5c] sm:$0xf0]  ;;  %331 = vst [vmem:[#allocation1] ss:$4 sm:$0xff] %v325_v3 }
  0x91   : > { %v6493_v10 = vld [vmem:[%s10274_s14 + $0x240] sm:$0xf]  ;;  %v6238_v17 = vor.u32 %v9046_v9, %v6237_v8  ;;  %4275 = vmatpush.bf16.msra.mxu3 %v7038_v11 }
  0x92   : > { %v9110_v12 = vld [vmem:[%s10274_s14 + $0x25c] sm:$0xf0] }
  0x93   : > { %v6749_v13 = vld [vmem:[%s10274_s14 + $0x440] sm:$0xf]  ;;  %v6494_v20 = vor.u32 %v9110_v12, %v6493_v10  ;;  %4237 = vmatpush.bf16.msra.mxu0 %v6238_v17 }
  0x94   : > { %v9174_v14 = vld [vmem:[%s10274_s14 + $0x45c] sm:$0xf0] }
  0x95   : > { %v7005_v15 = vld [vmem:[%s10274_s14 + $0x640] sm:$0xf]  ;;  %v6750_v21 = vor.u32 %v9174_v14, %v6749_v13  ;;  %4250 = vmatpush.bf16.msra.mxu1 %v6494_v20 }
  0x96   : > { %v9238_v16 = vld [vmem:[%s10274_s14 + $0x65c] sm:$0xf0] }
  0x97   : > { %v6205_v18 = vld [vmem:[%s10274_s14] sm:$0xf]  ;;  %v7006_v25 = vor.u32 %v9238_v16, %v7005_v15  ;;  %4263 = vmatpush.bf16.msra.mxu2 %v6750_v21 }
  0x98   : > { %v9038_v19 = vld [vmem:[%s10274_s14 + $0x1c] sm:$0xf0] }
  0x99   : > { %v6461_v22 = vld [vmem:[%s10274_s14 + $0x200] sm:$0xf]  ;;  %v6206_v32 = vor.u32 %v9038_v19, %v6205_v18  ;;  %4276 = vmatpush.bf16.msra.mxu3 %v7006_v25 }
  0x9a   : > { %v9102_v23 = vld [vmem:[%s10274_s14 + $0x21c] sm:$0xf0] }
  0x9b   : > { %v6717_v24 = vld [vmem:[%s10274_s14 + $0x400] sm:$0xf]  ;;  %v6462_v36 = vor.u32 %v9102_v23, %v6461_v22  ;;  %4238 = vmatpush.bf16.msra.mxu0 %v6206_v32 }
  0x9c   : > { %v9166_v26 = vld [vmem:[%s10274_s14 + $0x41c] sm:$0xf0] }
  0x9d   : > { %v6973_v27 = vld [vmem:[%s10274_s14 + $0x600] sm:$0xf]  ;;  %v6718_v37 = vor.u32 %v9166_v26, %v6717_v24  ;;  %4251 = vmatpush.bf16.msra.mxu1 %v6462_v36 }
  0x9e   : > { %v9230_v28 = vld [vmem:[%s10274_s14 + $0x61c] sm:$0xf0] }
  0x9f   : > { %v7453_v29 = vld [vmem:[%s10274_s14 + $0x9c0] sm:$0xf]  ;;  %v6974_v40 = vor.u32 %v9230_v28, %v6973_v27  ;;  %4264 = vmatpush.bf16.msra.mxu2 %v6718_v37  ;;  %v327_v28 = vld [vmem:[#allocation2 + $0x10] sm:$0xf] }
  0xa0   : > { %v9350_v30 = vld [vmem:[%s10274_s14 + $0x9dc] sm:$0xf0] }
  0xa1   : > { %v7709_v31 = vld [vmem:[%s10274_s14 + $0xbc0] sm:$0xf]  ;;  %v7454_v41 = vor.u32 %v9350_v30, %v7453_v29  ;;  %4277 = vmatpush.bf16.msra.mxu3 %v6974_v40 }
  0xa2   : > { %v9414_v33 = vld [vmem:[%s10274_s14 + $0xbdc] sm:$0xf0] }
  0xa3   : > { %v7965_v34 = vld [vmem:[%s10274_s14 + $0xdc0] sm:$0xf]  ;;  %v7710_v42 = vor.u32 %v9414_v33, %v7709_v31  ;;  %4283 = vmatpush.bf16.msrb.mxu0 %v7454_v41  ;;  %v336_v33 = vld.sshfl [vmem:[#allocation1 + $0x10] sm:$0xff pattern:$0x73625140] }
  0xa4   : > { %v9478_v35 = vld [vmem:[%s10274_s14 + $0xddc] sm:$0xf0]  ;;  %v10405_v36 = vpack.c.bf16 %v336_v33, %v336_v33  ;;  %v6399_v33 = vld [vmem:[%s10274_s14 + $0x1a0] sm:$0xf0] }
  0xa5   : > { %v8221_v38 = vld [vmem:[%s10274_s14 + $0xfc0] sm:$0xf]  ;;  %v7966_v43 = vor.u32 %v9478_v35, %v7965_v34  ;;  %4296 = vmatpush.bf16.msrb.mxu1 %v7710_v42  ;;  %v334_v34 = vld.sshfl [vmem:[#allocation1] sm:$0xff pattern:$0x73625140] }
  0xa6   : > { %v9542_v39 = vld [vmem:[%s10274_s14 + $0xfdc] sm:$0xf0]  ;;  %v10407_v37 = vpack.c.bf16 %v334_v34, %v334_v34  ;;  %4265 = vmatmul.bf16.vlgmr.msra.gmra.mxu2 %v10405_v36 }
  0xa7   : > { %v7421_v44 = vld [vmem:[%s10274_s14 + $0x980] sm:$0xf]  ;;  %v8222_v47 = vor.u32 %v9542_v39, %v8221_v38  ;;  %4309 = vmatpush.bf16.msrb.mxu2 %v7966_v43  ;;  %v335_v39 = vld.sshfl [vmem:[#allocation1 + $0x8] sm:$0xff pattern:$0x73625140] }
  0xa8   : > { %v9342_v45 = vld [vmem:[%s10274_s14 + $0x99c] sm:$0xf0]  ;;  %4239 = vmatmul.bf16.vlgmr.msra.gmra.mxu0 %v10407_v37 }
  0xa9   : > { %v7677_v46 = vld [vmem:[%s10274_s14 + $0xb80] sm:$0xf]  ;;  %v7422_v53 = vor.u32 %v9342_v45, %v7421_v44  ;;  %4322 = vmatpush.bf16.msrb.mxu3 %v8222_v47  ;;  %v10413_v44 = vpack.c.bf16 %v335_v39, %v335_v39 }
  0xaa   : > { %v9406_v48 = vld [vmem:[%s10274_s14 + $0xb9c] sm:$0xf0] }
  0xab   : > { %v7933_v49 = vld [vmem:[%s10274_s14 + $0xd80] sm:$0xf]  ;;  %v7678_v54 = vor.u32 %v9406_v48, %v7677_v46  ;;  %4284 = vmatpush.bf16.msrb.mxu0 %v7422_v53  ;;  %4252 = vmatmul.bf16.vlgmr.msra.gmra.mxu1 %v10413_v44 }
  0xac   : > { %v9470_v50 = vld [vmem:[%s10274_s14 + $0xd9c] sm:$0xf0] }
  0xad   : > { %v8189_v51 = vld [vmem:[%s10274_s14 + $0xf80] sm:$0xf]  ;;  %v7934_v55 = vor.u32 %v9470_v50, %v7933_v49  ;;  %4297 = vmatpush.bf16.msrb.mxu1 %v7678_v54 }
  0xae   : > { %v9534_v52 = vld [vmem:[%s10274_s14 + $0xf9c] sm:$0xf0] }
  0xaf   : > { %v7389_v56 = vld [vmem:[%s10274_s14 + $0x940] sm:$0xf]  ;;  %v8190_v59 = vor.u32 %v9534_v52, %v8189_v51  ;;  %4310 = vmatpush.bf16.msrb.mxu2 %v7934_v55 }
  0xb0   : > { %v9334_v57 = vld [vmem:[%s10274_s14 + $0x95c] sm:$0xf0] }
  0xb1   : > { %v7645_v58 = vld [vmem:[%s10274_s14 + $0xb40] sm:$0xf]  ;;  %v7390_v1 = vor.u32 %v9334_v57, %v7389_v56  ;;  %4323 = vmatpush.bf16.msrb.mxu3 %v8190_v59  ;;  %v326_v57 = vld [vmem:[#allocation2 + $0x8] sm:$0xff] }
  0xb2   : > { %v9398_v60 = vld [vmem:[%s10274_s14 + $0xb5c] sm:$0xf0]  ;;  %333 = vst [vmem:[#allocation1 + $0x20] ss:$4 sm:$0xff] %v326_v57 }
  0xb3   : > { %v7901_v61 = vld [vmem:[%s10274_s14 + $0xd40] sm:$0xf]  ;;  %v7646_v4 = vor.u32 %v9398_v60, %v7645_v58  ;;  %4285 = vmatpush.bf16.msrb.mxu0 %v7390_v1 }
  0xb4   : > { %v9462_v62 = vld [vmem:[%s10274_s14 + $0xd5c] sm:$0xf0] }
  0xb5   : > { %v8157_v63 = vld [vmem:[%s10274_s14 + $0xf40] sm:$0xf]  ;;  %v7902_v5 = vor.u32 %v9462_v62, %v7901_v61  ;;  %4298 = vmatpush.bf16.msrb.mxu1 %v7646_v4 }
  0xb6   : > { %v9526_v0 = vld [vmem:[%s10274_s14 + $0xf5c] sm:$0xf0] }
  0xb7   : > { %v7357_v2 = vld [vmem:[%s10274_s14 + $0x900] sm:$0xf]  ;;  %v8158_v8 = vor.u32 %v9526_v0, %v8157_v63  ;;  %4311 = vmatpush.bf16.msrb.mxu2 %v7902_v5 }
  0xb8   : > { %v9326_v6 = vld [vmem:[%s10274_s14 + $0x91c] sm:$0xf0] }
  0xb9   : > { %v7613_v7 = vld [vmem:[%s10274_s14 + $0xb00] sm:$0xf]  ;;  %v7358_v14 = vor.u32 %v9326_v6, %v7357_v2  ;;  %4324 = vmatpush.bf16.msrb.mxu3 %v8158_v8 }
  0xba   : > { %v9390_v9 = vld [vmem:[%s10274_s14 + $0xb1c] sm:$0xf0] }
  0xbb   : > { %v7869_v10 = vld [vmem:[%s10274_s14 + $0xd00] sm:$0xf]  ;;  %v7614_v17 = vor.u32 %v9390_v9, %v7613_v7  ;;  %4286 = vmatpush.bf16.msrb.mxu0 %v7358_v14  ;;  %v6431_v14 = vld [vmem:[%s10274_s14 + $0x1e0] sm:$0xf0] }
  0xbc   : > { %v9454_v11 = vld [vmem:[%s10274_s14 + $0xd1c] sm:$0xf0] }
  0xbd   : > { %v8125_v12 = vld [vmem:[%s10274_s14 + $0xf00] sm:$0xf]  ;;  %v7870_v18 = vor.u32 %v9454_v11, %v7869_v10  ;;  %4299 = vmatpush.bf16.msrb.mxu1 %v7614_v17 }
  0xbe   : > { %v9518_v13 = vld [vmem:[%s10274_s14 + $0xf1c] sm:$0xf0] }
  0xbf   : > { %v7325_v15 = vld [vmem:[%s10274_s14 + $0x8c0] sm:$0xf]  ;;  %v8126_v22 = vor.u32 %v9518_v13, %v8125_v12  ;;  %4312 = vmatpush.bf16.msrb.mxu2 %v7870_v18  ;;  %v9090_v13 = vld [vmem:[%s10274_s14 + $0x1c4] sm:$0xf] }
  0xc0   : > { %v9318_v16 = vld [vmem:[%s10274_s14 + $0x8dc] sm:$0xf0]  ;;  %v6687_v18 = vld [vmem:[%s10274_s14 + $0x3e0] sm:$0xf0] }
  0xc1   : > { %v7581_v19 = vld [vmem:[%s10274_s14 + $0xac0] sm:$0xf]  ;;  %v7326_v29 = vor.u32 %v9318_v16, %v7325_v15  ;;  %4325 = vmatpush.bf16.msrb.mxu3 %v8126_v22  ;;  %v9154_v15 = vld [vmem:[%s10274_s14 + $0x3c4] sm:$0xf] }
  0xc2   : > { %v9382_v20 = vld [vmem:[%s10274_s14 + $0xadc] sm:$0xf0] }
  0xc3   : > { %v7837_v21 = vld [vmem:[%s10274_s14 + $0xcc0] sm:$0xf]  ;;  %v7582_v30 = vor.u32 %v9382_v20, %v7581_v19  ;;  %4287 = vmatpush.bf16.msrb.mxu0 %v7326_v29  ;;  %v339_v29 = vld.sshfl [vmem:[#allocation1 + $0x28] sm:$0xff pattern:$0x73625140] }
  0xc4   : > { %v9446_v23 = vld [vmem:[%s10274_s14 + $0xcdc] sm:$0xf0] }
  0xc5   : > { %v8093_v24 = vld [vmem:[%s10274_s14 + $0xec0] sm:$0xf]  ;;  %v7838_v35 = vor.u32 %v9446_v23, %v7837_v21  ;;  %4300 = vmatpush.bf16.msrb.mxu1 %v7582_v30  ;;  %v6690_v30 = vor.u32 %v9154_v15, %v6687_v18  ;;  %v6559_v15 = vld [vmem:[%s10274_s14 + $0x2e0] sm:$0xf0] }
  0xc6   : > { %v9510_v25 = vld [vmem:[%s10274_s14 + $0xedc] sm:$0xf0] }
  0xc7   : > { %v7293_v26 = vld [vmem:[%s10274_s14 + $0x880] sm:$0xf]  ;;  %v8094_v40 = vor.u32 %v9510_v25, %v8093_v24  ;;  %4313 = vmatpush.bf16.msrb.mxu2 %v7838_v35  ;;  %v340_v24 = vld.sshfl [vmem:[#allocation1 + $0x30] sm:$0xff pattern:$0x73625140] }
  0xc8   : > { %v9310_v27 = vld [vmem:[%s10274_s14 + $0x89c] sm:$0xf0]  ;;  %v338_v25 = vld.sshfl [vmem:[#allocation1 + $0x20] sm:$0xff pattern:$0x73625140]  ;;  %v10451_v34 = vpack.c.bf16 %v340_v24, %v340_v24 }
  0xc9   : > { %v7549_v31 = vld [vmem:[%s10274_s14 + $0xa80] sm:$0xf]  ;;  %v7294_v47 = vor.u32 %v9310_v27, %v7293_v26  ;;  %4326 = vmatpush.bf16.msrb.mxu3 %v8094_v40  ;;  %v6434_v27 = vor.u32 %v9090_v13, %v6431_v14  ;;  %v9146_v35 = vld [vmem:[%s10274_s14 + $0x384] sm:$0xf]  ;;  %v10455_v39 = vpack.c.bf16 %v338_v25, %v338_v25 }
  0xca   : > { %v9374_v32 = vld [vmem:[%s10274_s14 + $0xa9c] sm:$0xf0]  ;;  %v6303_v13 = vld [vmem:[%s10274_s14 + $0xe0] sm:$0xf0] }
  0xcb   : > { %v337_v38 = vld.sshfl [vmem:[#allocation1 + $0x18] sm:$0xff pattern:$0x73625140]  ;;  %v7550_v49 = vor.u32 %v9374_v32, %v7549_v31  ;;  %4288 = vmatpush.bf16.msrb.mxu0 %v7294_v47  ;;  %v9082_v32 = vld [vmem:[%s10274_s14 + $0x184] sm:$0xf] }
  0xcc   : > { %v7805_v41 = vld [vmem:[%s10274_s14 + $0xc80] sm:$0xf]  ;;  %v10411_v43 = vpack.c.bf16 %v337_v38, %v337_v38  ;;  %342 = vst [vmem:[#allocation1] ss:$4 sm:$0xff] %v327_v28  ;;  %v6655_v38 = vld [vmem:[%s10274_s14 + $0x3a0] sm:$0xf0] }
  0xcd   : > { %v9438_v42 = vld [vmem:[%s10274_s14 + $0xc9c] sm:$0xf0]  ;;  %4301 = vmatpush.bf16.msrb.mxu1 %v7550_v49  ;;  %v9122_v14 = vld [vmem:[%s10274_s14 + $0x2c4] sm:$0xf] }
  0xce   : > { %v8061_v45 = vld [vmem:[%s10274_s14 + $0xe80] sm:$0xf]  ;;  %4278 = vmatmul.bf16.vlgmr.msra.gmra.mxu3 %v10411_v43  ;;  %v7806_v50 = vor.u32 %v9438_v42, %v7805_v41  ;;  %v10459_v42 = vpack.c.bf16 %v339_v29, %v339_v29  ;;  %v9050_v24 = vld [vmem:[%s10274_s14 + $0x84] sm:$0xf] }
  0xcf   : > { %v9502_v46 = vld [vmem:[%s10274_s14 + $0xe9c] sm:$0xf0]  ;;  %v6271_v25 = vld [vmem:[%s10274_s14 + $0xa0] sm:$0xf0] }
  0xd0   : > { %v7261_v48 = vld [vmem:[%s10274_s14 + $0x840] sm:$0xf]  ;;  %v8062_v54 = vor.u32 %v9502_v46, %v8061_v45  ;;  %4314 = vmatpush.bf16.msrb.mxu2 %v7806_v50  ;;  %v6402_v46 = vor.u32 %v9082_v32, %v6399_v33  ;;  %v6658_v50 = vor.u32 %v9146_v35, %v6655_v38 }
  0xd1   : > { %v9302_v51 = vld [vmem:[%s10274_s14 + $0x85c] sm:$0xf0] }
  0xd2   : > { %v7517_v52 = vld [vmem:[%s10274_s14 + $0xa40] sm:$0xf]  ;;  %v7262_v60 = vor.u32 %v9302_v51, %v7261_v48  ;;  %4327 = vmatpush.bf16.msrb.mxu3 %v8062_v54  ;;  %v9138_v54 = vld [vmem:[%s10274_s14 + $0x344] sm:$0xf] }
  0xd3   : > { %v9366_v53 = vld [vmem:[%s10274_s14 + $0xa5c] sm:$0xf0] }
  0xd4   : > { %v7773_v55 = vld [vmem:[%s10274_s14 + $0xc40] sm:$0xf]  ;;  %v7518_v0 = vor.u32 %v9366_v53, %v7517_v52  ;;  %4289 = vmatpush.bf16.msrb.mxu0 %v7262_v60  ;;  %v9074_v52 = vld [vmem:[%s10274_s14 + $0x144] sm:$0xf] }
  0xd5   : > { %v9430_v56 = vld [vmem:[%s10274_s14 + $0xc5c] sm:$0xf0]  ;;  %v6367_v53 = vld [vmem:[%s10274_s14 + $0x160] sm:$0xf0] }
  0xd6   : > { %v8029_v58 = vld [vmem:[%s10274_s14 + $0xe40] sm:$0xf]  ;;  %v7774_v1 = vor.u32 %v9430_v56, %v7773_v55  ;;  %4302 = vmatpush.bf16.msrb.mxu1 %v7518_v0  ;;  %v6623_v55 = vld [vmem:[%s10274_s14 + $0x360] sm:$0xf0] }
  0xd7   : > { %v9494_v59 = vld [vmem:[%s10274_s14 + $0xe5c] sm:$0xf0]  ;;  %v9066_v0 = vld [vmem:[%s10274_s14 + $0x104] sm:$0xf] }
  0xd8   : > { %v7229_v61 = vld [vmem:[%s10274_s14 + $0x800] sm:$0xf]  ;;  %v8030_v5 = vor.u32 %v9494_v59, %v8029_v58  ;;  %4315 = vmatpush.bf16.msrb.mxu2 %v7774_v1  ;;  %v6370_v58 = vor.u32 %v9074_v52, %v6367_v53  ;;  %v6335_v1 = vld [vmem:[%s10274_s14 + $0x120] sm:$0xf0] }
  0xd9   : > { %v9294_v62 = vld [vmem:[%s10274_s14 + $0x81c] sm:$0xf0] }
  0xda   : > { %v7485_v63 = vld [vmem:[%s10274_s14 + $0xa00] sm:$0xf]  ;;  %v7230_v12 = vor.u32 %v9294_v62, %v7229_v61  ;;  %4328 = vmatpush.bf16.msrb.mxu3 %v8030_v5  ;;  %v6626_v62 = vor.u32 %v9138_v54, %v6623_v55  ;;  %v9034_v55 = vld [vmem:[%s10274_s14 + $0x4] sm:$0xf] }
  0xdb   : > { %v9358_v2 = vld [vmem:[%s10274_s14 + $0xa1c] sm:$0xf0] }
  0xdc   : > { %v7741_v3 = vld [vmem:[%s10274_s14 + $0xc00] sm:$0xf]  ;;  %v7486_v16 = vor.u32 %v9358_v2, %v7485_v63  ;;  %4290 = vmatpush.bf16.msrb.mxu0 %v7230_v12  ;;  %v9130_v2 = vld [vmem:[%s10274_s14 + $0x304] sm:$0xf] }
  0xdd   : > { %v9422_v4 = vld [vmem:[%s10274_s14 + $0xc1c] sm:$0xf0]  ;;  %v9058_v12 = vld [vmem:[%s10274_s14 + $0xc4] sm:$0xf] }
  0xde   : > { %v7997_v6 = vld [vmem:[%s10274_s14 + $0xe00] sm:$0xf]  ;;  %v7742_v17 = vor.u32 %v9422_v4, %v7741_v3  ;;  %4303 = vmatpush.bf16.msrb.mxu1 %v7486_v16  ;;  %v6591_v3 = vld [vmem:[%s10274_s14 + $0x320] sm:$0xf0]  ;;  %v6306_v18 = vor.u32 %v9058_v12, %v6303_v13 }
  0xdf   : > { %v9486_v7 = vld [vmem:[%s10274_s14 + $0xe1c] sm:$0xf0]  ;;  %4291 = vmatmul.bf16.vlgmr.msrb.gmra.mxu0 %v10455_v39  ;;  %v9210_v13 = vld [vmem:[%s10274_s14 + $0x584] sm:$0xf] }
  0xe0   : > { %v8477_v8 = vld [vmem:[%s10274_s14 + $0x11c0] sm:$0xf]  ;;  %v7998_v21 = vor.u32 %v9486_v7, %v7997_v6  ;;  %4316 = vmatpush.bf16.msrb.mxu2 %v7742_v17  ;;  %v6338_v6 = vor.u32 %v9066_v0, %v6335_v1  ;;  %v9346_v1 = vld [vmem:[%s10274_s14 + $0x9c4] sm:$0xf] }
  0xe1   : > { %v9606_v9 = vld [vmem:[%s10274_s14 + $0x11dc] sm:$0xf0]  ;;  %4304 = vmatmul.bf16.vlgmr.msrb.gmra.mxu1 %v10459_v42 }
  0xe2   : > { %v8733_v10 = vld [vmem:[%s10274_s14 + $0x13c0] sm:$0xf]  ;;  %v8478_v22 = vor.u32 %v9606_v9, %v8477_v8  ;;  %4329 = vmatpush.bf16.msrb.mxu3 %v7998_v21 }
  0xe3   : > { %v9670_v11 = vld [vmem:[%s10274_s14 + $0x13dc] sm:$0xf0]  ;;  %4317 = vmatmul.bf16.vlgmr.msrb.gmra.mxu2 %v10451_v34 }
  0xe4   : > { %v8445_v19 = vld [vmem:[%s10274_s14 + $0x1180] sm:$0xf]  ;;  %v8734_v26 = vor.u32 %v9670_v11, %v8733_v10  ;;  %4335 = vmatpush.bf16.msra.mxu0 %v8478_v22  ;;  %4361 = vmatpush.bf16.msra.mxu2 %v6434_v27  ;;  %v6594_v10 = vor.u32 %v9130_v2, %v6591_v3  ;;  %v6562_v22 = vor.u32 %v9122_v14, %v6559_v15  ;;  %v6527_v27 = vld [vmem:[%s10274_s14 + $0x2a0] sm:$0xf0] }
  0xe5   : > { %v9598_v20 = vld [vmem:[%s10274_s14 + $0x119c] sm:$0xf0]  ;;  %v7455_v2 = vld [vmem:[%s10274_s14 + $0x9e0] sm:$0xf0] }
  0xe6   : > { %v8701_v23 = vld [vmem:[%s10274_s14 + $0x1380] sm:$0xf]  ;;  %v8446_v41 = vor.u32 %v9598_v20, %v8445_v19  ;;  %4348 = vmatpush.bf16.msra.mxu1 %v8734_v26  ;;  %4374 = vmatpush.bf16.msra.mxu3 %v6690_v30  ;;  %v9114_v26 = vld [vmem:[%s10274_s14 + $0x284] sm:$0xf]  ;;  %v6274_v30 = vor.u32 %v9050_v24, %v6271_v25  ;;  %v7458_v12 = vor.u32 %v9346_v1, %v7455_v2 }
  0xe7   : > { %v341_v28 = vld.sshfl [vmem:[#allocation1 + $0x38] sm:$0xff pattern:$0x73625140]  ;;  %v6530_v35 = vor.u32 %v9114_v26, %v6527_v27  ;;  %v9410_v3 = vld [vmem:[%s10274_s14 + $0xbc4] sm:$0xf] }
  0xe8   : > { %v9662_v31 = vld [vmem:[%s10274_s14 + $0x139c] sm:$0xf0]  ;;  %v10457_v40 = vpack.c.bf16 %v341_v28, %v341_v28  ;;  %4336 = vmatpush.bf16.msra.mxu0 %v8446_v41  ;;  %4362 = vmatpush.bf16.msra.mxu2 %v6402_v46  ;;  %v9042_v41 = vld [vmem:[%s10274_s14 + $0x44] sm:$0xf] }
  0xe9   : > { %v8702_v45 = vor.u32 %v9662_v31, %v8701_v23  ;;  %v8413_v47 = vld [vmem:[%s10274_s14 + $0x1140] sm:$0xf]  ;;  %v9106_v46 = vld [vmem:[%s10274_s14 + $0x244] sm:$0xf] }
  0xea   : > { %v9590_v48 = vld [vmem:[%s10274_s14 + $0x115c] sm:$0xf0]  ;;  %4330 = vmatmul.bf16.vlgmr.msrb.gmra.mxu3 %v10457_v40  ;;  %v6911_v14 = vld [vmem:[%s10274_s14 + $0x5a0] sm:$0xf0] }
  0xeb   : > { %v8669_v49 = vld [vmem:[%s10274_s14 + $0x1340] sm:$0xf]  ;;  %v8414_v56 = vor.u32 %v9590_v48, %v8413_v47  ;;  %4349 = vmatpush.bf16.msra.mxu1 %v8702_v45  ;;  %4375 = vmatpush.bf16.msra.mxu3 %v6658_v50  ;;  %v6239_v45 = vld [vmem:[%s10274_s14 + $0x60] sm:$0xf0]  ;;  %v6914_v24 = vor.u32 %v9210_v13, %v6911_v14 }
  0xec   : > { %v9654_v51 = vld [vmem:[%s10274_s14 + $0x135c] sm:$0xf0]  ;;  %4363 = vmatpush.bf16.msra.mxu2 %v6370_v58  ;;  %v6495_v47 = vld [vmem:[%s10274_s14 + $0x260] sm:$0xf0]  ;;  %v6242_v53 = vor.u32 %v9042_v41, %v6239_v45 }
  0xed   : > { %v8670_v57 = vor.u32 %v9654_v51, %v8669_v49  ;;  %v8381_v59 = vld [vmem:[%s10274_s14 + $0x1100] sm:$0xf]  ;;  %4337 = vmatpush.bf16.msra.mxu0 %v8414_v56  ;;  %v6207_v56 = vld [vmem:[%s10274_s14 + $0x20] sm:$0xf0] }
  0xee   : > { %v9582_v60 = vld [vmem:[%s10274_s14 + $0x111c] sm:$0xf0]  ;;  %v9098_v58 = vld [vmem:[%s10274_s14 + $0x204] sm:$0xf] }
  0xef   : > { %v8637_v61 = vld [vmem:[%s10274_s14 + $0x1300] sm:$0xf]  ;;  %v8382_v4 = vor.u32 %v9582_v60, %v8381_v59  ;;  %4350 = vmatpush.bf16.msra.mxu1 %v8670_v57  ;;  %4376 = vmatpush.bf16.msra.mxu3 %v6626_v62  ;;  %v6498_v57 = vor.u32 %v9106_v46, %v6495_v47  ;;  %v6463_v59 = vld [vmem:[%s10274_s14 + $0x220] sm:$0xf0] }
  0xf0   : > { %v9646_v63 = vld [vmem:[%s10274_s14 + $0x131c] sm:$0xf0]  ;;  %4364 = vmatpush.bf16.msra.mxu2 %v6338_v6  ;;  %v9218_v60 = vld [vmem:[%s10274_s14 + $0x5c4] sm:$0xf] }
  0xf1   : > { %v8638_v5 = vor.u32 %v9646_v63, %v8637_v61  ;;  %v8349_v7 = vld [vmem:[%s10274_s14 + $0x10c0] sm:$0xf]  ;;  %4338 = vmatpush.bf16.msra.mxu0 %v8382_v4  ;;  %v6943_v61 = vld [vmem:[%s10274_s14 + $0x5e0] sm:$0xf0] }
  0xf2   : > { %v9574_v8 = vld [vmem:[%s10274_s14 + $0x10dc] sm:$0xf0]  ;;  %v9282_v62 = vld [vmem:[%s10274_s14 + $0x7c4] sm:$0xf] }
  0xf3   : > { %v8605_v9 = vld [vmem:[%s10274_s14 + $0x12c0] sm:$0xf]  ;;  %v8350_v16 = vor.u32 %v9574_v8, %v8349_v7  ;;  %4351 = vmatpush.bf16.msra.mxu1 %v8638_v5  ;;  %4377 = vmatpush.bf16.msra.mxu3 %v6594_v10  ;;  %v7199_v63 = vld [vmem:[%s10274_s14 + $0x7e0] sm:$0xf0]  ;;  %v6210_v5 = vor.u32 %v9034_v55, %v6207_v56  ;;  %v6466_v8 = vor.u32 %v9098_v58, %v6463_v59 }
  0xf4   : > { %v9638_v11 = vld [vmem:[%s10274_s14 + $0x12dc] sm:$0xf0]  ;;  %4365 = vmatpush.bf16.msra.mxu2 %v6306_v18  ;;  %v7711_v6 = vld [vmem:[%s10274_s14 + $0xbe0] sm:$0xf0] }
  0xf5   : > { %v8606_v17 = vor.u32 %v9638_v11, %v8605_v9  ;;  %v8317_v19 = vld [vmem:[%s10274_s14 + $0x1080] sm:$0xf]  ;;  %4339 = vmatpush.bf16.msra.mxu0 %v8350_v16  ;;  %v343_v7 = vld.sshfl [vmem:[#allocation1] sm:$0xff pattern:$0x73625140]  ;;  %v6946_v9 = vor.u32 %v9218_v60, %v6943_v61  ;;  %v7202_v11 = vor.u32 %v9282_v62, %v7199_v63  ;;  %v7714_v16 = vor.u32 %v9410_v3, %v7711_v6 }
  0xf6   : > { %v9566_v20 = vld [vmem:[%s10274_s14 + $0x109c] sm:$0xf0]  ;;  %v344_v10 = vld.sshfl [vmem:[#allocation1 + $0x8] sm:$0xff pattern:$0x73625140] }
  0xf7   : > { %v8573_v21 = vld [vmem:[%s10274_s14 + $0x1280] sm:$0xf]  ;;  %v8318_v28 = vor.u32 %v9566_v20, %v8317_v19  ;;  %4352 = vmatpush.bf16.msra.mxu1 %v8606_v17  ;;  %4378 = vmatpush.bf16.msra.mxu3 %v6562_v22  ;;  %v9274_v15 = vld [vmem:[%s10274_s14 + $0x784] sm:$0xf]  ;;  %v10524_v17 = vpack.c.bf16 %v343_v7, %v343_v7 }
  0xf8   : > { %v9630_v23 = vld [vmem:[%s10274_s14 + $0x129c] sm:$0xf0]  ;;  %4366 = vmatpush.bf16.msra.mxu2 %v6274_v30  ;;  %v7167_v18 = vld [vmem:[%s10274_s14 + $0x7a0] sm:$0xf0] }
  0xf9   : > { %v8574_v29 = vor.u32 %v9630_v23, %v8573_v21  ;;  %v8285_v31 = vld [vmem:[%s10274_s14 + $0x1040] sm:$0xf]  ;;  %4340 = vmatpush.bf16.msra.mxu0 %v8318_v28  ;;  %v9338_v19 = vld [vmem:[%s10274_s14 + $0x984] sm:$0xf]  ;;  %v10529_v21 = vpack.c.bf16 %v344_v10, %v344_v10  ;;  %v7170_v25 = vor.u32 %v9274_v15, %v7167_v18 }
  0xfa   : > { %v9558_v32 = vld [vmem:[%s10274_s14 + $0x105c] sm:$0xf0]  ;;  %v7423_v20 = vld [vmem:[%s10274_s14 + $0x9a0] sm:$0xf0] }
  0xfb   : > { %v8541_v33 = vld [vmem:[%s10274_s14 + $0x1240] sm:$0xf]  ;;  %v8286_v48 = vor.u32 %v9558_v32, %v8285_v31  ;;  %4353 = vmatpush.bf16.msra.mxu1 %v8574_v29  ;;  %4379 = vmatpush.bf16.msra.mxu3 %v6530_v35  ;;  %v9402_v22 = vld [vmem:[%s10274_s14 + $0xb84] sm:$0xf]  ;;  %v7426_v26 = vor.u32 %v9338_v19, %v7423_v20 }
  0xfc   : > { %v9622_v38 = vld [vmem:[%s10274_s14 + $0x125c] sm:$0xf0]  ;;  %4367 = vmatpush.bf16.msra.mxu2 %v6242_v53  ;;  %v7679_v23 = vld [vmem:[%s10274_s14 + $0xba0] sm:$0xf0] }
  0xfd   : > { %v8253_v49 = vld [vmem:[%s10274_s14 + $0x1000] sm:$0xf]  ;;  %v8542_v52 = vor.u32 %v9622_v38, %v8541_v33  ;;  %4341 = vmatpush.bf16.msra.mxu0 %v8286_v48  ;;  %v9202_v27 = vld [vmem:[%s10274_s14 + $0x544] sm:$0xf]  ;;  %v7682_v30 = vor.u32 %v9402_v22, %v7679_v23 }
  0xfe   : > { %v9550_v50 = vld [vmem:[%s10274_s14 + $0x101c] sm:$0xf0]  ;;  %v6879_v28 = vld [vmem:[%s10274_s14 + $0x560] sm:$0xf0] }
  0xff   : > { %v8509_v51 = vld [vmem:[%s10274_s14 + $0x1200] sm:$0xf]  ;;  %v8254_v0 = vor.u32 %v9550_v50, %v8253_v49  ;;  %4354 = vmatpush.bf16.msra.mxu1 %v8542_v52  ;;  %4380 = vmatpush.bf16.msra.mxu3 %v6498_v57  ;;  %v9266_v29 = vld [vmem:[%s10274_s14 + $0x744] sm:$0xf]  ;;  %v6882_v41 = vor.u32 %v9202_v27, %v6879_v28 }
 0x100   : > { %v9614_v54 = vld [vmem:[%s10274_s14 + $0x121c] sm:$0xf0]  ;;  %4368 = vmatpush.bf16.msra.mxu2 %v6210_v5  ;;  %v7135_v31 = vld [vmem:[%s10274_s14 + $0x760] sm:$0xf0] }
 0x101   : > { %v8510_v4 = vor.u32 %v9614_v54, %v8509_v51  ;;  %4342 = vmatpush.bf16.msra.mxu0 %v8254_v0  ;;  %v9330_v32 = vld [vmem:[%s10274_s14 + $0x944] sm:$0xf]  ;;  %v7138_v45 = vor.u32 %v9266_v29, %v7135_v31 }
 0x102   : > { %v7391_v33 = vld [vmem:[%s10274_s14 + $0x960] sm:$0xf0] }
 0x103   : > { %4355 = vmatpush.bf16.msra.mxu1 %v8510_v4  ;;  %4381 = vmatpush.bf16.msra.mxu3 %v6466_v8  ;;  %v9394_v35 = vld [vmem:[%s10274_s14 + $0xb44] sm:$0xf]  ;;  %v7394_v46 = vor.u32 %v9330_v32, %v7391_v33 }
 0x104   : > { %4413 = vmatpush.bf16.msrb.mxu2 %v7458_v12  ;;  %4343 = vmatmul.bf16.vlgmr.msra.gmra.mxu0 %v10524_v17  ;;  %v7647_v38 = vld [vmem:[%s10274_s14 + $0xb60] sm:$0xf0] }
 0x105   : > { %4387 = vmatpush.bf16.msrb.mxu0 %v6946_v9  ;;  %4369 = vmatmul.bf16.vlgmr.msra.gmra.mxu2 %v10407_v37  ;;  %v9194_v47 = vld [vmem:[%s10274_s14 + $0x504] sm:$0xf]  ;;  %v7650_v50 = vor.u32 %v9394_v35, %v7647_v38 }
 0x106   : > { %4356 = vmatmul.bf16.vlgmr.msra.gmra.mxu1 %v10529_v21  ;;  %4382 = vmatmul.bf16.vlgmr.msra.gmra.mxu3 %v10413_v44  ;;  %v6847_v48 = vld [vmem:[%s10274_s14 + $0x520] sm:$0xf0] }
 0x107   : > { %4400 = vmatpush.bf16.msrb.mxu1 %v7202_v11  ;;  %4426 = vmatpush.bf16.msrb.mxu3 %v7714_v16  ;;  %v9258_v49 = vld [vmem:[%s10274_s14 + $0x704] sm:$0xf]  ;;  %v6850_v56 = vor.u32 %v9194_v47, %v6847_v48 }
 0x108   : > { %4414 = vmatpush.bf16.msrb.mxu2 %v7426_v26  ;;  %v7103_v51 = vld [vmem:[%s10274_s14 + $0x720] sm:$0xf0] }
 0x109   : > { %4388 = vmatpush.bf16.msrb.mxu0 %v6914_v24  ;;  %v9322_v52 = vld [vmem:[%s10274_s14 + $0x904] sm:$0xf]  ;;  %v7106_v57 = vor.u32 %v9258_v49, %v7103_v51 }
 0x10a   : > { %v7359_v53 = vld [vmem:[%s10274_s14 + $0x920] sm:$0xf0] }
 0x10b   : > { %4401 = vmatpush.bf16.msrb.mxu1 %v7170_v25  ;;  %4427 = vmatpush.bf16.msrb.mxu3 %v7682_v30  ;;  %v9386_v54 = vld [vmem:[%s10274_s14 + $0xb04] sm:$0xf]  ;;  %v7362_v58 = vor.u32 %v9322_v52, %v7359_v53 }
 0x10c   : > { %v7615_v55 = vld [vmem:[%s10274_s14 + $0xb20] sm:$0xf0]  ;;  %4415 = vmatpush.bf16.msrb.mxu2 %v7394_v46 }
 0x10d   : > { %4389 = vmatpush.bf16.msrb.mxu0 %v6882_v41  ;;  %v9186_v59 = vld [vmem:[%s10274_s14 + $0x4c4] sm:$0xf]  ;;  %v7618_v62 = vor.u32 %v9386_v54, %v7615_v55 }
 0x10e   : > { %v6815_v60 = vld [vmem:[%s10274_s14 + $0x4e0] sm:$0xf0] }
 0x10f   : > { %4402 = vmatpush.bf16.msrb.mxu1 %v7138_v45  ;;  %v9250_v61 = vld [vmem:[%s10274_s14 + $0x6c4] sm:$0xf]  ;;  %4428 = vmatpush.bf16.msrb.mxu3 %v7650_v50  ;;  %v6818_v4 = vor.u32 %v9186_v59, %v6815_v60 }
 0x110   : > { %v7071_v63 = vld [vmem:[%s10274_s14 + $0x6e0] sm:$0xf0]  ;;  %4416 = vmatpush.bf16.msrb.mxu2 %v7362_v58 }
 0x111   : > { %v9314_v0 = vld [vmem:[%s10274_s14 + $0x8c4] sm:$0xf]  ;;  %4390 = vmatpush.bf16.msrb.mxu0 %v6850_v56  ;;  %v7074_v5 = vor.u32 %v9250_v61, %v7071_v63 }
 0x112   : > { %v7327_v1 = vld [vmem:[%s10274_s14 + $0x8e0] sm:$0xf0] }
 0x113   : > { %v9378_v2 = vld [vmem:[%s10274_s14 + $0xac4] sm:$0xf]  ;;  %4403 = vmatpush.bf16.msrb.mxu1 %v7106_v57  ;;  %v7330_v6 = vor.u32 %v9314_v0, %v7327_v1  ;;  %4429 = vmatpush.bf16.msrb.mxu3 %v7618_v62 }
 0x114   : > { %v7583_v3 = vld [vmem:[%s10274_s14 + $0xae0] sm:$0xf0] }
 0x115   : > { %v9178_v7 = vld [vmem:[%s10274_s14 + $0x484] sm:$0xf]  ;;  %v7586_v10 = vor.u32 %v9378_v2, %v7583_v3  ;;  %4391 = vmatpush.bf16.msrb.mxu0 %v6818_v4  ;;  %4417 = vmatpush.bf16.msrb.mxu2 %v7330_v6 }
 0x116   : > { %v6783_v8 = vld [vmem:[%s10274_s14 + $0x4a0] sm:$0xf0] }
 0x117   : > { %v9242_v9 = vld [vmem:[%s10274_s14 + $0x684] sm:$0xf]  ;;  %v6786_v16 = vor.u32 %v9178_v7, %v6783_v8  ;;  %4404 = vmatpush.bf16.msrb.mxu1 %v7074_v5  ;;  %4430 = vmatpush.bf16.msrb.mxu3 %v7586_v10 }
 0x118   : > { %v7039_v11 = vld [vmem:[%s10274_s14 + $0x6a0] sm:$0xf0] }
 0x119   : > { %v9306_v12 = vld [vmem:[%s10274_s14 + $0x884] sm:$0xf]  ;;  %v7042_v18 = vor.u32 %v9242_v9, %v7039_v11  ;;  %4392 = vmatpush.bf16.msrb.mxu0 %v6786_v16 }
 0x11a   : > { %v7295_v13 = vld [vmem:[%s10274_s14 + $0x8a0] sm:$0xf0] }
 0x11b   : > { %v9370_v14 = vld [vmem:[%s10274_s14 + $0xa84] sm:$0xf]  ;;  %v7298_v19 = vor.u32 %v9306_v12, %v7295_v13  ;;  %4405 = vmatpush.bf16.msrb.mxu1 %v7042_v18 }
 0x11c   : > { %v7551_v15 = vld [vmem:[%s10274_s14 + $0xaa0] sm:$0xf0] }
 0x11d   : > { %v9170_v20 = vld [vmem:[%s10274_s14 + $0x444] sm:$0xf]  ;;  %v7554_v24 = vor.u32 %v9370_v14, %v7551_v15  ;;  %4418 = vmatpush.bf16.msrb.mxu2 %v7298_v19 }
 0x11e   : > { %v6751_v22 = vld [vmem:[%s10274_s14 + $0x460] sm:$0xf0] }
 0x11f   : > { %v9234_v23 = vld [vmem:[%s10274_s14 + $0x644] sm:$0xf]  ;;  %v6754_v30 = vor.u32 %v9170_v20, %v6751_v22  ;;  %4431 = vmatpush.bf16.msrb.mxu3 %v7554_v24 }
 0x120   : > { %v7007_v25 = vld [vmem:[%s10274_s14 + $0x660] sm:$0xf0] }
 0x121   : > { %v9298_v26 = vld [vmem:[%s10274_s14 + $0x844] sm:$0xf]  ;;  %v7010_v33 = vor.u32 %v9234_v23, %v7007_v25  ;;  %4393 = vmatpush.bf16.msrb.mxu0 %v6754_v30 }
 0x122   : > { %v7263_v27 = vld [vmem:[%s10274_s14 + $0x860] sm:$0xf0] }
 0x123   : > { %v9362_v28 = vld [vmem:[%s10274_s14 + $0xa44] sm:$0xf]  ;;  %v7266_v35 = vor.u32 %v9298_v26, %v7263_v27  ;;  %4406 = vmatpush.bf16.msrb.mxu1 %v7010_v33 }
 0x124   : > { %v7519_v29 = vld [vmem:[%s10274_s14 + $0xa60] sm:$0xf0] }
 0x125   : > { %v9162_v31 = vld [vmem:[%s10274_s14 + $0x404] sm:$0xf]  ;;  %v7522_v46 = vor.u32 %v9362_v28, %v7519_v29  ;;  %4419 = vmatpush.bf16.msrb.mxu2 %v7266_v35 }
 0x126   : > { %v6719_v32 = vld [vmem:[%s10274_s14 + $0x420] sm:$0xf0] }
 0x127   : > { %v9226_v38 = vld [vmem:[%s10274_s14 + $0x604] sm:$0xf]  ;;  %v6722_v53 = vor.u32 %v9162_v31, %v6719_v32  ;;  %4432 = vmatpush.bf16.msrb.mxu3 %v7522_v46 }
 0x128   : > { %v6975_v41 = vld [vmem:[%s10274_s14 + $0x620] sm:$0xf0] }
 0x129   : > { %v9290_v45 = vld [vmem:[%s10274_s14 + $0x804] sm:$0xf]  ;;  %v6978_v57 = vor.u32 %v9226_v38, %v6975_v41  ;;  %4394 = vmatpush.bf16.msrb.mxu0 %v6722_v53 }
 0x12a   : > { %v7231_v47 = vld [vmem:[%s10274_s14 + $0x820] sm:$0xf0] }
 0x12b   : > { %v9354_v48 = vld [vmem:[%s10274_s14 + $0xa04] sm:$0xf]  ;;  %v7234_v58 = vor.u32 %v9290_v45, %v7231_v47  ;;  %4407 = vmatpush.bf16.msrb.mxu1 %v6978_v57 }
 0x12c   : > { %v7487_v49 = vld [vmem:[%s10274_s14 + $0xa20] sm:$0xf0]  ;;  %4395 = vmatmul.bf16.vlgmr.msrb.gmra.mxu0 %v10405_v36 }
 0x12d   : > { %v9474_v50 = vld [vmem:[%s10274_s14 + $0xdc4] sm:$0xf]  ;;  %v7490_v61 = vor.u32 %v9354_v48, %v7487_v49  ;;  %4420 = vmatpush.bf16.msrb.mxu2 %v7234_v58 }
 0x12e   : > { %v7967_v51 = vld [vmem:[%s10274_s14 + $0xde0] sm:$0xf0]  ;;  %4408 = vmatmul.bf16.vlgmr.msrb.gmra.mxu1 %v10411_v43 }
 0x12f   : > { %v9538_v52 = vld [vmem:[%s10274_s14 + $0xfc4] sm:$0xf]  ;;  %v7970_v62 = vor.u32 %v9474_v50, %v7967_v51  ;;  %4433 = vmatpush.bf16.msrb.mxu3 %v7490_v61 }
 0x130   : > { %v8223_v54 = vld [vmem:[%s10274_s14 + $0xfe0] sm:$0xf0]  ;;  %4421 = vmatmul.bf16.vlgmr.msrb.gmra.mxu2 %v10455_v39 }
 0x131   : > { %v9602_v55 = vld [vmem:[%s10274_s14 + $0x11c4] sm:$0xf]  ;;  %v8226_v63 = vor.u32 %v9538_v52, %v8223_v54  ;;  %4439 = vmatpush.bf16.msra.mxu0 %v7970_v62 }
 0x132   : > { %v8479_v56 = vld [vmem:[%s10274_s14 + $0x11e0] sm:$0xf0]  ;;  %4434 = vmatmul.bf16.vlgmr.msrb.gmra.mxu3 %v10459_v42 }
 0x133   : > { %v9666_v59 = vld [vmem:[%s10274_s14 + $0x13c4] sm:$0xf]  ;;  %v8482_v0 = vor.u32 %v9602_v55, %v8479_v56  ;;  %4452 = vmatpush.bf16.msra.mxu1 %v8226_v63 }
 0x134   : > { %v8735_v60 = vld [vmem:[%s10274_s14 + $0x13e0] sm:$0xf0] }
 0x135   : > { %v9466_v1 = vld [vmem:[%s10274_s14 + $0xd84] sm:$0xf]  ;;  %v8738_v4 = vor.u32 %v9666_v59, %v8735_v60  ;;  %4465 = vmatpush.bf16.msra.mxu2 %v8482_v0 }
 0x136   : > { %v7935_v2 = vld [vmem:[%s10274_s14 + $0xda0] sm:$0xf0] }
 0x137   : > { %v9530_v3 = vld [vmem:[%s10274_s14 + $0xf84] sm:$0xf]  ;;  %v7938_v10 = vor.u32 %v9466_v1, %v7935_v2  ;;  %4478 = vmatpush.bf16.msra.mxu3 %v8738_v4 }
 0x138   : > { %v8191_v5 = vld [vmem:[%s10274_s14 + $0xfa0] sm:$0xf0] }
 0x139   : > { %v9594_v6 = vld [vmem:[%s10274_s14 + $0x1184] sm:$0xf]  ;;  %v8194_v11 = vor.u32 %v9530_v3, %v8191_v5  ;;  %4440 = vmatpush.bf16.msra.mxu0 %v7938_v10 }
 0x13a   : > { %v8447_v7 = vld [vmem:[%s10274_s14 + $0x11a0] sm:$0xf0] }
 0x13b   : > { %v9658_v8 = vld [vmem:[%s10274_s14 + $0x1384] sm:$0xf]  ;;  %v8450_v12 = vor.u32 %v9594_v6, %v8447_v7  ;;  %4453 = vmatpush.bf16.msra.mxu1 %v8194_v11 }
 0x13c   : > { %v8703_v9 = vld [vmem:[%s10274_s14 + $0x13a0] sm:$0xf0] }
 0x13d   : > { %v9458_v13 = vld [vmem:[%s10274_s14 + $0xd44] sm:$0xf]  ;;  %v8706_v16 = vor.u32 %v9658_v8, %v8703_v9  ;;  %4466 = vmatpush.bf16.msra.mxu2 %v8450_v12 }
 0x13e   : > { %v7903_v14 = vld [vmem:[%s10274_s14 + $0xd60] sm:$0xf0] }
 0x13f   : > { %v9522_v15 = vld [vmem:[%s10274_s14 + $0xf44] sm:$0xf]  ;;  %v7906_v24 = vor.u32 %v9458_v13, %v7903_v14  ;;  %4479 = vmatpush.bf16.msra.mxu3 %v8706_v16 }
 0x140   : > { %v8159_v18 = vld [vmem:[%s10274_s14 + $0xf60] sm:$0xf0] }
 0x141   : > { %v9586_v19 = vld [vmem:[%s10274_s14 + $0x1144] sm:$0xf]  ;;  %v8162_v25 = vor.u32 %v9522_v15, %v8159_v18  ;;  %4441 = vmatpush.bf16.msra.mxu0 %v7906_v24 }
 0x142   : > { %v8415_v20 = vld [vmem:[%s10274_s14 + $0x1160] sm:$0xf0] }
 0x143   : > { %v9650_v22 = vld [vmem:[%s10274_s14 + $0x1344] sm:$0xf]  ;;  %v8418_v26 = vor.u32 %v9586_v19, %v8415_v20  ;;  %4454 = vmatpush.bf16.msra.mxu1 %v8162_v25 }
 0x144   : > { %v8671_v23 = vld [vmem:[%s10274_s14 + $0x1360] sm:$0xf0] }
 0x145   : > { %v9450_v27 = vld [vmem:[%s10274_s14 + $0xd04] sm:$0xf]  ;;  %v8674_v30 = vor.u32 %v9650_v22, %v8671_v23  ;;  %4467 = vmatpush.bf16.msra.mxu2 %v8418_v26 }
 0x146   : > { %v7871_v28 = vld [vmem:[%s10274_s14 + $0xd20] sm:$0xf0] }
 0x147   : > { %v9514_v29 = vld [vmem:[%s10274_s14 + $0xf04] sm:$0xf]  ;;  %v7874_v41 = vor.u32 %v9450_v27, %v7871_v28  ;;  %4480 = vmatpush.bf16.msra.mxu3 %v8674_v30  ;;  %v6437_v30 = vld [vmem:[%s10274_s14 + $0x1c8] sm:$0xf] }
 0x148   : > { %v8127_v31 = vld [vmem:[%s10274_s14 + $0xf20] sm:$0xf0] }
 0x149   : > { %v9578_v32 = vld [vmem:[%s10274_s14 + $0x1104] sm:$0xf]  ;;  %v8130_v45 = vor.u32 %v9514_v29, %v8127_v31  ;;  %4442 = vmatpush.bf16.msra.mxu0 %v7874_v41  ;;  %v9095_v31 = vld [vmem:[%s10274_s14 + $0x1e4] sm:$0xf0] }
 0x14a   : > { %v8383_v33 = vld [vmem:[%s10274_s14 + $0x1120] sm:$0xf0]  ;;  %v9223_v41 = vld [vmem:[%s10274_s14 + $0x5e4] sm:$0xf0] }
 0x14b   : > { %v9642_v35 = vld [vmem:[%s10274_s14 + $0x1304] sm:$0xf]  ;;  %v8386_v46 = vor.u32 %v9578_v32, %v8383_v33  ;;  %4455 = vmatpush.bf16.msra.mxu1 %v8130_v45  ;;  %v6693_v32 = vld [vmem:[%s10274_s14 + $0x3c8] sm:$0xf] }
 0x14c   : > { %v8639_v38 = vld [vmem:[%s10274_s14 + $0x1320] sm:$0xf0] }
 0x14d   : > { %v9442_v47 = vld [vmem:[%s10274_s14 + $0xcc4] sm:$0xf]  ;;  %v8642_v50 = vor.u32 %v9642_v35, %v8639_v38  ;;  %4468 = vmatpush.bf16.msra.mxu2 %v8386_v46  ;;  %v9159_v35 = vld [vmem:[%s10274_s14 + $0x3e4] sm:$0xf0] }
 0x14e   : > { %v7839_v48 = vld [vmem:[%s10274_s14 + $0xce0] sm:$0xf0]  ;;  %v6949_v38 = vld [vmem:[%s10274_s14 + $0x5c8] sm:$0xf] }
 0x14f   : > { %v9506_v49 = vld [vmem:[%s10274_s14 + $0xec4] sm:$0xf]  ;;  %v7842_v56 = vor.u32 %v9442_v47, %v7839_v48  ;;  %4481 = vmatpush.bf16.msra.mxu3 %v8642_v50  ;;  %v7205_v47 = vld [vmem:[%s10274_s14 + $0x7c8] sm:$0xf]  ;;  %v6438_v50 = vor.u32 %v9095_v31, %v6437_v30 }
 0x150   : > { %v8095_v51 = vld [vmem:[%s10274_s14 + $0xee0] sm:$0xf0]  ;;  %v9287_v48 = vld [vmem:[%s10274_s14 + $0x7e4] sm:$0xf0] }
 0x151   : > { %v9570_v52 = vld [vmem:[%s10274_s14 + $0x10c4] sm:$0xf]  ;;  %v8098_v57 = vor.u32 %v9506_v49, %v8095_v51  ;;  %4443 = vmatpush.bf16.msra.mxu0 %v7842_v56  ;;  %v6694_v51 = vor.u32 %v9159_v35, %v6693_v32  ;;  %v7206_v56 = vor.u32 %v9287_v48, %v7205_v47  ;;  %v9127_v31 = vld [vmem:[%s10274_s14 + $0x2e4] sm:$0xf0] }
 0x152   : > { %v8351_v53 = vld [vmem:[%s10274_s14 + $0x10e0] sm:$0xf0]  ;;  %v6821_v32 = vld [vmem:[%s10274_s14 + $0x4c8] sm:$0xf] }
 0x153   : > { %v9634_v54 = vld [vmem:[%s10274_s14 + $0x12c4] sm:$0xf]  ;;  %v8354_v58 = vor.u32 %v9570_v52, %v8351_v53  ;;  %4456 = vmatpush.bf16.msra.mxu1 %v8098_v57  ;;  %v6950_v52 = vor.u32 %v9223_v41, %v6949_v38  ;;  %v6405_v53 = vld [vmem:[%s10274_s14 + $0x188] sm:$0xf] }
 0x154   : > { %v8607_v55 = vld [vmem:[%s10274_s14 + $0x12e0] sm:$0xf0]  ;;  %v9151_v57 = vld [vmem:[%s10274_s14 + $0x3a4] sm:$0xf0] }
 0x155   : > { %v9434_v59 = vld [vmem:[%s10274_s14 + $0xc84] sm:$0xf]  ;;  %v8610_v62 = vor.u32 %v9634_v54, %v8607_v55  ;;  %4469 = vmatpush.bf16.msra.mxu2 %v8354_v58  ;;  %v9087_v54 = vld [vmem:[%s10274_s14 + $0x1a4] sm:$0xf0] }
 0x156   : > { %v7807_v60 = vld [vmem:[%s10274_s14 + $0xca0] sm:$0xf0]  ;;  %v6661_v55 = vld [vmem:[%s10274_s14 + $0x388] sm:$0xf] }
 0x157   : > { %v9498_v61 = vld [vmem:[%s10274_s14 + $0xe84] sm:$0xf]  ;;  %v7810_v4 = vor.u32 %v9434_v59, %v7807_v60  ;;  %4482 = vmatpush.bf16.msra.mxu3 %v8610_v62  ;;  %v6917_v58 = vld [vmem:[%s10274_s14 + $0x588] sm:$0xf]  ;;  %v6406_v62 = vor.u32 %v9087_v54, %v6405_v53 }
 0x158   : > { %v8063_v63 = vld [vmem:[%s10274_s14 + $0xea0] sm:$0xf0]  ;;  %v9215_v59 = vld [vmem:[%s10274_s14 + $0x5a4] sm:$0xf0] }
 0x159   : > { %v9562_v0 = vld [vmem:[%s10274_s14 + $0x1084] sm:$0xf]  ;;  %v8066_v5 = vor.u32 %v9498_v61, %v8063_v63  ;;  %4444 = vmatpush.bf16.msra.mxu0 %v7810_v4  ;;  %v7173_v60 = vld [vmem:[%s10274_s14 + $0x788] sm:$0xf]  ;;  %v6662_v63 = vor.u32 %v9151_v57, %v6661_v55 }
 0x15a   : > { %v8319_v1 = vld [vmem:[%s10274_s14 + $0x10a0] sm:$0xf0]  ;;  %v9279_v61 = vld [vmem:[%s10274_s14 + $0x7a4] sm:$0xf0] }
 0x15b   : > { %v9626_v2 = vld [vmem:[%s10274_s14 + $0x1284] sm:$0xf]  ;;  %v8322_v6 = vor.u32 %v9562_v0, %v8319_v1  ;;  %4457 = vmatpush.bf16.msra.mxu1 %v8066_v5  ;;  %v6918_v0 = vor.u32 %v9215_v59, %v6917_v58  ;;  %v6373_v1 = vld [vmem:[%s10274_s14 + $0x148] sm:$0xf]  ;;  %v7174_v4 = vor.u32 %v9279_v61, %v7173_v60 }
 0x15c   : > { %v8575_v3 = vld [vmem:[%s10274_s14 + $0x12a0] sm:$0xf0]  ;;  %v9143_v5 = vld [vmem:[%s10274_s14 + $0x364] sm:$0xf0] }
 0x15d   : > { %v9426_v7 = vld [vmem:[%s10274_s14 + $0xc44] sm:$0xf]  ;;  %v8578_v10 = vor.u32 %v9626_v2, %v8575_v3  ;;  %4470 = vmatpush.bf16.msra.mxu2 %v8322_v6  ;;  %v9079_v2 = vld [vmem:[%s10274_s14 + $0x164] sm:$0xf0] }
 0x15e   : > { %v7775_v8 = vld [vmem:[%s10274_s14 + $0xc60] sm:$0xf0]  ;;  %v6629_v3 = vld [vmem:[%s10274_s14 + $0x348] sm:$0xf] }
 0x15f   : > { %v9490_v9 = vld [vmem:[%s10274_s14 + $0xe44] sm:$0xf]  ;;  %v7778_v16 = vor.u32 %v9426_v7, %v7775_v8  ;;  %4483 = vmatpush.bf16.msra.mxu3 %v8578_v10  ;;  %v6885_v6 = vld [vmem:[%s10274_s14 + $0x548] sm:$0xf]  ;;  %v6374_v10 = vor.u32 %v9079_v2, %v6373_v1 }
 0x160   : > { %v8031_v11 = vld [vmem:[%s10274_s14 + $0xe60] sm:$0xf0]  ;;  %v9207_v7 = vld [vmem:[%s10274_s14 + $0x564] sm:$0xf0] }
 0x161   : > { %v9554_v12 = vld [vmem:[%s10274_s14 + $0x1044] sm:$0xf]  ;;  %v8034_v20 = vor.u32 %v9490_v9, %v8031_v11  ;;  %4445 = vmatpush.bf16.msra.mxu0 %v7778_v16  ;;  %v7141_v8 = vld [vmem:[%s10274_s14 + $0x748] sm:$0xf]  ;;  %v6630_v11 = vor.u32 %v9143_v5, %v6629_v3 }
 0x162   : > { %v8287_v13 = vld [vmem:[%s10274_s14 + $0x1060] sm:$0xf0]  ;;  %v9271_v9 = vld [vmem:[%s10274_s14 + $0x764] sm:$0xf0] }
 0x163   : > { %v9618_v14 = vld [vmem:[%s10274_s14 + $0x1244] sm:$0xf]  ;;  %v8290_v22 = vor.u32 %v9554_v12, %v8287_v13  ;;  %4458 = vmatpush.bf16.msra.mxu1 %v8034_v20  ;;  %v6886_v12 = vor.u32 %v9207_v7, %v6885_v6  ;;  %v6341_v13 = vld [vmem:[%s10274_s14 + $0x108] sm:$0xf]  ;;  %v7142_v16 = vor.u32 %v9271_v9, %v7141_v8  ;;  %v4240_v9 = vpop.f32.mrf.mxu0 }
 0x164   : > { %v8543_v15 = vld [vmem:[%s10274_s14 + $0x1260] sm:$0xf0]  ;;  %v9199_v20 = vld [vmem:[%s10274_s14 + $0x524] sm:$0xf0] }
 0x165   : > { %v9418_v18 = vld [vmem:[%s10274_s14 + $0xc04] sm:$0xf]  ;;  %v8546_v26 = vor.u32 %v9618_v14, %v8543_v15  ;;  %4471 = vmatpush.bf16.msra.mxu2 %v8290_v22  ;;  %v9071_v14 = vld [vmem:[%s10274_s14 + $0x124] sm:$0xf0] }
 0x166   : > { %v7743_v19 = vld [vmem:[%s10274_s14 + $0xc20] sm:$0xf0]  ;;  %v6597_v15 = vld [vmem:[%s10274_s14 + $0x308] sm:$0xf] }
 0x167   : > { %v9482_v23 = vld [vmem:[%s10274_s14 + $0xe04] sm:$0xf]  ;;  %v7746_v33 = vor.u32 %v9418_v18, %v7743_v19  ;;  %4484 = vmatpush.bf16.msra.mxu3 %v8546_v26  ;;  %v9135_v18 = vld [vmem:[%s10274_s14 + $0x324] sm:$0xf0] }
 0x168   : > { %v7999_v24 = vld [vmem:[%s10274_s14 + $0xe20] sm:$0xf0]  ;;  %v6853_v19 = vld [vmem:[%s10274_s14 + $0x508] sm:$0xf] }
 0x169   : > { %v9546_v25 = vld [vmem:[%s10274_s14 + $0x1004] sm:$0xf]  ;;  %v8002_v45 = vor.u32 %v9482_v23, %v7999_v24  ;;  %4446 = vmatpush.bf16.msra.mxu0 %v7746_v33  ;;  %v7109_v22 = vld [vmem:[%s10274_s14 + $0x708] sm:$0xf]  ;;  %v6342_v24 = vor.u32 %v9071_v14, %v6341_v13  ;;  %v6854_v26 = vor.u32 %v9199_v20, %v6853_v19 }
 0x16a   : > { %v8255_v27 = vld [vmem:[%s10274_s14 + $0x1020] sm:$0xf0]  ;;  %v9263_v23 = vld [vmem:[%s10274_s14 + $0x724] sm:$0xf0] }
 0x16b   : > { %v9610_v28 = vld [vmem:[%s10274_s14 + $0x1204] sm:$0xf]  ;;  %v8258_v46 = vor.u32 %v9546_v25, %v8255_v27  ;;  %4459 = vmatpush.bf16.msra.mxu1 %v8002_v45  ;;  %v6598_v25 = vor.u32 %v9135_v18, %v6597_v15  ;;  %v6309_v27 = vld [vmem:[%s10274_s14 + $0xc8] sm:$0xf]  ;;  %v7110_v30 = vor.u32 %v9263_v23, %v7109_v22 }
 0x16c   : > { %v8511_v29 = vld [vmem:[%s10274_s14 + $0x1220] sm:$0xf0]  ;;  %4447 = vmatmul.bf16.vlgmr.msra.gmra.mxu0 %v10451_v34  ;;  %v9191_v33 = vld [vmem:[%s10274_s14 + $0x4e4] sm:$0xf0] }
 0x16d   : > { %v8514_v49 = vor.u32 %v9610_v28, %v8511_v29  ;;  %4472 = vmatpush.bf16.msra.mxu2 %v8258_v46  ;;  %4491 = vmatpush.bf16.msrb.mxu0 %v6438_v50  ;;  %v9063_v28 = vld [vmem:[%s10274_s14 + $0xe4] sm:$0xf0]  ;;  %v6822_v47 = vor.u32 %v9191_v33, %v6821_v32 }
 0x16e   : > { %4460 = vmatmul.bf16.vlgmr.msra.gmra.mxu1 %v10457_v40  ;;  %v6565_v29 = vld [vmem:[%s10274_s14 + $0x2c8] sm:$0xf]  ;;  %v6310_v41 = vor.u32 %v9063_v28, %v6309_v27 }
 0x16f   : > { %4485 = vmatpush.bf16.msra.mxu3 %v8514_v49  ;;  %4504 = vmatpush.bf16.msrb.mxu1 %v6694_v51  ;;  %v7077_v35 = vld [vmem:[%s10274_s14 + $0x6c8] sm:$0xf]  ;;  %v6566_v46 = vor.u32 %v9127_v31, %v6565_v29 }
 0x170   : > { %4473 = vmatmul.bf16.vlgmr.msra.gmra.mxu2 %v10524_v17  ;;  %v9255_v38 = vld [vmem:[%s10274_s14 + $0x6e4] sm:$0xf0] }
 0x171   : > { %4517 = vmatpush.bf16.msrb.mxu2 %v6950_v52  ;;  %4492 = vmatpush.bf16.msrb.mxu0 %v6406_v62  ;;  %v6277_v45 = vld [vmem:[%s10274_s14 + $0x88] sm:$0xf]  ;;  %v7078_v51 = vor.u32 %v9255_v38, %v7077_v35 }
 0x172   : > { %4486 = vmatmul.bf16.vlgmr.msra.gmra.mxu3 %v10529_v21  ;;  %v9055_v48 = vld [vmem:[%s10274_s14 + $0xa4] sm:$0xf0] }
 0x173   : > { %4530 = vmatpush.bf16.msrb.mxu3 %v7206_v56  ;;  %4505 = vmatpush.bf16.msrb.mxu1 %v6662_v63  ;;  %v6533_v49 = vld [vmem:[%s10274_s14 + $0x288] sm:$0xf]  ;;  %v6278_v57 = vor.u32 %v9055_v48, %v6277_v45  ;;  %v4266_v45 = vpop.f32.mrf.mxu2 }
 0x174   : > { %v9119_v50 = vld [vmem:[%s10274_s14 + $0x2a4] sm:$0xf0] }
 0x175   : > { %4518 = vmatpush.bf16.msrb.mxu2 %v6918_v0  ;;  %4493 = vmatpush.bf16.msrb.mxu0 %v6374_v10  ;;  %v6789_v52 = vld [vmem:[%s10274_s14 + $0x488] sm:$0xf]  ;;  %v6534_v59 = vor.u32 %v9119_v50, %v6533_v49 }
 0x176   : > { %v9183_v53 = vld [vmem:[%s10274_s14 + $0x4a4] sm:$0xf0] }
 0x177   : > { %4531 = vmatpush.bf16.msrb.mxu3 %v7174_v4  ;;  %4506 = vmatpush.bf16.msrb.mxu1 %v6630_v11  ;;  %v10711_v54 = vld [vmem:[%s10708_s8] ss:$2 sm:$0xff]  ;;  %v6790_v60 = vor.u32 %v9183_v53, %v6789_v52  ;;  %v4279_v52 = vpop.f32.mrf.mxu3 }
 0x178   : > { %v7045_v55 = vld [vmem:[%s10274_s14 + $0x688] sm:$0xf]  ;;  %v1015_v63 = vperm.slane %v10711_v54, 0 }
 0x179   : > { %4519 = vmatpush.bf16.msrb.mxu2 %v6886_v12  ;;  %4494 = vmatpush.bf16.msrb.mxu0 %v6342_v24  ;;  %v9247_v56 = vld [vmem:[%s10274_s14 + $0x6a4] sm:$0xf0] }
 0x17a   : > { %v6245_v58 = vld [vmem:[%s10274_s14 + $0x48] sm:$0xf]  ;;  %v7046_v0 = vor.u32 %v9247_v56, %v7045_v55  ;;  %v4241_v15 = vadd.f32 %v4240_v9, %v1015_v63 }
 0x17b   : > { %4532 = vmatpush.bf16.msrb.mxu3 %v7142_v16  ;;  %4507 = vmatpush.bf16.msrb.mxu1 %v6598_v25  ;;  %v9047_v61 = vld [vmem:[%s10274_s14 + $0x64] sm:$0xf0]  ;;  %v4253_v25 = vpop.f32.mrf.mxu1 }
 0x17c   : > { %v6501_v62 = vld [vmem:[%s10274_s14 + $0x248] sm:$0xf]  ;;  %v6246_v6 = vor.u32 %v9047_v61, %v6245_v58  ;;  %v4242_v58 = vpop.f32.mrf.mxu0 }
 0x17d   : > { %4520 = vmatpush.bf16.msrb.mxu2 %v6854_v26  ;;  %4495 = vmatpush.bf16.msrb.mxu0 %v6310_v41  ;;  %v9111_v1 = vld [vmem:[%s10274_s14 + $0x264] sm:$0xf0] }
 0x17e   : > { %v6757_v2 = vld [vmem:[%s10274_s14 + $0x448] sm:$0xf]  ;;  %v6502_v10 = vor.u32 %v9111_v1, %v6501_v62 }
 0x17f   : > { %4533 = vmatpush.bf16.msrb.mxu3 %v7110_v30  ;;  %4508 = vmatpush.bf16.msrb.mxu1 %v6566_v46  ;;  %v9175_v3 = vld [vmem:[%s10274_s14 + $0x464] sm:$0xf0]  ;;  %v4254_v30 = vadd.f32 %v4253_v25, %v4241_v15 }
 0x180   : > { %v7013_v4 = vld [vmem:[%s10274_s14 + $0x648] sm:$0xf]  ;;  %v6758_v11 = vor.u32 %v9175_v3, %v6757_v2 }
 0x181   : > { %4521 = vmatpush.bf16.msrb.mxu2 %v6822_v47  ;;  %v9239_v5 = vld [vmem:[%s10274_s14 + $0x664] sm:$0xf0]  ;;  %4496 = vmatpush.bf16.msrb.mxu0 %v6278_v57 }
 0x182   : > { %v6213_v7 = vld [vmem:[%s10274_s14 + $0x8] sm:$0xf]  ;;  %v7014_v16 = vor.u32 %v9239_v5, %v7013_v4 }
 0x183   : > { %4534 = vmatpush.bf16.msrb.mxu3 %v7078_v51  ;;  %v9039_v8 = vld [vmem:[%s10274_s14 + $0x24] sm:$0xf0]  ;;  %4509 = vmatpush.bf16.msrb.mxu1 %v6534_v59  ;;  %v4267_v51 = vadd.f32 %v4266_v45, %v4254_v30  ;;  %v4255_v4 = vpop.f32.mrf.mxu1 }
 0x184   : > { %v6469_v12 = vld [vmem:[%s10274_s14 + $0x208] sm:$0xf]  ;;  %v6214_v26 = vor.u32 %v9039_v8, %v6213_v7 }
 0x185   : > { %4522 = vmatpush.bf16.msrb.mxu2 %v6790_v60  ;;  %v9103_v13 = vld [vmem:[%s10274_s14 + $0x224] sm:$0xf0]  ;;  %4497 = vmatpush.bf16.msrb.mxu0 %v6246_v6  ;;  %v4280_v61 = vadd.f32 %v4279_v52, %v4267_v51 }
 0x186   : > { %v6725_v14 = vld [vmem:[%s10274_s14 + $0x408] sm:$0xf]  ;;  %v6470_v31 = vor.u32 %v9103_v13, %v6469_v12  ;;  %v4268_v12 = vpop.f32.mrf.mxu2 }
 0x187   : > { %4535 = vmatpush.bf16.msrb.mxu3 %v7046_v0  ;;  %v9167_v18 = vld [vmem:[%s10274_s14 + $0x424] sm:$0xf0]  ;;  %4510 = vmatpush.bf16.msrb.mxu1 %v6502_v10 }
 0x188   : > { %v6981_v19 = vld [vmem:[%s10274_s14 + $0x608] sm:$0xf]  ;;  %v6726_v32 = vor.u32 %v9167_v18, %v6725_v14 }
 0x189   : > { %v9231_v20 = vld [vmem:[%s10274_s14 + $0x624] sm:$0xf0]  ;;  %4523 = vmatpush.bf16.msrb.mxu2 %v6758_v11  ;;  %4498 = vmatpush.bf16.msrb.mxu0 %v6214_v26 }
 0x18a   : > { %v7461_v22 = vld [vmem:[%s10274_s14 + $0x9c8] sm:$0xf]  ;;  %v6982_v38 = vor.u32 %v9231_v20, %v6981_v19  ;;  %v4281_v19 = vpop.f32.mrf.mxu3 }
 0x18b   : > { %v9351_v23 = vld [vmem:[%s10274_s14 + $0x9e4] sm:$0xf0]  ;;  %4536 = vmatpush.bf16.msrb.mxu3 %v7014_v16  ;;  %4511 = vmatpush.bf16.msrb.mxu1 %v6470_v31 }
 0x18c   : > { %v7717_v24 = vld [vmem:[%s10274_s14 + $0xbc8] sm:$0xf]  ;;  %v7462_v41 = vor.u32 %v9351_v23, %v7461_v22  ;;  %4499 = vmatmul.bf16.vlgmr.msrb.gmra.mxu0 %v10407_v37 }
 0x18d   : > { %v9415_v27 = vld [vmem:[%s10274_s14 + $0xbe4] sm:$0xf0]  ;;  %4524 = vmatpush.bf16.msrb.mxu2 %v6726_v32 }
 0x18e   : > { %v7973_v28 = vld [vmem:[%s10274_s14 + $0xdc8] sm:$0xf]  ;;  %v7718_v46 = vor.u32 %v9415_v27, %v7717_v24  ;;  %4543 = vmatpush.bf16.msra.mxu0 %v7462_v41  ;;  %4512 = vmatmul.bf16.vlgmr.msrb.gmra.mxu1 %v10413_v44  ;;  %v4318_v58 = vpop.f32.mrf.mxu2 }
 0x18f   : > { %v9479_v29 = vld [vmem:[%s10274_s14 + $0xde4] sm:$0xf0]  ;;  %4537 = vmatpush.bf16.msrb.mxu3 %v6982_v38  ;;  %v4305_v38 = vpop.f32.mrf.mxu1 }
 0x190   : > { %v8229_v33 = vld [vmem:[%s10274_s14 + $0xfc8] sm:$0xf]  ;;  %v7974_v47 = vor.u32 %v9479_v29, %v7973_v28  ;;  %4556 = vmatpush.bf16.msra.mxu1 %v7718_v46  ;;  %4525 = vmatmul.bf16.vlgmr.msrb.gmra.mxu2 %v10405_v36  ;;  %v4292_v28 = vpop.f32.mrf.mxu0 }
 0x191   : > { %v9543_v35 = vld [vmem:[%s10274_s14 + $0xfe4] sm:$0xf0] }
 0x192   : > { %v7429_v48 = vld [vmem:[%s10274_s14 + $0x988] sm:$0xf]  ;;  %v8230_v53 = vor.u32 %v9543_v35, %v8229_v33  ;;  %4569 = vmatpush.bf16.msra.mxu2 %v7974_v47  ;;  %4538 = vmatmul.bf16.vlgmr.msrb.gmra.mxu3 %v10411_v43  ;;  %v4293_v35 = vadd.f32 %v4292_v28, %v4280_v61 }
 0x193   : > { %v9343_v49 = vld [vmem:[%s10274_s14 + $0x9a4] sm:$0xf0] }
 0x194   : > { %v7685_v50 = vld [vmem:[%s10274_s14 + $0xb88] sm:$0xf]  ;;  %v7430_v62 = vor.u32 %v9343_v49, %v7429_v48  ;;  %4582 = vmatpush.bf16.msra.mxu3 %v8230_v53 }
 0x195   : > { %v9407_v55 = vld [vmem:[%s10274_s14 + $0xba4] sm:$0xf0] }
 0x196   : > { %v7941_v56 = vld [vmem:[%s10274_s14 + $0xd88] sm:$0xf]  ;;  %v7686_v63 = vor.u32 %v9407_v55, %v7685_v50  ;;  %4544 = vmatpush.bf16.msra.mxu0 %v7430_v62  ;;  %v4306_v50 = vadd.f32 %v4305_v38, %v4293_v35  ;;  %v4320_v28 = vpop.f32.mrf.mxu2 }
 0x197   : > { %v9471_v57 = vld [vmem:[%s10274_s14 + $0xda4] sm:$0xf0] }
 0x198   : > { %v8197_v59 = vld [vmem:[%s10274_s14 + $0xf88] sm:$0xf]  ;;  %v7942_v0 = vor.u32 %v9471_v57, %v7941_v56  ;;  %4557 = vmatpush.bf16.msra.mxu1 %v7686_v63  ;;  %v4319_v63 = vadd.f32 %v4318_v58, %v4306_v50 }
 0x199   : > { %v9535_v60 = vld [vmem:[%s10274_s14 + $0xfa4] sm:$0xf0] }
 0x19a   : > { %v7397_v1 = vld [vmem:[%s10274_s14 + $0x948] sm:$0xf]  ;;  %v8198_v5 = vor.u32 %v9535_v60, %v8197_v59  ;;  %4570 = vmatpush.bf16.msra.mxu2 %v7942_v0  ;;  %v4331_v0 = vpop.f32.mrf.mxu3 }
 0x19b   : > { %v9335_v2 = vld [vmem:[%s10274_s14 + $0x964] sm:$0xf0]  ;;  %v10784_v4 = vadd.f32 %v4331_v0, %v4319_v63  ;;  %v9083_v63 = vld [vmem:[%s10274_s14 + $0x18c] sm:$0xf] }
 0x19c   : > { %v7653_v3 = vld [vmem:[%s10274_s14 + $0xb48] sm:$0xf]  ;;  %v7398_v11 = vor.u32 %v9335_v2, %v7397_v1  ;;  %4583 = vmatpush.bf16.msra.mxu3 %v8198_v5  ;;  %v4294_v5 = vpop.f32.mrf.mxu0  ;;  %v6407_v0 = vld [vmem:[%s10274_s14 + $0x1a8] sm:$0xf0] }
 0x19d   : > { %v9399_v6 = vld [vmem:[%s10274_s14 + $0xb64] sm:$0xf0] }
 0x19e   : > { %v7909_v7 = vld [vmem:[%s10274_s14 + $0xd48] sm:$0xf]  ;;  %v7654_v13 = vor.u32 %v9399_v6, %v7653_v3  ;;  %4545 = vmatpush.bf16.msra.mxu0 %v7398_v11  ;;  %v4307_v11 = vpop.f32.mrf.mxu1 }
 0x19f   : > { %v9463_v8 = vld [vmem:[%s10274_s14 + $0xd64] sm:$0xf0] }
 0x1a0   : > { %v8165_v9 = vld [vmem:[%s10274_s14 + $0xf48] sm:$0xf]  ;;  %v7910_v14 = vor.u32 %v9463_v8, %v7909_v7  ;;  %4558 = vmatpush.bf16.msra.mxu1 %v7654_v13 }
 0x1a1   : > { %v9527_v10 = vld [vmem:[%s10274_s14 + $0xf64] sm:$0xf0] }
 0x1a2   : > { %v7365_v15 = vld [vmem:[%s10274_s14 + $0x908] sm:$0xf]  ;;  %v8166_v20 = vor.u32 %v9527_v10, %v8165_v9  ;;  %4571 = vmatpush.bf16.msra.mxu2 %v7910_v14 }
 0x1a3   : > { %v9327_v16 = vld [vmem:[%s10274_s14 + $0x924] sm:$0xf0] }
 0x1a4   : > { %v7621_v18 = vld [vmem:[%s10274_s14 + $0xb08] sm:$0xf]  ;;  %v7366_v27 = vor.u32 %v9327_v16, %v7365_v15  ;;  %4584 = vmatpush.bf16.msra.mxu3 %v8166_v20  ;;  %v4344_v28 = vpop.f32.mrf.mxu0 }
 0x1a5   : > { %v9391_v22 = vld [vmem:[%s10274_s14 + $0xb24] sm:$0xf0] }
 0x1a6   : > { %v7877_v23 = vld [vmem:[%s10274_s14 + $0xd08] sm:$0xf]  ;;  %v7622_v29 = vor.u32 %v9391_v22, %v7621_v18  ;;  %4546 = vmatpush.bf16.msra.mxu0 %v7366_v27 }
 0x1a7   : > { %v9455_v24 = vld [vmem:[%s10274_s14 + $0xd24] sm:$0xf0] }
 0x1a8   : > { %v8133_v25 = vld [vmem:[%s10274_s14 + $0xf08] sm:$0xf]  ;;  %v7878_v30 = vor.u32 %v9455_v24, %v7877_v23  ;;  %4559 = vmatpush.bf16.msra.mxu1 %v7622_v29 }
 0x1a9   : > { %v9519_v26 = vld [vmem:[%s10274_s14 + $0xf24] sm:$0xf0] }
 0x1aa   : > { %v7333_v31 = vld [vmem:[%s10274_s14 + $0x8c8] sm:$0xf]  ;;  %v8134_v41 = vor.u32 %v9519_v26, %v8133_v25  ;;  %4572 = vmatpush.bf16.msra.mxu2 %v7878_v30 }
 0x1ab   : > { %v9319_v32 = vld [vmem:[%s10274_s14 + $0x8e4] sm:$0xf0] }
 0x1ac   : > { %v7589_v33 = vld [vmem:[%s10274_s14 + $0xac8] sm:$0xf]  ;;  %v7334_v51 = vor.u32 %v9319_v32, %v7333_v31  ;;  %4585 = vmatpush.bf16.msra.mxu3 %v8134_v41 }
 0x1ad   : > { %v9383_v45 = vld [vmem:[%s10274_s14 + $0xae4] sm:$0xf0] }
 0x1ae   : > { %v7845_v46 = vld [vmem:[%s10274_s14 + $0xcc8] sm:$0xf]  ;;  %v7590_v52 = vor.u32 %v9383_v45, %v7589_v33  ;;  %4547 = vmatpush.bf16.msra.mxu0 %v7334_v51  ;;  %v4333_v33 = vpop.f32.mrf.mxu3  ;;  %v9155_v51 = vld [vmem:[%s10274_s14 + $0x3cc] sm:$0xf] }
 0x1af   : > { %v9447_v47 = vld [vmem:[%s10274_s14 + $0xce4] sm:$0xf0]  ;;  %v4357_v33 = vpop.f32.mrf.mxu1 }
 0x1b0   : > { %v8101_v48 = vld [vmem:[%s10274_s14 + $0xec8] sm:$0xf]  ;;  %v7846_v53 = vor.u32 %v9447_v47, %v7845_v46  ;;  %4560 = vmatpush.bf16.msra.mxu1 %v7590_v52  ;;  %v9091_v47 = vld [vmem:[%s10274_s14 + $0x1cc] sm:$0xf] }
 0x1b1   : > { %v9511_v49 = vld [vmem:[%s10274_s14 + $0xee4] sm:$0xf0]  ;;  %v6695_v52 = vld [vmem:[%s10274_s14 + $0x3e8] sm:$0xf0] }
 0x1b2   : > { %v7301_v55 = vld [vmem:[%s10274_s14 + $0x888] sm:$0xf]  ;;  %v8102_v59 = vor.u32 %v9511_v49, %v8101_v48  ;;  %4573 = vmatpush.bf16.msra.mxu2 %v7846_v53  ;;  %v6439_v48 = vld [vmem:[%s10274_s14 + $0x1e8] sm:$0xf0] }
 0x1b3   : > { %v9311_v56 = vld [vmem:[%s10274_s14 + $0x8a4] sm:$0xf0] }
 0x1b4   : > { %v7557_v57 = vld [vmem:[%s10274_s14 + $0xa88] sm:$0xf]  ;;  %v7302_v3 = vor.u32 %v9311_v56, %v7301_v55  ;;  %4586 = vmatpush.bf16.msra.mxu3 %v8102_v59 }
 0x1b5   : > { %v9375_v60 = vld [vmem:[%s10274_s14 + $0xaa4] sm:$0xf0] }
 0x1b6   : > { %v7813_v61 = vld [vmem:[%s10274_s14 + $0xc88] sm:$0xf]  ;;  %v7558_v6 = vor.u32 %v9375_v60, %v7557_v57  ;;  %4548 = vmatpush.bf16.msra.mxu0 %v7302_v3  ;;  %v6442_v57 = vor.u32 %v9091_v47, %v6439_v48 }
 0x1b7   : > { %v9439_v62 = vld [vmem:[%s10274_s14 + $0xca4] sm:$0xf0] }
 0x1b8   : > { %v8069_v1 = vld [vmem:[%s10274_s14 + $0xe88] sm:$0xf]  ;;  %v7814_v7 = vor.u32 %v9439_v62, %v7813_v61  ;;  %4561 = vmatpush.bf16.msra.mxu1 %v7558_v6  ;;  %v6698_v61 = vor.u32 %v9155_v51, %v6695_v52  ;;  %v6410_v6 = vor.u32 %v9083_v63, %v6407_v0  ;;  %v9123_v51 = vld [vmem:[%s10274_s14 + $0x2cc] sm:$0xf] }
 0x1b9   : > { %v9503_v2 = vld [vmem:[%s10274_s14 + $0xea4] sm:$0xf0]  ;;  %v6567_v52 = vld [vmem:[%s10274_s14 + $0x2e8] sm:$0xf0] }
 0x1ba   : > { %v7269_v8 = vld [vmem:[%s10274_s14 + $0x848] sm:$0xf]  ;;  %v8070_v12 = vor.u32 %v9503_v2, %v8069_v1  ;;  %4574 = vmatpush.bf16.msra.mxu2 %v7814_v7  ;;  %v9147_v1 = vld [vmem:[%s10274_s14 + $0x38c] sm:$0xf] }
 0x1bb   : > { %v9303_v9 = vld [vmem:[%s10274_s14 + $0x864] sm:$0xf0]  ;;  %v6663_v2 = vld [vmem:[%s10274_s14 + $0x3a8] sm:$0xf0] }
 0x1bc   : > { %v7525_v10 = vld [vmem:[%s10274_s14 + $0xa48] sm:$0xf]  ;;  %v7270_v19 = vor.u32 %v9303_v9, %v7269_v8  ;;  %4587 = vmatpush.bf16.msra.mxu3 %v8070_v12  ;;  %v9075_v12 = vld [vmem:[%s10274_s14 + $0x14c] sm:$0xf] }
 0x1bd   : > { %v9367_v13 = vld [vmem:[%s10274_s14 + $0xa64] sm:$0xf0]  ;;  %v9051_v63 = vld [vmem:[%s10274_s14 + $0x8c] sm:$0xf] }
 0x1be   : > { %v7781_v14 = vld [vmem:[%s10274_s14 + $0xc48] sm:$0xf]  ;;  %v7526_v23 = vor.u32 %v9367_v13, %v7525_v10  ;;  %4549 = vmatpush.bf16.msra.mxu0 %v7270_v19  ;;  %v6666_v10 = vor.u32 %v9147_v1, %v6663_v2  ;;  %v6375_v13 = vld [vmem:[%s10274_s14 + $0x168] sm:$0xf0] }
 0x1bf   : > { %v9431_v15 = vld [vmem:[%s10274_s14 + $0xc64] sm:$0xf0]  ;;  %v6378_v19 = vor.u32 %v9075_v12, %v6375_v13  ;;  %v6279_v0 = vld [vmem:[%s10274_s14 + $0xa8] sm:$0xf0] }
 0x1c0   : > { %v8037_v16 = vld [vmem:[%s10274_s14 + $0xe48] sm:$0xf]  ;;  %v7782_v24 = vor.u32 %v9431_v15, %v7781_v14  ;;  %4562 = vmatpush.bf16.msra.mxu1 %v7526_v23  ;;  %v9139_v14 = vld [vmem:[%s10274_s14 + $0x34c] sm:$0xf] }
 0x1c1   : > { %v9495_v18 = vld [vmem:[%s10274_s14 + $0xe64] sm:$0xf0]  ;;  %v6631_v15 = vld [vmem:[%s10274_s14 + $0x368] sm:$0xf0] }
 0x1c2   : > { %v7237_v20 = vld [vmem:[%s10274_s14 + $0x808] sm:$0xf]  ;;  %v8038_v29 = vor.u32 %v9495_v18, %v8037_v16  ;;  %4575 = vmatpush.bf16.msra.mxu2 %v7782_v24  ;;  %v6634_v24 = vor.u32 %v9139_v14, %v6631_v15  ;;  %v9115_v1 = vld [vmem:[%s10274_s14 + $0x28c] sm:$0xf] }
 0x1c3   : > { %v9295_v22 = vld [vmem:[%s10274_s14 + $0x824] sm:$0xf0]  ;;  %v6535_v2 = vld [vmem:[%s10274_s14 + $0x2a8] sm:$0xf0] }
 0x1c4   : > { %v7493_v25 = vld [vmem:[%s10274_s14 + $0xa08] sm:$0xf]  ;;  %v7238_v45 = vor.u32 %v9295_v22, %v7237_v20  ;;  %4588 = vmatpush.bf16.msra.mxu3 %v8038_v29  ;;  %v9131_v29 = vld [vmem:[%s10274_s14 + $0x30c] sm:$0xf]  ;;  %v6538_v15 = vor.u32 %v9115_v1, %v6535_v2 }
 0x1c5   : > { %v9359_v26 = vld [vmem:[%s10274_s14 + $0xa24] sm:$0xf0]  ;;  %v9339_v1 = vld [vmem:[%s10274_s14 + $0x98c] sm:$0xf] }
 0x1c6   : > { %v7749_v27 = vld [vmem:[%s10274_s14 + $0xc08] sm:$0xf]  ;;  %v7494_v49 = vor.u32 %v9359_v26, %v7493_v25  ;;  %4550 = vmatpush.bf16.msra.mxu0 %v7238_v45  ;;  %v9067_v26 = vld [vmem:[%s10274_s14 + $0x10c] sm:$0xf] }
 0x1c7   : > { %v9423_v30 = vld [vmem:[%s10274_s14 + $0xc24] sm:$0xf0]  ;;  %v7431_v2 = vld [vmem:[%s10274_s14 + $0x9a8] sm:$0xf0] }
 0x1c8   : > { %v8005_v31 = vld [vmem:[%s10274_s14 + $0xe08] sm:$0xf]  ;;  %v7750_v50 = vor.u32 %v9423_v30, %v7749_v27  ;;  %4563 = vmatpush.bf16.msra.mxu1 %v7494_v49  ;;  %v6343_v27 = vld [vmem:[%s10274_s14 + $0x128] sm:$0xf0] }
 0x1c9   : > { %v9487_v32 = vld [vmem:[%s10274_s14 + $0xe24] sm:$0xf0]  ;;  %4551 = vmatmul.bf16.vlgmr.msra.gmra.mxu0 %v10455_v39  ;;  %v6599_v30 = vld [vmem:[%s10274_s14 + $0x328] sm:$0xf0] }
 0x1ca   : > { %v8485_v35 = vld [vmem:[%s10274_s14 + $0x11c8] sm:$0xf]  ;;  %v8006_v53 = vor.u32 %v9487_v32, %v8005_v31  ;;  %4576 = vmatpush.bf16.msra.mxu2 %v7750_v50  ;;  %v4345_v31 = vadd.f32 %v4344_v28, %v10784_v4  ;;  %v6602_v47 = vor.u32 %v9131_v29, %v6599_v30  ;;  %v9059_v4 = vld [vmem:[%s10274_s14 + $0xcc] sm:$0xf] }
 0x1cb   : > { %v9607_v38 = vld [vmem:[%s10274_s14 + $0x11e4] sm:$0xf0]  ;;  %4564 = vmatmul.bf16.vlgmr.msra.gmra.mxu1 %v10459_v42  ;;  %v6311_v50 = vld [vmem:[%s10274_s14 + $0xe8] sm:$0xf0] }
 0x1cc   : > { %v8741_v41 = vld [vmem:[%s10274_s14 + $0x13c8] sm:$0xf]  ;;  %v8486_v55 = vor.u32 %v9607_v38, %v8485_v35  ;;  %4589 = vmatpush.bf16.msra.mxu3 %v8006_v53  ;;  %v6346_v38 = vor.u32 %v9067_v26, %v6343_v27  ;;  %v10842_v48 = vadd.f32 %v4357_v33, %v4345_v31  ;;  %v1016_v53 = vperm.slane %v10711_v54, 1  ;;  %v4370_v54 = vpop.f32.mrf.mxu2  ;;  %v9035_v30 = vld [vmem:[%s10274_s14 + $0xc] sm:$0xf] }
 0x1cd   : > { %v9671_v46 = vld [vmem:[%s10274_s14 + $0x13e4] sm:$0xf0]  ;;  %4577 = vmatmul.bf16.vlgmr.msra.gmra.mxu2 %v10451_v34  ;;  %v9099_v33 = vld [vmem:[%s10274_s14 + $0x20c] sm:$0xf] }
 0x1ce   : > { %v8742_v56 = vor.u32 %v9671_v46, %v8741_v41  ;;  %v8453_v58 = vld [vmem:[%s10274_s14 + $0x1188] sm:$0xf]  ;;  %4595 = vmatpush.bf16.msrb.mxu0 %v8486_v55  ;;  %4621 = vmatpush.bf16.msrb.mxu2 %v6442_v57  ;;  %v6314_v57 = vor.u32 %v9059_v4, %v6311_v50  ;;  %v7207_v4 = vld [vmem:[%s10274_s14 + $0x7e8] sm:$0xf0] }
 0x1cf   : > { %v9599_v59 = vld [vmem:[%s10274_s14 + $0x11a4] sm:$0xf0]  ;;  %4590 = vmatmul.bf16.vlgmr.msra.gmra.mxu3 %v10457_v40  ;;  %v9347_v50 = vld [vmem:[%s10274_s14 + $0x9cc] sm:$0xf] }
 0x1d0   : > { %v8709_v60 = vld [vmem:[%s10274_s14 + $0x1388] sm:$0xf]  ;;  %v8454_v3 = vor.u32 %v9599_v59, %v8453_v58  ;;  %4608 = vmatpush.bf16.msrb.mxu1 %v8742_v56  ;;  %4634 = vmatpush.bf16.msrb.mxu3 %v6698_v61  ;;  %v6570_v61 = vor.u32 %v9123_v51, %v6567_v52  ;;  %v7463_v51 = vld [vmem:[%s10274_s14 + $0x9e8] sm:$0xf0] }
 0x1d1   : > { %v9663_v62 = vld [vmem:[%s10274_s14 + $0x13a4] sm:$0xf0] }
 0x1d2   : > { %v8710_v5 = vor.u32 %v9663_v62, %v8709_v60  ;;  %v8421_v7 = vld [vmem:[%s10274_s14 + $0x1148] sm:$0xf]  ;;  %4596 = vmatpush.bf16.msrb.mxu0 %v8454_v3  ;;  %4622 = vmatpush.bf16.msrb.mxu2 %v6410_v6  ;;  %v4371_v3 = vadd.f32 %v4370_v54, %v1016_v53  ;;  %v4346_v6 = vpop.f32.mrf.mxu0  ;;  %v7175_v54 = vld [vmem:[%s10274_s14 + $0x7a8] sm:$0xf0] }
 0x1d3   : > { %v9591_v8 = vld [vmem:[%s10274_s14 + $0x1164] sm:$0xf0] }
 0x1d4   : > { %v8677_v9 = vld [vmem:[%s10274_s14 + $0x1348] sm:$0xf]  ;;  %v8422_v16 = vor.u32 %v9591_v8, %v8421_v7  ;;  %4609 = vmatpush.bf16.msrb.mxu1 %v8710_v5  ;;  %4635 = vmatpush.bf16.msrb.mxu3 %v6666_v10  ;;  %v4383_v5 = vpop.f32.mrf.mxu3  ;;  %v4359_v8 = vpop.f32.mrf.mxu1  ;;  %v6282_v10 = vor.u32 %v9051_v63, %v6279_v0  ;;  %v9275_v63 = vld [vmem:[%s10274_s14 + $0x78c] sm:$0xf] }
 0x1d5   : > { %v9655_v11 = vld [vmem:[%s10274_s14 + $0x1364] sm:$0xf0]  ;;  %v10861_v14 = vadd.f32 %v4383_v5, %v4371_v3  ;;  %v9403_v3 = vld [vmem:[%s10274_s14 + $0xb8c] sm:$0xf]  ;;  %v7434_v8 = vor.u32 %v9339_v1, %v7431_v2 }
 0x1d6   : > { %v8678_v18 = vor.u32 %v9655_v11, %v8677_v9  ;;  %v8389_v20 = vld [vmem:[%s10274_s14 + $0x1108] sm:$0xf]  ;;  %4597 = vmatpush.bf16.msrb.mxu0 %v8422_v16  ;;  %4623 = vmatpush.bf16.msrb.mxu2 %v6378_v19  ;;  %v6247_v19 = vld [vmem:[%s10274_s14 + $0x68] sm:$0xf0] }
 0x1d7   : > { %v9583_v22 = vld [vmem:[%s10274_s14 + $0x1124] sm:$0xf0]  ;;  %v7687_v5 = vld [vmem:[%s10274_s14 + $0xba8] sm:$0xf0] }
 0x1d8   : > { %v8645_v23 = vld [vmem:[%s10274_s14 + $0x1308] sm:$0xf]  ;;  %v8390_v32 = vor.u32 %v9583_v22, %v8389_v20  ;;  %4610 = vmatpush.bf16.msrb.mxu1 %v8678_v18  ;;  %4636 = vmatpush.bf16.msrb.mxu3 %v6634_v24  ;;  %v9043_v18 = vld [vmem:[%s10274_s14 + $0x4c] sm:$0xf] }
 0x1d9   : > { %v9647_v25 = vld [vmem:[%s10274_s14 + $0x1324] sm:$0xf0]  ;;  %v9107_v20 = vld [vmem:[%s10274_s14 + $0x24c] sm:$0xf]  ;;  %v6250_v27 = vor.u32 %v9043_v18, %v6247_v19 }
 0x1da   : > { %v8646_v35 = vor.u32 %v9647_v25, %v8645_v23  ;;  %v8357_v41 = vld [vmem:[%s10274_s14 + $0x10c8] sm:$0xf]  ;;  %4598 = vmatpush.bf16.msrb.mxu0 %v8390_v32  ;;  %4624 = vmatpush.bf16.msrb.mxu2 %v6346_v38  ;;  %v6503_v22 = vld [vmem:[%s10274_s14 + $0x268] sm:$0xf0]  ;;  %v4372_v38 = vpop.f32.mrf.mxu2 }
 0x1db   : > { %v9575_v45 = vld [vmem:[%s10274_s14 + $0x10e4] sm:$0xf0]  ;;  %v6506_v31 = vor.u32 %v9107_v20, %v6503_v22  ;;  %v6215_v32 = vld [vmem:[%s10274_s14 + $0x28] sm:$0xf0] }
 0x1dc   : > { %v8613_v46 = vld [vmem:[%s10274_s14 + $0x12c8] sm:$0xf]  ;;  %v8358_v55 = vor.u32 %v9575_v45, %v8357_v41  ;;  %4611 = vmatpush.bf16.msrb.mxu1 %v8646_v35  ;;  %4637 = vmatpush.bf16.msrb.mxu3 %v6602_v47  ;;  %v6471_v35 = vld [vmem:[%s10274_s14 + $0x228] sm:$0xf0]  ;;  %v4385_v47 = vpop.f32.mrf.mxu3  ;;  %v6218_v53 = vor.u32 %v9035_v30, %v6215_v32 }
 0x1dd   : > { %v9639_v49 = vld [vmem:[%s10274_s14 + $0x12e4] sm:$0xf0]  ;;  %v9219_v41 = vld [vmem:[%s10274_s14 + $0x5cc] sm:$0xf] }
 0x1de   : > { %v8614_v56 = vor.u32 %v9639_v49, %v8613_v46  ;;  %v8325_v58 = vld [vmem:[%s10274_s14 + $0x1088] sm:$0xf]  ;;  %4599 = vmatpush.bf16.msrb.mxu0 %v8358_v55  ;;  %4625 = vmatpush.bf16.msrb.mxu2 %v6314_v57  ;;  %v6951_v45 = vld [vmem:[%s10274_s14 + $0x5e8] sm:$0xf0]  ;;  %v6474_v57 = vor.u32 %v9099_v33, %v6471_v35  ;;  %v4396_v35 = vpop.f32.mrf.mxu0 }
 0x1df   : > { %v9567_v59 = vld [vmem:[%s10274_s14 + $0x10a4] sm:$0xf0]  ;;  %v9283_v46 = vld [vmem:[%s10274_s14 + $0x7cc] sm:$0xf] }
 0x1e0   : > { %v8581_v60 = vld [vmem:[%s10274_s14 + $0x1288] sm:$0xf]  ;;  %v8326_v7 = vor.u32 %v9567_v59, %v8325_v58  ;;  %4612 = vmatpush.bf16.msrb.mxu1 %v8614_v56  ;;  %4638 = vmatpush.bf16.msrb.mxu3 %v6570_v61  ;;  %v9411_v55 = vld [vmem:[%s10274_s14 + $0xbcc] sm:$0xf]  ;;  %v6954_v58 = vor.u32 %v9219_v41, %v6951_v45  ;;  %v7210_v59 = vor.u32 %v9283_v46, %v7207_v4  ;;  %v4409_v4 = vpop.f32.mrf.mxu1 }
 0x1e1   : > { %v9631_v62 = vld [vmem:[%s10274_s14 + $0x12a4] sm:$0xf0]  ;;  %v7719_v56 = vld [vmem:[%s10274_s14 + $0xbe8] sm:$0xf0] }
 0x1e2   : > { %v8582_v9 = vor.u32 %v9631_v62, %v8581_v60  ;;  %v8293_v11 = vld [vmem:[%s10274_s14 + $0x1048] sm:$0xf]  ;;  %4600 = vmatpush.bf16.msrb.mxu0 %v8326_v7  ;;  %4626 = vmatpush.bf16.msrb.mxu2 %v6282_v10  ;;  %v7466_v60 = vor.u32 %v9347_v50, %v7463_v51  ;;  %v9211_v61 = vld [vmem:[%s10274_s14 + $0x58c] sm:$0xf]  ;;  %v7722_v0 = vor.u32 %v9411_v55, %v7719_v56 }
 0x1e3   : > { %v9559_v12 = vld [vmem:[%s10274_s14 + $0x1064] sm:$0xf0]  ;;  %v6919_v62 = vld [vmem:[%s10274_s14 + $0x5a8] sm:$0xf0]  ;;  %v7178_v7 = vor.u32 %v9275_v63, %v7175_v54  ;;  %v4422_v63 = vpop.f32.mrf.mxu2 }
 0x1e4   : > { %v8549_v13 = vld [vmem:[%s10274_s14 + $0x1248] sm:$0xf]  ;;  %v8294_v23 = vor.u32 %v9559_v12, %v8293_v11  ;;  %4613 = vmatpush.bf16.msrb.mxu1 %v8582_v9  ;;  %4639 = vmatpush.bf16.msrb.mxu3 %v6538_v15  ;;  %v6922_v6 = vor.u32 %v9211_v61, %v6919_v62  ;;  %v9203_v9 = vld [vmem:[%s10274_s14 + $0x54c] sm:$0xf]  ;;  %v7690_v12 = vor.u32 %v9403_v3, %v7687_v5  ;;  %v4435_v5 = vpop.f32.mrf.mxu3 }
 0x1e5   : > { %v9623_v16 = vld [vmem:[%s10274_s14 + $0x1264] sm:$0xf0]  ;;  %v6887_v10 = vld [vmem:[%s10274_s14 + $0x568] sm:$0xf0] }
 0x1e6   : > { %v8261_v24 = vld [vmem:[%s10274_s14 + $0x1008] sm:$0xf]  ;;  %v8550_v26 = vor.u32 %v9623_v16, %v8549_v13  ;;  %4601 = vmatpush.bf16.msrb.mxu0 %v8294_v23  ;;  %4627 = vmatpush.bf16.msrb.mxu2 %v6250_v27  ;;  %v9267_v11 = vld [vmem:[%s10274_s14 + $0x74c] sm:$0xf]  ;;  %v6890_v20 = vor.u32 %v9203_v9, %v6887_v10  ;;  %v4398_v10 = vpop.f32.mrf.mxu0 }
 0x1e7   : > { %v9551_v25 = vld [vmem:[%s10274_s14 + $0x1024] sm:$0xf0]  ;;  %v7143_v13 = vld [vmem:[%s10274_s14 + $0x768] sm:$0xf0] }
 0x1e8   : > { %v8517_v28 = vld [vmem:[%s10274_s14 + $0x1208] sm:$0xf]  ;;  %v8262_v49 = vor.u32 %v9551_v25, %v8261_v24  ;;  %4614 = vmatpush.bf16.msrb.mxu1 %v8550_v26  ;;  %4640 = vmatpush.bf16.msrb.mxu3 %v6506_v31  ;;  %v9331_v15 = vld [vmem:[%s10274_s14 + $0x94c] sm:$0xf]  ;;  %v7146_v22 = vor.u32 %v9267_v11, %v7143_v13 }
 0x1e9   : > { %v9615_v29 = vld [vmem:[%s10274_s14 + $0x1224] sm:$0xf0]  ;;  %v7399_v16 = vld [vmem:[%s10274_s14 + $0x968] sm:$0xf0] }
 0x1ea   : > { %v8518_v52 = vor.u32 %v9615_v29, %v8517_v28  ;;  %4602 = vmatpush.bf16.msrb.mxu0 %v8262_v49  ;;  %4628 = vmatpush.bf16.msrb.mxu2 %v6218_v53  ;;  %v9395_v18 = vld [vmem:[%s10274_s14 + $0xb4c] sm:$0xf]  ;;  %v7402_v23 = vor.u32 %v9331_v15, %v7399_v16  ;;  %v4397_v49 = vadd.f32 %v4396_v35, %v10861_v14 }
 0x1eb   : > { %v7655_v19 = vld [vmem:[%s10274_s14 + $0xb68] sm:$0xf0]  ;;  %v4424_v35 = vpop.f32.mrf.mxu2 }
 0x1ec   : > { %4615 = vmatpush.bf16.msrb.mxu1 %v8518_v52  ;;  %4641 = vmatpush.bf16.msrb.mxu3 %v6474_v57  ;;  %v9195_v24 = vld [vmem:[%s10274_s14 + $0x50c] sm:$0xf]  ;;  %v7658_v27 = vor.u32 %v9395_v18, %v7655_v19  ;;  %v4410_v57 = vadd.f32 %v4409_v4, %v4397_v49  ;;  %v4411_v18 = vpop.f32.mrf.mxu1 }
 0x1ed   : > { %4603 = vmatmul.bf16.vlgmr.msrb.gmra.mxu0 %v10524_v17  ;;  %4629 = vmatmul.bf16.vlgmr.msrb.gmra.mxu2 %v10407_v37  ;;  %v6855_v25 = vld [vmem:[%s10274_s14 + $0x528] sm:$0xf0] }
 0x1ee   : > { %4647 = vmatpush.bf16.msra.mxu0 %v6954_v58  ;;  %4673 = vmatpush.bf16.msra.mxu2 %v7466_v60  ;;  %v9259_v26 = vld [vmem:[%s10274_s14 + $0x70c] sm:$0xf]  ;;  %v6858_v33 = vor.u32 %v9195_v24, %v6855_v25  ;;  %v4423_v3 = vadd.f32 %v4422_v63, %v4410_v57  ;;  %v4448_v35 = vpop.f32.mrf.mxu0 }
 0x1ef   : > { %4616 = vmatmul.bf16.vlgmr.msrb.gmra.mxu1 %v10529_v21  ;;  %4642 = vmatmul.bf16.vlgmr.msrb.gmra.mxu3 %v10413_v44  ;;  %v7111_v28 = vld [vmem:[%s10274_s14 + $0x728] sm:$0xf0] }
 0x1f0   : > { %4660 = vmatpush.bf16.msra.mxu1 %v7210_v59  ;;  %4686 = vmatpush.bf16.msra.mxu3 %v7722_v0  ;;  %v9323_v29 = vld [vmem:[%s10274_s14 + $0x90c] sm:$0xf]  ;;  %v7114_v38 = vor.u32 %v9259_v26, %v7111_v28  ;;  %v10929_v9 = vadd.f32 %v4435_v5, %v4423_v3 }
 0x1f1   : > { %v7367_v30 = vld [vmem:[%s10274_s14 + $0x928] sm:$0xf0] }
 0x1f2   : > { %4648 = vmatpush.bf16.msra.mxu0 %v6922_v6  ;;  %4674 = vmatpush.bf16.msra.mxu2 %v7434_v8  ;;  %v9387_v31 = vld [vmem:[%s10274_s14 + $0xb0c] sm:$0xf]  ;;  %v7370_v41 = vor.u32 %v9323_v29, %v7367_v30 }
 0x1f3   : > { %v7623_v32 = vld [vmem:[%s10274_s14 + $0xb28] sm:$0xf0] }
 0x1f4   : > { %4661 = vmatpush.bf16.msra.mxu1 %v7178_v7  ;;  %4687 = vmatpush.bf16.msra.mxu3 %v7690_v12  ;;  %v9187_v45 = vld [vmem:[%s10274_s14 + $0x4cc] sm:$0xf]  ;;  %v7626_v50 = vor.u32 %v9387_v31, %v7623_v32 }
 0x1f5   : > { %v6823_v46 = vld [vmem:[%s10274_s14 + $0x4e8] sm:$0xf0] }
 0x1f6   : > { %4649 = vmatpush.bf16.msra.mxu0 %v6890_v20  ;;  %4675 = vmatpush.bf16.msra.mxu2 %v7402_v23  ;;  %v9251_v47 = vld [vmem:[%s10274_s14 + $0x6cc] sm:$0xf]  ;;  %v6826_v58 = vor.u32 %v9187_v45, %v6823_v46 }
 0x1f7   : > { %v7079_v51 = vld [vmem:[%s10274_s14 + $0x6e8] sm:$0xf0] }
 0x1f8   : > { %4662 = vmatpush.bf16.msra.mxu1 %v7146_v22  ;;  %4688 = vmatpush.bf16.msra.mxu3 %v7658_v27  ;;  %v9315_v52 = vld [vmem:[%s10274_s14 + $0x8cc] sm:$0xf]  ;;  %v7082_v14 = vor.u32 %v9251_v47, %v7079_v51  ;;  %v4437_v47 = vpop.f32.mrf.mxu3 }
 0x1f9   : > { %v7335_v53 = vld [vmem:[%s10274_s14 + $0x8e8] sm:$0xf0]  ;;  %v4461_v47 = vpop.f32.mrf.mxu1 }
 0x1fa   : > { %v9379_v55 = vld [vmem:[%s10274_s14 + $0xacc] sm:$0xf]  ;;  %4650 = vmatpush.bf16.msra.mxu0 %v6858_v33  ;;  %4676 = vmatpush.bf16.msra.mxu2 %v7370_v41  ;;  %v7338_v59 = vor.u32 %v9315_v52, %v7335_v53 }
 0x1fb   : > { %v7591_v56 = vld [vmem:[%s10274_s14 + $0xae8] sm:$0xf0] }
 0x1fc   : > { %4663 = vmatpush.bf16.msra.mxu1 %v7114_v38  ;;  %v9179_v60 = vld [vmem:[%s10274_s14 + $0x48c] sm:$0xf]  ;;  %4689 = vmatpush.bf16.msra.mxu3 %v7626_v50  ;;  %v7594_v0 = vor.u32 %v9379_v55, %v7591_v56 }
 0x1fd   : > { %v6791_v61 = vld [vmem:[%s10274_s14 + $0x4a8] sm:$0xf0] }
 0x1fe   : > { %v9243_v62 = vld [vmem:[%s10274_s14 + $0x68c] sm:$0xf]  ;;  %4651 = vmatpush.bf16.msra.mxu0 %v6826_v58  ;;  %v6794_v8 = vor.u32 %v9179_v60, %v6791_v61  ;;  %4677 = vmatpush.bf16.msra.mxu2 %v7338_v59 }
 0x1ff   : > { %v7047_v54 = vld [vmem:[%s10274_s14 + $0x6a8] sm:$0xf0] }
 0x200   : > { %v9307_v1 = vld [vmem:[%s10274_s14 + $0x88c] sm:$0xf]  ;;  %4664 = vmatpush.bf16.msra.mxu1 %v7082_v14  ;;  %v7050_v11 = vor.u32 %v9243_v62, %v7047_v54  ;;  %4690 = vmatpush.bf16.msra.mxu3 %v7594_v0 }
 0x201   : > { %v7303_v2 = vld [vmem:[%s10274_s14 + $0x8a8] sm:$0xf0] }
 0x202   : > { %v9371_v6 = vld [vmem:[%s10274_s14 + $0xa8c] sm:$0xf]  ;;  %v7306_v12 = vor.u32 %v9307_v1, %v7303_v2  ;;  %4652 = vmatpush.bf16.msra.mxu0 %v6794_v8 }
 0x203   : > { %v7559_v7 = vld [vmem:[%s10274_s14 + $0xaa8] sm:$0xf0] }
 0x204   : > { %v9171_v13 = vld [vmem:[%s10274_s14 + $0x44c] sm:$0xf]  ;;  %v7562_v19 = vor.u32 %v9371_v6, %v7559_v7  ;;  %4665 = vmatpush.bf16.msra.mxu1 %v7050_v11  ;;  %4678 = vmatpush.bf16.msra.mxu2 %v7306_v12 }
 0x205   : > { %v6759_v15 = vld [vmem:[%s10274_s14 + $0x468] sm:$0xf0] }
 0x206   : > { %v9235_v16 = vld [vmem:[%s10274_s14 + $0x64c] sm:$0xf]  ;;  %v6762_v26 = vor.u32 %v9171_v13, %v6759_v15  ;;  %4691 = vmatpush.bf16.msra.mxu3 %v7562_v19 }
 0x207   : > { %v7015_v20 = vld [vmem:[%s10274_s14 + $0x668] sm:$0xf0] }
 0x208   : > { %v9299_v22 = vld [vmem:[%s10274_s14 + $0x84c] sm:$0xf]  ;;  %v7018_v29 = vor.u32 %v9235_v16, %v7015_v20  ;;  %4653 = vmatpush.bf16.msra.mxu0 %v6762_v26 }
 0x209   : > { %v7271_v23 = vld [vmem:[%s10274_s14 + $0x868] sm:$0xf0] }
 0x20a   : > { %v9363_v24 = vld [vmem:[%s10274_s14 + $0xa4c] sm:$0xf]  ;;  %v7274_v30 = vor.u32 %v9299_v22, %v7271_v23  ;;  %4666 = vmatpush.bf16.msra.mxu1 %v7018_v29 }
 0x20b   : > { %v7527_v25 = vld [vmem:[%s10274_s14 + $0xa68] sm:$0xf0] }
 0x20c   : > { %v9163_v27 = vld [vmem:[%s10274_s14 + $0x40c] sm:$0xf]  ;;  %v7530_v38 = vor.u32 %v9363_v24, %v7527_v25  ;;  %4679 = vmatpush.bf16.msra.mxu2 %v7274_v30 }
 0x20d   : > { %v6727_v28 = vld [vmem:[%s10274_s14 + $0x428] sm:$0xf0] }
 0x20e   : > { %v9227_v31 = vld [vmem:[%s10274_s14 + $0x60c] sm:$0xf]  ;;  %v6730_v51 = vor.u32 %v9163_v27, %v6727_v28  ;;  %4692 = vmatpush.bf16.msra.mxu3 %v7530_v38 }
 0x20f   : > { %v6983_v32 = vld [vmem:[%s10274_s14 + $0x628] sm:$0xf0] }
 0x210   : > { %v9291_v33 = vld [vmem:[%s10274_s14 + $0x80c] sm:$0xf]  ;;  %v6986_v56 = vor.u32 %v9227_v31, %v6983_v32  ;;  %4654 = vmatpush.bf16.msra.mxu0 %v6730_v51 }
 0x211   : > { %v7239_v41 = vld [vmem:[%s10274_s14 + $0x828] sm:$0xf0] }
 0x212   : > { %v9355_v45 = vld [vmem:[%s10274_s14 + $0xa0c] sm:$0xf]  ;;  %v7242_v57 = vor.u32 %v9291_v33, %v7239_v41  ;;  %4667 = vmatpush.bf16.msra.mxu1 %v6986_v56 }
 0x213   : > { %v7495_v46 = vld [vmem:[%s10274_s14 + $0xa28] sm:$0xf0]  ;;  %4655 = vmatmul.bf16.vlgmr.msra.gmra.mxu0 %v10405_v36 }
 0x214   : > { %v9475_v49 = vld [vmem:[%s10274_s14 + $0xdcc] sm:$0xf]  ;;  %v7498_v59 = vor.u32 %v9355_v45, %v7495_v46  ;;  %4680 = vmatpush.bf16.msra.mxu2 %v7242_v57  ;;  %v4449_v45 = vadd.f32 %v4448_v35, %v10929_v9 }
 0x215   : > { %v7975_v4 = vld [vmem:[%s10274_s14 + $0xde8] sm:$0xf0]  ;;  %4668 = vmatmul.bf16.vlgmr.msra.gmra.mxu1 %v10411_v43 }
 0x216   : > { %v9539_v50 = vld [vmem:[%s10274_s14 + $0xfcc] sm:$0xf]  ;;  %v7978_v60 = vor.u32 %v9475_v49, %v7975_v4  ;;  %4693 = vmatpush.bf16.msra.mxu3 %v7498_v59 }
 0x217   : > { %v8231_v52 = vld [vmem:[%s10274_s14 + $0xfe8] sm:$0xf0]  ;;  %4681 = vmatmul.bf16.vlgmr.msra.gmra.mxu2 %v10455_v39 }
 0x218   : > { %v9603_v53 = vld [vmem:[%s10274_s14 + $0x11cc] sm:$0xf]  ;;  %v8234_v61 = vor.u32 %v9539_v50, %v8231_v52  ;;  %4699 = vmatpush.bf16.msrb.mxu0 %v7978_v60 }
 0x219   : > { %v8487_v55 = vld [vmem:[%s10274_s14 + $0x11e8] sm:$0xf0]  ;;  %4694 = vmatmul.bf16.vlgmr.msra.gmra.mxu3 %v10459_v42 }
 0x21a   : > { %v9667_v58 = vld [vmem:[%s10274_s14 + $0x13cc] sm:$0xf]  ;;  %v8490_v62 = vor.u32 %v9603_v53, %v8487_v55  ;;  %4712 = vmatpush.bf16.msrb.mxu1 %v8234_v61  ;;  %v4462_v55 = vadd.f32 %v4461_v47, %v4449_v45 }
 0x21b   : > { %v8743_v14 = vld [vmem:[%s10274_s14 + $0x13e8] sm:$0xf0] }
 0x21c   : > { %v9467_v63 = vld [vmem:[%s10274_s14 + $0xd8c] sm:$0xf]  ;;  %v8746_v1 = vor.u32 %v9667_v58, %v8743_v14  ;;  %4725 = vmatpush.bf16.msrb.mxu2 %v8490_v62 }
 0x21d   : > { %v7943_v0 = vld [vmem:[%s10274_s14 + $0xda8] sm:$0xf0] }
 0x21e   : > { %v9531_v54 = vld [vmem:[%s10274_s14 + $0xf8c] sm:$0xf]  ;;  %v7946_v8 = vor.u32 %v9467_v63, %v7943_v0  ;;  %4738 = vmatpush.bf16.msrb.mxu3 %v8746_v1  ;;  %v4474_v1 = vpop.f32.mrf.mxu2 }
 0x21f   : > { %v8199_v2 = vld [vmem:[%s10274_s14 + $0xfa8] sm:$0xf0] }
 0x220   : > { %v9595_v3 = vld [vmem:[%s10274_s14 + $0x118c] sm:$0xf]  ;;  %v8202_v10 = vor.u32 %v9531_v54, %v8199_v2  ;;  %4700 = vmatpush.bf16.msrb.mxu0 %v7946_v8 }
 0x221   : > { %v8455_v5 = vld [vmem:[%s10274_s14 + $0x11a8] sm:$0xf0] }
 0x222   : > { %v9659_v6 = vld [vmem:[%s10274_s14 + $0x138c] sm:$0xf]  ;;  %v8458_v11 = vor.u32 %v9595_v3, %v8455_v5  ;;  %4713 = vmatpush.bf16.msrb.mxu1 %v8202_v10 }
 0x223   : > { %v8711_v7 = vld [vmem:[%s10274_s14 + $0x13a8] sm:$0xf0] }
 0x224   : > { %v9459_v12 = vld [vmem:[%s10274_s14 + $0xd4c] sm:$0xf]  ;;  %v8714_v16 = vor.u32 %v9659_v6, %v8711_v7  ;;  %4726 = vmatpush.bf16.msrb.mxu2 %v8458_v11  ;;  %v4475_v6 = vadd.f32 %v4474_v1, %v4462_v55  ;;  %v4487_v7 = vpop.f32.mrf.mxu3  ;;  %v4450_v11 = vpop.f32.mrf.mxu0  ;;  %v9088_v1 = vld [vmem:[%s10274_s14 + $0x1ac] sm:$0xf0] }
 0x225   : > { %v7911_v13 = vld [vmem:[%s10274_s14 + $0xd68] sm:$0xf0] }
 0x226   : > { %v9523_v15 = vld [vmem:[%s10274_s14 + $0xf4c] sm:$0xf]  ;;  %v7914_v24 = vor.u32 %v9459_v12, %v7911_v13  ;;  %4739 = vmatpush.bf16.msrb.mxu3 %v8714_v16  ;;  %v4463_v13 = vpop.f32.mrf.mxu1 }
 0x227   : > { %v8167_v18 = vld [vmem:[%s10274_s14 + $0xf68] sm:$0xf0] }
 0x228   : > { %v9587_v19 = vld [vmem:[%s10274_s14 + $0x114c] sm:$0xf]  ;;  %v8170_v25 = vor.u32 %v9523_v15, %v8167_v18  ;;  %4701 = vmatpush.bf16.msrb.mxu0 %v7914_v24  ;;  %v11000_v15 = vadd.f32 %v4487_v7, %v4475_v6  ;;  %v6925_v6 = vld [vmem:[%s10274_s14 + $0x590] sm:$0xf] }
 0x229   : > { %v8423_v20 = vld [vmem:[%s10274_s14 + $0x1168] sm:$0xf0]  ;;  %v9216_v7 = vld [vmem:[%s10274_s14 + $0x5ac] sm:$0xf0] }
 0x22a   : > { %v9651_v22 = vld [vmem:[%s10274_s14 + $0x134c] sm:$0xf]  ;;  %v8426_v26 = vor.u32 %v9587_v19, %v8423_v20  ;;  %4714 = vmatpush.bf16.msrb.mxu1 %v8170_v25  ;;  %v6926_v13 = vor.u32 %v9216_v7, %v6925_v6 }
 0x22b   : > { %v8679_v23 = vld [vmem:[%s10274_s14 + $0x1368] sm:$0xf0] }
 0x22c   : > { %v9451_v27 = vld [vmem:[%s10274_s14 + $0xd0c] sm:$0xf]  ;;  %v8682_v30 = vor.u32 %v9651_v22, %v8679_v23  ;;  %4727 = vmatpush.bf16.msrb.mxu2 %v8426_v26 }
 0x22d   : > { %v7879_v28 = vld [vmem:[%s10274_s14 + $0xd28] sm:$0xf0] }
 0x22e   : > { %v9515_v29 = vld [vmem:[%s10274_s14 + $0xf0c] sm:$0xf]  ;;  %v7882_v46 = vor.u32 %v9451_v27, %v7879_v28  ;;  %4740 = vmatpush.bf16.msrb.mxu3 %v8682_v30 }
 0x22f   : > { %v8135_v31 = vld [vmem:[%s10274_s14 + $0xf28] sm:$0xf0] }
 0x230   : > { %v9579_v32 = vld [vmem:[%s10274_s14 + $0x110c] sm:$0xf]  ;;  %v8138_v49 = vor.u32 %v9515_v29, %v8135_v31  ;;  %4702 = vmatpush.bf16.msrb.mxu0 %v7882_v46 }
 0x231   : > { %v8391_v33 = vld [vmem:[%s10274_s14 + $0x1128] sm:$0xf0] }
 0x232   : > { %v9643_v38 = vld [vmem:[%s10274_s14 + $0x130c] sm:$0xf]  ;;  %v8394_v4 = vor.u32 %v9579_v32, %v8391_v33  ;;  %4715 = vmatpush.bf16.msrb.mxu1 %v8138_v49 }
 0x233   : > { %v8647_v41 = vld [vmem:[%s10274_s14 + $0x1328] sm:$0xf0] }
 0x234   : > { %v9443_v50 = vld [vmem:[%s10274_s14 + $0xccc] sm:$0xf]  ;;  %v8650_v53 = vor.u32 %v9643_v38, %v8647_v41  ;;  %4728 = vmatpush.bf16.msrb.mxu2 %v8394_v4  ;;  %v4476_v4 = vpop.f32.mrf.mxu2 }
 0x235   : > { %v7847_v51 = vld [vmem:[%s10274_s14 + $0xce8] sm:$0xf0] }
 0x236   : > { %v9507_v52 = vld [vmem:[%s10274_s14 + $0xecc] sm:$0xf]  ;;  %v7850_v59 = vor.u32 %v9443_v50, %v7847_v51  ;;  %4741 = vmatpush.bf16.msrb.mxu3 %v8650_v53  ;;  %v6445_v50 = vld [vmem:[%s10274_s14 + $0x1d0] sm:$0xf]  ;;  %v4489_v53 = vpop.f32.mrf.mxu3 }
 0x237   : > { %v8103_v56 = vld [vmem:[%s10274_s14 + $0xee8] sm:$0xf0]  ;;  %v9096_v51 = vld [vmem:[%s10274_s14 + $0x1ec] sm:$0xf0] }
 0x238   : > { %v9571_v57 = vld [vmem:[%s10274_s14 + $0x10cc] sm:$0xf]  ;;  %v8106_v60 = vor.u32 %v9507_v52, %v8103_v56  ;;  %4703 = vmatpush.bf16.msrb.mxu0 %v7850_v59  ;;  %v6701_v52 = vld [vmem:[%s10274_s14 + $0x3d0] sm:$0xf] }
 0x239   : > { %v8359_v9 = vld [vmem:[%s10274_s14 + $0x10e8] sm:$0xf0]  ;;  %v9160_v56 = vld [vmem:[%s10274_s14 + $0x3ec] sm:$0xf0] }
 0x23a   : > { %v9635_v58 = vld [vmem:[%s10274_s14 + $0x12cc] sm:$0xf]  ;;  %v8362_v61 = vor.u32 %v9571_v57, %v8359_v9  ;;  %4716 = vmatpush.bf16.msrb.mxu1 %v8106_v60  ;;  %v6957_v57 = vld [vmem:[%s10274_s14 + $0x5d0] sm:$0xf] }
 0x23b   : > { %v8615_v14 = vld [vmem:[%s10274_s14 + $0x12e8] sm:$0xf0]  ;;  %v9224_v9 = vld [vmem:[%s10274_s14 + $0x5ec] sm:$0xf0] }
 0x23c   : > { %v9435_v62 = vld [vmem:[%s10274_s14 + $0xc8c] sm:$0xf]  ;;  %v8618_v54 = vor.u32 %v9635_v58, %v8615_v14  ;;  %4729 = vmatpush.bf16.msrb.mxu2 %v8362_v61  ;;  %v7213_v59 = vld [vmem:[%s10274_s14 + $0x7d0] sm:$0xf]  ;;  %v4526_v6 = vpop.f32.mrf.mxu2 }
 0x23d   : > { %v7815_v63 = vld [vmem:[%s10274_s14 + $0xca8] sm:$0xf0]  ;;  %v9288_v60 = vld [vmem:[%s10274_s14 + $0x7ec] sm:$0xf0] }
 0x23e   : > { %v9499_v0 = vld [vmem:[%s10274_s14 + $0xe8c] sm:$0xf]  ;;  %v7818_v12 = vor.u32 %v9435_v62, %v7815_v63  ;;  %4742 = vmatpush.bf16.msrb.mxu3 %v8618_v54  ;;  %v6446_v62 = vor.u32 %v9096_v51, %v6445_v50  ;;  %v6702_v63 = vor.u32 %v9160_v56, %v6701_v52  ;;  %v6413_v54 = vld [vmem:[%s10274_s14 + $0x190] sm:$0xf]  ;;  %v4500_v50 = vpop.f32.mrf.mxu0 }
 0x23f   : > { %v8071_v2 = vld [vmem:[%s10274_s14 + $0xea8] sm:$0xf0]  ;;  %v6414_v11 = vor.u32 %v9088_v1, %v6413_v54  ;;  %v6317_v53 = vld [vmem:[%s10274_s14 + $0xd0] sm:$0xf] }
 0x240   : > { %v9563_v3 = vld [vmem:[%s10274_s14 + $0x108c] sm:$0xf]  ;;  %v8074_v16 = vor.u32 %v9499_v0, %v8071_v2  ;;  %4704 = vmatpush.bf16.msrb.mxu0 %v7818_v12  ;;  %v6958_v0 = vor.u32 %v9224_v9, %v6957_v57  ;;  %v6669_v2 = vld [vmem:[%s10274_s14 + $0x390] sm:$0xf]  ;;  %v4513_v9 = vpop.f32.mrf.mxu1 }
 0x241   : > { %v8327_v5 = vld [vmem:[%s10274_s14 + $0x10a8] sm:$0xf0]  ;;  %v6573_v56 = vld [vmem:[%s10274_s14 + $0x2d0] sm:$0xf] }
 0x242   : > { %v9627_v8 = vld [vmem:[%s10274_s14 + $0x128c] sm:$0xf]  ;;  %v8330_v18 = vor.u32 %v9563_v3, %v8327_v5  ;;  %4717 = vmatpush.bf16.msrb.mxu1 %v8074_v16  ;;  %v7214_v3 = vor.u32 %v9288_v60, %v7213_v59  ;;  %v9152_v5 = vld [vmem:[%s10274_s14 + $0x3ac] sm:$0xf0] }
 0x243   : > { %v8583_v10 = vld [vmem:[%s10274_s14 + $0x12a8] sm:$0xf0]  ;;  %v6670_v12 = vor.u32 %v9152_v5, %v6669_v2  ;;  %v6381_v16 = vld [vmem:[%s10274_s14 + $0x150] sm:$0xf] }
 0x244   : > { %v9427_v19 = vld [vmem:[%s10274_s14 + $0xc4c] sm:$0xf]  ;;  %v8586_v23 = vor.u32 %v9627_v8, %v8583_v10  ;;  %4730 = vmatpush.bf16.msrb.mxu2 %v8330_v18  ;;  %v7181_v8 = vld [vmem:[%s10274_s14 + $0x790] sm:$0xf] }
 0x245   : > { %v7783_v20 = vld [vmem:[%s10274_s14 + $0xc68] sm:$0xf0]  ;;  %v9280_v10 = vld [vmem:[%s10274_s14 + $0x7ac] sm:$0xf0] }
 0x246   : > { %v9491_v22 = vld [vmem:[%s10274_s14 + $0xe4c] sm:$0xf]  ;;  %v7786_v29 = vor.u32 %v9427_v19, %v7783_v20  ;;  %4743 = vmatpush.bf16.msrb.mxu3 %v8586_v23  ;;  %v9080_v18 = vld [vmem:[%s10274_s14 + $0x16c] sm:$0xf0]  ;;  %v7182_v20 = vor.u32 %v9280_v10, %v7181_v8 }
 0x247   : > { %v8039_v24 = vld [vmem:[%s10274_s14 + $0xe68] sm:$0xf0]  ;;  %v6637_v19 = vld [vmem:[%s10274_s14 + $0x350] sm:$0xf] }
 0x248   : > { %v9555_v25 = vld [vmem:[%s10274_s14 + $0x104c] sm:$0xf]  ;;  %v8042_v32 = vor.u32 %v9491_v22, %v8039_v24  ;;  %4705 = vmatpush.bf16.msrb.mxu0 %v7786_v29  ;;  %v9144_v22 = vld [vmem:[%s10274_s14 + $0x36c] sm:$0xf0] }
 0x249   : > { %v8295_v26 = vld [vmem:[%s10274_s14 + $0x1068] sm:$0xf0]  ;;  %v6893_v23 = vld [vmem:[%s10274_s14 + $0x550] sm:$0xf]  ;;  %v6638_v29 = vor.u32 %v9144_v22, %v6637_v19  ;;  %v4502_v22 = vpop.f32.mrf.mxu0 }
 0x24a   : > { %v9619_v27 = vld [vmem:[%s10274_s14 + $0x124c] sm:$0xf]  ;;  %v8298_v33 = vor.u32 %v9555_v25, %v8295_v26  ;;  %4718 = vmatpush.bf16.msrb.mxu1 %v8042_v32  ;;  %v9208_v24 = vld [vmem:[%s10274_s14 + $0x56c] sm:$0xf0] }
 0x24b   : > { %v8551_v28 = vld [vmem:[%s10274_s14 + $0x1268] sm:$0xf0]  ;;  %v7149_v25 = vld [vmem:[%s10274_s14 + $0x750] sm:$0xf] }
 0x24c   : > { %v9419_v30 = vld [vmem:[%s10274_s14 + $0xc0c] sm:$0xf]  ;;  %v8554_v45 = vor.u32 %v9619_v27, %v8551_v28  ;;  %4731 = vmatpush.bf16.msrb.mxu2 %v8298_v33  ;;  %v9272_v26 = vld [vmem:[%s10274_s14 + $0x76c] sm:$0xf0]  ;;  %v6382_v27 = vor.u32 %v9080_v18, %v6381_v16 }
 0x24d   : > { %v7751_v31 = vld [vmem:[%s10274_s14 + $0xc28] sm:$0xf0]  ;;  %v6349_v28 = vld [vmem:[%s10274_s14 + $0x110] sm:$0xf] }
 0x24e   : > { %v9483_v35 = vld [vmem:[%s10274_s14 + $0xe0c] sm:$0xf]  ;;  %v7754_v55 = vor.u32 %v9419_v30, %v7751_v31  ;;  %4744 = vmatpush.bf16.msrb.mxu3 %v8554_v45  ;;  %v6894_v30 = vor.u32 %v9208_v24, %v6893_v23  ;;  %v9072_v31 = vld [vmem:[%s10274_s14 + $0x12c] sm:$0xf0] }
 0x24f   : > { %v8007_v38 = vld [vmem:[%s10274_s14 + $0xe28] sm:$0xf0]  ;;  %v6605_v32 = vld [vmem:[%s10274_s14 + $0x310] sm:$0xf]  ;;  %v6350_v4 = vor.u32 %v9072_v31, %v6349_v28  ;;  %v4515_v28 = vpop.f32.mrf.mxu1 }
 0x250   : > { %v9547_v41 = vld [vmem:[%s10274_s14 + $0x100c] sm:$0xf]  ;;  %v8010_v58 = vor.u32 %v9483_v35, %v8007_v38  ;;  %4706 = vmatpush.bf16.msrb.mxu0 %v7754_v55  ;;  %v7150_v38 = vor.u32 %v9272_v26, %v7149_v25  ;;  %v6861_v45 = vld [vmem:[%s10274_s14 + $0x510] sm:$0xf] }
 0x251   : > { %v8263_v46 = vld [vmem:[%s10274_s14 + $0x1028] sm:$0xf0]  ;;  %v9064_v55 = vld [vmem:[%s10274_s14 + $0xec] sm:$0xf0] }
 0x252   : > { %v9611_v47 = vld [vmem:[%s10274_s14 + $0x120c] sm:$0xf]  ;;  %v8266_v14 = vor.u32 %v9547_v41, %v8263_v46  ;;  %4719 = vmatpush.bf16.msrb.mxu1 %v8010_v58  ;;  %v9136_v41 = vld [vmem:[%s10274_s14 + $0x32c] sm:$0xf0] }
 0x253   : > { %v8519_v49 = vld [vmem:[%s10274_s14 + $0x1228] sm:$0xf0]  ;;  %4707 = vmatmul.bf16.vlgmr.msrb.gmra.mxu0 %v10451_v34  ;;  %v9200_v46 = vld [vmem:[%s10274_s14 + $0x52c] sm:$0xf0]  ;;  %v6606_v51 = vor.u32 %v9136_v41, %v6605_v32 }
 0x254   : > { %v8522_v61 = vor.u32 %v9611_v47, %v8519_v49  ;;  %4732 = vmatpush.bf16.msrb.mxu2 %v8266_v14  ;;  %4751 = vmatpush.bf16.msra.mxu0 %v6446_v62  ;;  %v11050_v33 = vld [vmem:[%s10708_s8] ss:$2 sm:$0xff]  ;;  %v6862_v52 = vor.u32 %v9200_v46, %v6861_v45 }
 0x255   : > { %4720 = vmatmul.bf16.vlgmr.msrb.gmra.mxu1 %v10457_v40  ;;  %v1017_v35 = vperm.slane %v11050_v33, 2  ;;  %v7117_v47 = vld [vmem:[%s10274_s14 + $0x710] sm:$0xf] }
 0x256   : > { %4745 = vmatpush.bf16.msrb.mxu3 %v8522_v61  ;;  %4764 = vmatpush.bf16.msra.mxu1 %v6702_v63  ;;  %v9264_v49 = vld [vmem:[%s10274_s14 + $0x72c] sm:$0xf0] }
 0x257   : > { %4733 = vmatmul.bf16.vlgmr.msrb.gmra.mxu2 %v10524_v17  ;;  %v4501_v57 = vadd.f32 %v4500_v50, %v1017_v35  ;;  %v7118_v58 = vor.u32 %v9264_v49, %v7117_v47  ;;  %v9128_v14 = vld [vmem:[%s10274_s14 + $0x2ec] sm:$0xf0] }
 0x258   : > { %4777 = vmatpush.bf16.msra.mxu2 %v6958_v0  ;;  %4752 = vmatpush.bf16.msra.mxu0 %v6414_v11  ;;  %v6829_v59 = vld [vmem:[%s10274_s14 + $0x4d0] sm:$0xf]  ;;  %v6318_v0 = vor.u32 %v9064_v55, %v6317_v53  ;;  %v6574_v54 = vor.u32 %v9128_v14, %v6573_v56 }
 0x259   : > { %4746 = vmatmul.bf16.vlgmr.msrb.gmra.mxu3 %v10529_v21  ;;  %v9192_v60 = vld [vmem:[%s10274_s14 + $0x4ec] sm:$0xf0]  ;;  %v4514_v63 = vadd.f32 %v4513_v9, %v4501_v57 }
 0x25a   : > { %4790 = vmatpush.bf16.msra.mxu3 %v7214_v3  ;;  %4765 = vmatpush.bf16.msra.mxu1 %v6670_v12  ;;  %v7085_v61 = vld [vmem:[%s10274_s14 + $0x6d0] sm:$0xf]  ;;  %v6830_v1 = vor.u32 %v9192_v60, %v6829_v59 }
 0x25b   : > { %v9256_v62 = vld [vmem:[%s10274_s14 + $0x6ec] sm:$0xf0]  ;;  %v4527_v12 = vadd.f32 %v4526_v6, %v4514_v63 }
 0x25c   : > { %4778 = vmatpush.bf16.msra.mxu2 %v6926_v13  ;;  %4753 = vmatpush.bf16.msra.mxu0 %v6382_v27  ;;  %v6285_v2 = vld [vmem:[%s10274_s14 + $0x90] sm:$0xf]  ;;  %v7086_v7 = vor.u32 %v9256_v62, %v7085_v61  ;;  %v4539_v13 = vpop.f32.mrf.mxu3 }
 0x25d   : > { %v9056_v3 = vld [vmem:[%s10274_s14 + $0xac] sm:$0xf0] }
 0x25e   : > { %4791 = vmatpush.bf16.msra.mxu3 %v7182_v20  ;;  %4766 = vmatpush.bf16.msra.mxu1 %v6638_v29  ;;  %v6541_v5 = vld [vmem:[%s10274_s14 + $0x290] sm:$0xf]  ;;  %v6286_v19 = vor.u32 %v9056_v3, %v6285_v2  ;;  %v11074_v20 = vadd.f32 %v4539_v13, %v4527_v12 }
 0x25f   : > { %v9120_v8 = vld [vmem:[%s10274_s14 + $0x2ac] sm:$0xf0] }
 0x260   : > { %4779 = vmatpush.bf16.msra.mxu2 %v6894_v30  ;;  %4754 = vmatpush.bf16.msra.mxu0 %v6350_v4  ;;  %v6797_v10 = vld [vmem:[%s10274_s14 + $0x490] sm:$0xf]  ;;  %v6542_v23 = vor.u32 %v9120_v8, %v6541_v5 }
 0x261   : > { %v9184_v11 = vld [vmem:[%s10274_s14 + $0x4ac] sm:$0xf0] }
 0x262   : > { %4792 = vmatpush.bf16.msra.mxu3 %v7150_v38  ;;  %4767 = vmatpush.bf16.msra.mxu1 %v6606_v51  ;;  %v7053_v16 = vld [vmem:[%s10274_s14 + $0x690] sm:$0xf]  ;;  %v6798_v24 = vor.u32 %v9184_v11, %v6797_v10 }
 0x263   : > { %v9248_v18 = vld [vmem:[%s10274_s14 + $0x6ac] sm:$0xf0] }
 0x264   : > { %4780 = vmatpush.bf16.msra.mxu2 %v6862_v52  ;;  %4755 = vmatpush.bf16.msra.mxu0 %v6318_v0  ;;  %v6253_v25 = vld [vmem:[%s10274_s14 + $0x50] sm:$0xf]  ;;  %v7054_v29 = vor.u32 %v9248_v18, %v7053_v16  ;;  %v4528_v52 = vpop.f32.mrf.mxu2  ;;  %v4541_v9 = vpop.f32.mrf.mxu3 }
 0x265   : > { %v9048_v26 = vld [vmem:[%s10274_s14 + $0x6c] sm:$0xf0]  ;;  %v4552_v9 = vpop.f32.mrf.mxu0 }
 0x266   : > { %4793 = vmatpush.bf16.msra.mxu3 %v7118_v58  ;;  %4768 = vmatpush.bf16.msra.mxu1 %v6574_v54  ;;  %v6509_v27 = vld [vmem:[%s10274_s14 + $0x250] sm:$0xf]  ;;  %v6254_v41 = vor.u32 %v9048_v26, %v6253_v25 }
 0x267   : > { %v9112_v30 = vld [vmem:[%s10274_s14 + $0x26c] sm:$0xf0] }
 0x268   : > { %4781 = vmatpush.bf16.msra.mxu2 %v6830_v1  ;;  %v6765_v31 = vld [vmem:[%s10274_s14 + $0x450] sm:$0xf]  ;;  %4756 = vmatpush.bf16.msra.mxu0 %v6286_v19  ;;  %v6510_v47 = vor.u32 %v9112_v30, %v6509_v27 }
 0x269   : > { %v9176_v32 = vld [vmem:[%s10274_s14 + $0x46c] sm:$0xf0] }
 0x26a   : > { %4794 = vmatpush.bf16.msra.mxu3 %v7086_v7  ;;  %v7021_v35 = vld [vmem:[%s10274_s14 + $0x650] sm:$0xf]  ;;  %4769 = vmatpush.bf16.msra.mxu1 %v6542_v23  ;;  %v6766_v49 = vor.u32 %v9176_v32, %v6765_v31 }
 0x26b   : > { %v9240_v38 = vld [vmem:[%s10274_s14 + $0x66c] sm:$0xf0] }
 0x26c   : > { %v6221_v45 = vld [vmem:[%s10274_s14 + $0x10] sm:$0xf]  ;;  %4782 = vmatpush.bf16.msra.mxu2 %v6798_v24  ;;  %v7022_v53 = vor.u32 %v9240_v38, %v7021_v35  ;;  %4757 = vmatpush.bf16.msra.mxu0 %v6254_v41 }
 0x26d   : > { %v9040_v46 = vld [vmem:[%s10274_s14 + $0x2c] sm:$0xf0] }
 0x26e   : > { %v6477_v4 = vld [vmem:[%s10274_s14 + $0x210] sm:$0xf]  ;;  %4795 = vmatpush.bf16.msra.mxu3 %v7054_v29  ;;  %v6222_v60 = vor.u32 %v9040_v46, %v6221_v45  ;;  %4770 = vmatpush.bf16.msra.mxu1 %v6510_v47 }
 0x26f   : > { %v9104_v50 = vld [vmem:[%s10274_s14 + $0x22c] sm:$0xf0] }
 0x270   : > { %v6733_v51 = vld [vmem:[%s10274_s14 + $0x410] sm:$0xf]  ;;  %4783 = vmatpush.bf16.msra.mxu2 %v6766_v49  ;;  %v6478_v0 = vor.u32 %v9104_v50, %v6477_v4  ;;  %4758 = vmatpush.bf16.msra.mxu0 %v6222_v60 }
 0x271   : > { %v9168_v55 = vld [vmem:[%s10274_s14 + $0x42c] sm:$0xf0] }
 0x272   : > { %v6989_v56 = vld [vmem:[%s10274_s14 + $0x610] sm:$0xf]  ;;  %v6734_v54 = vor.u32 %v9168_v55, %v6733_v51  ;;  %4796 = vmatpush.bf16.msra.mxu3 %v7022_v53  ;;  %4771 = vmatpush.bf16.msra.mxu1 %v6478_v0 }
 0x273   : > { %v9232_v57 = vld [vmem:[%s10274_s14 + $0x62c] sm:$0xf0]  ;;  %4759 = vmatmul.bf16.vlgmr.msra.gmra.mxu0 %v10407_v37 }
 0x274   : > { %v7469_v58 = vld [vmem:[%s10274_s14 + $0x9d0] sm:$0xf]  ;;  %v6990_v3 = vor.u32 %v9232_v57, %v6989_v56  ;;  %4784 = vmatpush.bf16.msra.mxu2 %v6734_v54 }
 0x275   : > { %v9352_v14 = vld [vmem:[%s10274_s14 + $0x9ec] sm:$0xf0]  ;;  %4772 = vmatmul.bf16.vlgmr.msra.gmra.mxu1 %v10413_v44 }
 0x276   : > { %v7725_v59 = vld [vmem:[%s10274_s14 + $0xbd0] sm:$0xf]  ;;  %v7470_v5 = vor.u32 %v9352_v14, %v7469_v58  ;;  %4797 = vmatpush.bf16.msra.mxu3 %v6990_v3 }
 0x277   : > { %v9416_v61 = vld [vmem:[%s10274_s14 + $0xbec] sm:$0xf0]  ;;  %4785 = vmatmul.bf16.vlgmr.msra.gmra.mxu2 %v10405_v36 }
 0x278   : > { %v7981_v62 = vld [vmem:[%s10274_s14 + $0xdd0] sm:$0xf]  ;;  %v7726_v6 = vor.u32 %v9416_v61, %v7725_v59  ;;  %4803 = vmatpush.bf16.msrb.mxu0 %v7470_v5 }
 0x279   : > { %v9480_v63 = vld [vmem:[%s10274_s14 + $0xdec] sm:$0xf0]  ;;  %4798 = vmatmul.bf16.vlgmr.msra.gmra.mxu3 %v10411_v43 }
 0x27a   : > { %v8237_v1 = vld [vmem:[%s10274_s14 + $0xfd0] sm:$0xf]  ;;  %v7982_v7 = vor.u32 %v9480_v63, %v7981_v62  ;;  %4816 = vmatpush.bf16.msrb.mxu1 %v7726_v6  ;;  %v4553_v62 = vadd.f32 %v4552_v9, %v11074_v20  ;;  %v4565_v63 = vpop.f32.mrf.mxu1 }
 0x27b   : > { %v9544_v2 = vld [vmem:[%s10274_s14 + $0xfec] sm:$0xf0] }
 0x27c   : > { %v7437_v8 = vld [vmem:[%s10274_s14 + $0x990] sm:$0xf]  ;;  %v8238_v12 = vor.u32 %v9544_v2, %v8237_v1  ;;  %4829 = vmatpush.bf16.msrb.mxu2 %v7982_v7  ;;  %v4566_v6 = vadd.f32 %v4565_v63, %v4553_v62 }
 0x27d   : > { %v9344_v10 = vld [vmem:[%s10274_s14 + $0x9ac] sm:$0xf0] }
 0x27e   : > { %v7693_v11 = vld [vmem:[%s10274_s14 + $0xb90] sm:$0xf]  ;;  %v7438_v23 = vor.u32 %v9344_v10, %v7437_v8  ;;  %4842 = vmatpush.bf16.msrb.mxu3 %v8238_v12 }
 0x27f   : > { %v9408_v13 = vld [vmem:[%s10274_s14 + $0xbac] sm:$0xf0] }
 0x280   : > { %v7949_v16 = vld [vmem:[%s10274_s14 + $0xd90] sm:$0xf]  ;;  %v7694_v24 = vor.u32 %v9408_v13, %v7693_v11  ;;  %4804 = vmatpush.bf16.msrb.mxu0 %v7438_v23  ;;  %v4578_v13 = vpop.f32.mrf.mxu2 }
 0x281   : > { %v9472_v18 = vld [vmem:[%s10274_s14 + $0xdac] sm:$0xf0]  ;;  %v4579_v23 = vadd.f32 %v4578_v13, %v4566_v6  ;;  %v6447_v6 = vld [vmem:[%s10274_s14 + $0x1f0] sm:$0xf0] }
 0x282   : > { %v8205_v19 = vld [vmem:[%s10274_s14 + $0xf90] sm:$0xf]  ;;  %v7950_v25 = vor.u32 %v9472_v18, %v7949_v16  ;;  %4817 = vmatpush.bf16.msrb.mxu1 %v7694_v24  ;;  %v4591_v24 = vpop.f32.mrf.mxu3 }
 0x283   : > { %v9536_v22 = vld [vmem:[%s10274_s14 + $0xfac] sm:$0xf0] }
 0x284   : > { %v7405_v26 = vld [vmem:[%s10274_s14 + $0x950] sm:$0xf]  ;;  %v8206_v29 = vor.u32 %v9536_v22, %v8205_v19  ;;  %4830 = vmatpush.bf16.msrb.mxu2 %v7950_v25 }
 0x285   : > { %v9336_v27 = vld [vmem:[%s10274_s14 + $0x96c] sm:$0xf0] }
 0x286   : > { %v7661_v28 = vld [vmem:[%s10274_s14 + $0xb50] sm:$0xf]  ;;  %v7406_v41 = vor.u32 %v9336_v27, %v7405_v26  ;;  %4843 = vmatpush.bf16.msrb.mxu3 %v8206_v29  ;;  %v4554_v29 = vpop.f32.mrf.mxu0 }
 0x287   : > { %v9400_v30 = vld [vmem:[%s10274_s14 + $0xb6c] sm:$0xf0]  ;;  %v6671_v29 = vld [vmem:[%s10274_s14 + $0x3b0] sm:$0xf0] }
 0x288   : > { %v7917_v31 = vld [vmem:[%s10274_s14 + $0xd50] sm:$0xf]  ;;  %v7662_v45 = vor.u32 %v9400_v30, %v7661_v28  ;;  %4805 = vmatpush.bf16.msrb.mxu0 %v7406_v41  ;;  %v11145_v28 = vadd.f32 %v4591_v24, %v4579_v23  ;;  %v4567_v41 = vpop.f32.mrf.mxu1 }
 0x289   : > { %v9464_v32 = vld [vmem:[%s10274_s14 + $0xd6c] sm:$0xf0] }
 0x28a   : > { %v8173_v35 = vld [vmem:[%s10274_s14 + $0xf50] sm:$0xf]  ;;  %v7918_v46 = vor.u32 %v9464_v32, %v7917_v31  ;;  %4818 = vmatpush.bf16.msrb.mxu1 %v7662_v45  ;;  %v4593_v63 = vpop.f32.mrf.mxu3 }
 0x28b   : > { %v9528_v38 = vld [vmem:[%s10274_s14 + $0xf6c] sm:$0xf0] }
 0x28c   : > { %v7373_v47 = vld [vmem:[%s10274_s14 + $0x910] sm:$0xf]  ;;  %v8174_v50 = vor.u32 %v9528_v38, %v8173_v35  ;;  %4831 = vmatpush.bf16.msrb.mxu2 %v7918_v46 }
 0x28d   : > { %v9328_v49 = vld [vmem:[%s10274_s14 + $0x92c] sm:$0xf0] }
 0x28e   : > { %v7629_v4 = vld [vmem:[%s10274_s14 + $0xb10] sm:$0xf]  ;;  %v7374_v57 = vor.u32 %v9328_v49, %v7373_v47  ;;  %4844 = vmatpush.bf16.msrb.mxu3 %v8174_v50 }
 0x28f   : > { %v9392_v51 = vld [vmem:[%s10274_s14 + $0xb2c] sm:$0xf0] }
 0x290   : > { %v7885_v52 = vld [vmem:[%s10274_s14 + $0xd10] sm:$0xf]  ;;  %v7630_v58 = vor.u32 %v9392_v51, %v7629_v4  ;;  %4806 = vmatpush.bf16.msrb.mxu0 %v7374_v57 }
 0x291   : > { %v9456_v53 = vld [vmem:[%s10274_s14 + $0xd2c] sm:$0xf0] }
 0x292   : > { %v8141_v55 = vld [vmem:[%s10274_s14 + $0xf10] sm:$0xf]  ;;  %v7886_v14 = vor.u32 %v9456_v53, %v7885_v52  ;;  %4819 = vmatpush.bf16.msrb.mxu1 %v7630_v58 }
 0x293   : > { %v9520_v56 = vld [vmem:[%s10274_s14 + $0xf2c] sm:$0xf0] }
 0x294   : > { %v7341_v59 = vld [vmem:[%s10274_s14 + $0x8d0] sm:$0xf]  ;;  %v8142_v0 = vor.u32 %v9520_v56, %v8141_v55  ;;  %4832 = vmatpush.bf16.msrb.mxu2 %v7886_v14  ;;  %v4580_v14 = vpop.f32.mrf.mxu2 }
 0x295   : > { %v9320_v60 = vld [vmem:[%s10274_s14 + $0x8ec] sm:$0xf0]  ;;  %v9068_v14 = vld [vmem:[%s10274_s14 + $0x114] sm:$0xf] }
 0x296   : > { %v7597_v61 = vld [vmem:[%s10274_s14 + $0xad0] sm:$0xf]  ;;  %v7342_v7 = vor.u32 %v9320_v60, %v7341_v59  ;;  %4845 = vmatpush.bf16.msrb.mxu3 %v8142_v0 }
 0x297   : > { %v9384_v54 = vld [vmem:[%s10274_s14 + $0xaec] sm:$0xf0] }
 0x298   : > { %v7853_v1 = vld [vmem:[%s10274_s14 + $0xcd0] sm:$0xf]  ;;  %v7598_v20 = vor.u32 %v9384_v54, %v7597_v61  ;;  %4807 = vmatpush.bf16.msrb.mxu0 %v7342_v7 }
 0x299   : > { %v9448_v2 = vld [vmem:[%s10274_s14 + $0xcec] sm:$0xf0] }
 0x29a   : > { %v8109_v3 = vld [vmem:[%s10274_s14 + $0xed0] sm:$0xf]  ;;  %v7854_v8 = vor.u32 %v9448_v2, %v7853_v1  ;;  %4820 = vmatpush.bf16.msrb.mxu1 %v7598_v20 }
 0x29b   : > { %v9512_v5 = vld [vmem:[%s10274_s14 + $0xeec] sm:$0xf0] }
 0x29c   : > { %v7309_v10 = vld [vmem:[%s10274_s14 + $0x890] sm:$0xf]  ;;  %v8110_v16 = vor.u32 %v9512_v5, %v8109_v3  ;;  %4833 = vmatpush.bf16.msrb.mxu2 %v7854_v8  ;;  %v9092_v5 = vld [vmem:[%s10274_s14 + $0x1d4] sm:$0xf] }
 0x29d   : > { %v9312_v11 = vld [vmem:[%s10274_s14 + $0x8ac] sm:$0xf0]  ;;  %v9156_v8 = vld [vmem:[%s10274_s14 + $0x3d4] sm:$0xf] }
 0x29e   : > { %v7565_v12 = vld [vmem:[%s10274_s14 + $0xa90] sm:$0xf]  ;;  %v7310_v27 = vor.u32 %v9312_v11, %v7309_v10  ;;  %4846 = vmatpush.bf16.msrb.mxu3 %v8110_v16  ;;  %v6703_v10 = vld [vmem:[%s10274_s14 + $0x3f0] sm:$0xf0]  ;;  %v6450_v16 = vor.u32 %v9092_v5, %v6447_v6 }
 0x29f   : > { %v9376_v18 = vld [vmem:[%s10274_s14 + $0xaac] sm:$0xf0]  ;;  %v6706_v23 = vor.u32 %v9156_v8, %v6703_v10  ;;  %v6319_v10 = vld [vmem:[%s10274_s14 + $0xf0] sm:$0xf0] }
 0x2a0   : > { %v7821_v19 = vld [vmem:[%s10274_s14 + $0xc90] sm:$0xf]  ;;  %v7566_v30 = vor.u32 %v9376_v18, %v7565_v12  ;;  %4808 = vmatpush.bf16.msrb.mxu0 %v7310_v27  ;;  %v9148_v27 = vld [vmem:[%s10274_s14 + $0x394] sm:$0xf] }
 0x2a1   : > { %v9440_v22 = vld [vmem:[%s10274_s14 + $0xcac] sm:$0xf0] }
 0x2a2   : > { %v8077_v25 = vld [vmem:[%s10274_s14 + $0xe90] sm:$0xf]  ;;  %v7822_v31 = vor.u32 %v9440_v22, %v7821_v19  ;;  %4821 = vmatpush.bf16.msrb.mxu1 %v7566_v30 }
 0x2a3   : > { %v9504_v26 = vld [vmem:[%s10274_s14 + $0xeac] sm:$0xf0] }
 0x2a4   : > { %v7277_v32 = vld [vmem:[%s10274_s14 + $0x850] sm:$0xf]  ;;  %v8078_v45 = vor.u32 %v9504_v26, %v8077_v25  ;;  %4834 = vmatpush.bf16.msrb.mxu2 %v7822_v31  ;;  %v9084_v25 = vld [vmem:[%s10274_s14 + $0x194] sm:$0xf] }
 0x2a5   : > { %v9304_v35 = vld [vmem:[%s10274_s14 + $0x86c] sm:$0xf0]  ;;  %v6415_v26 = vld [vmem:[%s10274_s14 + $0x1b0] sm:$0xf0] }
 0x2a6   : > { %v7533_v38 = vld [vmem:[%s10274_s14 + $0xa50] sm:$0xf]  ;;  %v7278_v51 = vor.u32 %v9304_v35, %v7277_v32  ;;  %4847 = vmatpush.bf16.msrb.mxu3 %v8078_v45  ;;  %v6418_v32 = vor.u32 %v9084_v25, %v6415_v26  ;;  %v6674_v45 = vor.u32 %v9148_v27, %v6671_v29  ;;  %v9052_v27 = vld [vmem:[%s10274_s14 + $0x94] sm:$0xf] }
 0x2a7   : > { %v9368_v46 = vld [vmem:[%s10274_s14 + $0xa6c] sm:$0xf0]  ;;  %v6287_v29 = vld [vmem:[%s10274_s14 + $0xb0] sm:$0xf0] }
 0x2a8   : > { %v7789_v47 = vld [vmem:[%s10274_s14 + $0xc50] sm:$0xf]  ;;  %v7534_v55 = vor.u32 %v9368_v46, %v7533_v38  ;;  %4809 = vmatpush.bf16.msrb.mxu0 %v7278_v51 }
 0x2a9   : > { %v9432_v49 = vld [vmem:[%s10274_s14 + $0xc6c] sm:$0xf0] }
 0x2aa   : > { %v8045_v4 = vld [vmem:[%s10274_s14 + $0xe50] sm:$0xf]  ;;  %v7790_v56 = vor.u32 %v9432_v49, %v7789_v47  ;;  %4822 = vmatpush.bf16.msrb.mxu1 %v7534_v55  ;;  %v9076_v47 = vld [vmem:[%s10274_s14 + $0x154] sm:$0xf] }
 0x2ab   : > { %v9496_v50 = vld [vmem:[%s10274_s14 + $0xe6c] sm:$0xf0]  ;;  %v6383_v49 = vld [vmem:[%s10274_s14 + $0x170] sm:$0xf0] }
 0x2ac   : > { %v7245_v52 = vld [vmem:[%s10274_s14 + $0x810] sm:$0xf]  ;;  %v8046_v59 = vor.u32 %v9496_v50, %v8045_v4  ;;  %4835 = vmatpush.bf16.msrb.mxu2 %v7790_v56  ;;  %v9140_v4 = vld [vmem:[%s10274_s14 + $0x354] sm:$0xf] }
 0x2ad   : > { %v9296_v53 = vld [vmem:[%s10274_s14 + $0x82c] sm:$0xf0]  ;;  %v6639_v50 = vld [vmem:[%s10274_s14 + $0x370] sm:$0xf0] }
 0x2ae   : > { %v7501_v57 = vld [vmem:[%s10274_s14 + $0xa10] sm:$0xf]  ;;  %v7246_v2 = vor.u32 %v9296_v53, %v7245_v52  ;;  %4848 = vmatpush.bf16.msrb.mxu3 %v8046_v59  ;;  %v6386_v53 = vor.u32 %v9076_v47, %v6383_v49  ;;  %v6351_v59 = vld [vmem:[%s10274_s14 + $0x130] sm:$0xf0]  ;;  %v6290_v47 = vor.u32 %v9052_v27, %v6287_v29 }
 0x2af   : > { %v9360_v9 = vld [vmem:[%s10274_s14 + $0xa2c] sm:$0xf0]  ;;  %v9212_v27 = vld [vmem:[%s10274_s14 + $0x594] sm:$0xf] }
 0x2b0   : > { %v7757_v58 = vld [vmem:[%s10274_s14 + $0xc10] sm:$0xf]  ;;  %v7502_v7 = vor.u32 %v9360_v9, %v7501_v57  ;;  %4810 = vmatpush.bf16.msrb.mxu0 %v7246_v2  ;;  %v6642_v9 = vor.u32 %v9140_v4, %v6639_v50  ;;  %v6354_v2 = vor.u32 %v9068_v14, %v6351_v59  ;;  %v6927_v29 = vld [vmem:[%s10274_s14 + $0x5b0] sm:$0xf0] }
 0x2b1   : > { %v9424_v60 = vld [vmem:[%s10274_s14 + $0xc2c] sm:$0xf0] }
 0x2b2   : > { %v8013_v61 = vld [vmem:[%s10274_s14 + $0xe10] sm:$0xf]  ;;  %v7758_v20 = vor.u32 %v9424_v60, %v7757_v58  ;;  %4823 = vmatpush.bf16.msrb.mxu1 %v7502_v7  ;;  %v4604_v60 = vpop.f32.mrf.mxu0 }
 0x2b3   : > { %v9488_v62 = vld [vmem:[%s10274_s14 + $0xe2c] sm:$0xf0]  ;;  %4811 = vmatmul.bf16.vlgmr.msrb.gmra.mxu0 %v10455_v39  ;;  %v4605_v63 = vadd.f32 %v4604_v60, %v11145_v28  ;;  %v9060_v28 = vld [vmem:[%s10274_s14 + $0xd4] sm:$0xf] }
 0x2b4   : > { %v8493_v0 = vld [vmem:[%s10274_s14 + $0x11d0] sm:$0xf]  ;;  %v8014_v11 = vor.u32 %v9488_v62, %v8013_v61  ;;  %4836 = vmatpush.bf16.msrb.mxu2 %v7758_v20  ;;  %v9132_v61 = vld [vmem:[%s10274_s14 + $0x314] sm:$0xf] }
 0x2b5   : > { %v9608_v54 = vld [vmem:[%s10274_s14 + $0x11ec] sm:$0xf0]  ;;  %4824 = vmatmul.bf16.vlgmr.msrb.gmra.mxu1 %v10459_v42  ;;  %v6607_v62 = vld [vmem:[%s10274_s14 + $0x330] sm:$0xf0] }
 0x2b6   : > { %v8749_v1 = vld [vmem:[%s10274_s14 + $0x13d0] sm:$0xf]  ;;  %v8494_v12 = vor.u32 %v9608_v54, %v8493_v0  ;;  %4849 = vmatpush.bf16.msrb.mxu3 %v8014_v11  ;;  %v4617_v54 = vpop.f32.mrf.mxu1  ;;  %v6610_v7 = vor.u32 %v9132_v61, %v6607_v62  ;;  %v9124_v11 = vld [vmem:[%s10274_s14 + $0x2d4] sm:$0xf] }
 0x2b7   : > { %v9672_v3 = vld [vmem:[%s10274_s14 + $0x13ec] sm:$0xf0]  ;;  %4837 = vmatmul.bf16.vlgmr.msrb.gmra.mxu2 %v10451_v34  ;;  %v11203_v20 = vadd.f32 %v4617_v54, %v4605_v63 }
 0x2b8   : > { %v8750_v13 = vor.u32 %v9672_v3, %v8749_v1  ;;  %v8461_v18 = vld [vmem:[%s10274_s14 + $0x1190] sm:$0xf]  ;;  %4855 = vmatpush.bf16.msra.mxu0 %v8494_v12  ;;  %4881 = vmatpush.bf16.msra.mxu2 %v6450_v16  ;;  %v6575_v12 = vld [vmem:[%s10274_s14 + $0x2f0] sm:$0xf0] }
 0x2b9   : > { %v9600_v19 = vld [vmem:[%s10274_s14 + $0x11ac] sm:$0xf0]  ;;  %4850 = vmatmul.bf16.vlgmr.msrb.gmra.mxu3 %v10457_v40  ;;  %v6578_v25 = vor.u32 %v9124_v11, %v6575_v12  ;;  %v7215_v11 = vld [vmem:[%s10274_s14 + $0x7f0] sm:$0xf0] }
 0x2ba   : > { %v8717_v22 = vld [vmem:[%s10274_s14 + $0x1390] sm:$0xf]  ;;  %v8462_v30 = vor.u32 %v9600_v19, %v8461_v18  ;;  %4868 = vmatpush.bf16.msra.mxu1 %v8750_v13  ;;  %4894 = vmatpush.bf16.msra.mxu3 %v6706_v23  ;;  %v1018_v13 = vperm.slane %v11050_v33, 3  ;;  %v6322_v19 = vor.u32 %v9060_v28, %v6319_v10  ;;  %v4630_v33 = vpop.f32.mrf.mxu2  ;;  %v9348_v12 = vld [vmem:[%s10274_s14 + $0x9d4] sm:$0xf] }
 0x2bb   : > { %v9664_v24 = vld [vmem:[%s10274_s14 + $0x13ac] sm:$0xf0] }
 0x2bc   : > { %v8718_v31 = vor.u32 %v9664_v24, %v8717_v22  ;;  %v8429_v35 = vld [vmem:[%s10274_s14 + $0x1150] sm:$0xf]  ;;  %4856 = vmatpush.bf16.msra.mxu0 %v8462_v30  ;;  %4882 = vmatpush.bf16.msra.mxu2 %v6418_v32  ;;  %v9116_v30 = vld [vmem:[%s10274_s14 + $0x294] sm:$0xf]  ;;  %v4631_v32 = vadd.f32 %v4630_v33, %v1018_v13 }
 0x2bd   : > { %v9592_v38 = vld [vmem:[%s10274_s14 + $0x116c] sm:$0xf0]  ;;  %v7471_v13 = vld [vmem:[%s10274_s14 + $0x9f0] sm:$0xf0] }
 0x2be   : > { %v8685_v41 = vld [vmem:[%s10274_s14 + $0x1350] sm:$0xf]  ;;  %v8430_v51 = vor.u32 %v9592_v38, %v8429_v35  ;;  %4869 = vmatpush.bf16.msra.mxu1 %v8718_v31  ;;  %4895 = vmatpush.bf16.msra.mxu3 %v6674_v45  ;;  %v6543_v31 = vld [vmem:[%s10274_s14 + $0x2b0] sm:$0xf0]  ;;  %v4643_v35 = vpop.f32.mrf.mxu3  ;;  %v4606_v38 = vpop.f32.mrf.mxu0 }
 0x2bf   : > { %v9656_v46 = vld [vmem:[%s10274_s14 + $0x136c] sm:$0xf0]  ;;  %v4619_v45 = vpop.f32.mrf.mxu1  ;;  %v9276_v33 = vld [vmem:[%s10274_s14 + $0x794] sm:$0xf] }
 0x2c0   : > { %v8686_v52 = vor.u32 %v9656_v46, %v8685_v41  ;;  %v8397_v55 = vld [vmem:[%s10274_s14 + $0x1110] sm:$0xf]  ;;  %4857 = vmatpush.bf16.msra.mxu0 %v8430_v51  ;;  %4883 = vmatpush.bf16.msra.mxu2 %v6386_v53  ;;  %v11222_v51 = vadd.f32 %v4643_v35, %v4631_v32  ;;  %v9340_v32 = vld [vmem:[%s10274_s14 + $0x994] sm:$0xf]  ;;  %v6930_v45 = vor.u32 %v9212_v27, %v6927_v29 }
 0x2c1   : > { %v9584_v56 = vld [vmem:[%s10274_s14 + $0x112c] sm:$0xf0]  ;;  %v7439_v35 = vld [vmem:[%s10274_s14 + $0x9b0] sm:$0xf0] }
 0x2c2   : > { %v8653_v57 = vld [vmem:[%s10274_s14 + $0x1310] sm:$0xf]  ;;  %v8398_v0 = vor.u32 %v9584_v56, %v8397_v55  ;;  %4870 = vmatpush.bf16.msra.mxu1 %v8686_v52  ;;  %4896 = vmatpush.bf16.msra.mxu3 %v6642_v9  ;;  %v6546_v52 = vor.u32 %v9116_v30, %v6543_v31  ;;  %v9044_v55 = vld [vmem:[%s10274_s14 + $0x54] sm:$0xf] }
 0x2c3   : > { %v9648_v58 = vld [vmem:[%s10274_s14 + $0x132c] sm:$0xf0]  ;;  %v6255_v56 = vld [vmem:[%s10274_s14 + $0x70] sm:$0xf0] }
 0x2c4   : > { %v8654_v1 = vor.u32 %v9648_v58, %v8653_v57  ;;  %v8365_v3 = vld [vmem:[%s10274_s14 + $0x10d0] sm:$0xf]  ;;  %4858 = vmatpush.bf16.msra.mxu0 %v8398_v0  ;;  %4884 = vmatpush.bf16.msra.mxu2 %v6354_v2  ;;  %v9108_v57 = vld [vmem:[%s10274_s14 + $0x254] sm:$0xf]  ;;  %v6258_v61 = vor.u32 %v9044_v55, %v6255_v56 }
 0x2c5   : > { %v9576_v5 = vld [vmem:[%s10274_s14 + $0x10ec] sm:$0xf0]  ;;  %v6511_v9 = vld [vmem:[%s10274_s14 + $0x270] sm:$0xf0] }
 0x2c6   : > { %v8621_v6 = vld [vmem:[%s10274_s14 + $0x12d0] sm:$0xf]  ;;  %v8366_v16 = vor.u32 %v9576_v5, %v8365_v3  ;;  %4871 = vmatpush.bf16.msra.mxu1 %v8654_v1  ;;  %4897 = vmatpush.bf16.msra.mxu3 %v6610_v7  ;;  %v9036_v0 = vld [vmem:[%s10274_s14 + $0x14] sm:$0xf]  ;;  %v6514_v54 = vor.u32 %v9108_v57, %v6511_v9  ;;  %v4632_v5 = vpop.f32.mrf.mxu2  ;;  %v4645_v28 = vpop.f32.mrf.mxu3 }
 0x2c7   : > { %v9640_v8 = vld [vmem:[%s10274_s14 + $0x12ec] sm:$0xf0]  ;;  %v6223_v1 = vld [vmem:[%s10274_s14 + $0x30] sm:$0xf0] }
 0x2c8   : > { %v8622_v18 = vor.u32 %v9640_v8, %v8621_v6  ;;  %v8333_v22 = vld [vmem:[%s10274_s14 + $0x1090] sm:$0xf]  ;;  %4859 = vmatpush.bf16.msra.mxu0 %v8366_v16  ;;  %4885 = vmatpush.bf16.msra.mxu2 %v6322_v19  ;;  %v9100_v2 = vld [vmem:[%s10274_s14 + $0x214] sm:$0xf] }
 0x2c9   : > { %v9568_v23 = vld [vmem:[%s10274_s14 + $0x10ac] sm:$0xf0]  ;;  %v6479_v3 = vld [vmem:[%s10274_s14 + $0x230] sm:$0xf0] }
 0x2ca   : > { %v8589_v24 = vld [vmem:[%s10274_s14 + $0x1290] sm:$0xf]  ;;  %v8334_v41 = vor.u32 %v9568_v23, %v8333_v22  ;;  %4872 = vmatpush.bf16.msra.mxu1 %v8622_v18  ;;  %4898 = vmatpush.bf16.msra.mxu3 %v6578_v25  ;;  %v9220_v6 = vld [vmem:[%s10274_s14 + $0x5d4] sm:$0xf]  ;;  %v6226_v18 = vor.u32 %v9036_v0, %v6223_v1  ;;  %v6482_v23 = vor.u32 %v9100_v2, %v6479_v3 }
 0x2cb   : > { %v9632_v26 = vld [vmem:[%s10274_s14 + $0x12ac] sm:$0xf0]  ;;  %v6959_v7 = vld [vmem:[%s10274_s14 + $0x5f0] sm:$0xf0] }
 0x2cc   : > { %v8590_v46 = vor.u32 %v9632_v26, %v8589_v24  ;;  %v8301_v49 = vld [vmem:[%s10274_s14 + $0x1050] sm:$0xf]  ;;  %4860 = vmatpush.bf16.msra.mxu0 %v8334_v41  ;;  %4886 = vmatpush.bf16.msra.mxu2 %v6290_v47  ;;  %v9284_v8 = vld [vmem:[%s10274_s14 + $0x7d4] sm:$0xf]  ;;  %v6962_v24 = vor.u32 %v9220_v6, %v6959_v7  ;;  %v7474_v26 = vor.u32 %v9348_v12, %v7471_v13  ;;  %v4656_v6 = vpop.f32.mrf.mxu0  ;;  %v4669_v13 = vpop.f32.mrf.mxu1 }
 0x2cd   : > { %v9560_v4 = vld [vmem:[%s10274_s14 + $0x106c] sm:$0xf0]  ;;  %v9412_v19 = vld [vmem:[%s10274_s14 + $0xbd4] sm:$0xf]  ;;  %v7218_v25 = vor.u32 %v9284_v8, %v7215_v11  ;;  %v7442_v47 = vor.u32 %v9340_v32, %v7439_v35  ;;  %v4657_v12 = vadd.f32 %v4656_v6, %v11222_v51 }
 0x2ce   : > { %v8557_v50 = vld [vmem:[%s10274_s14 + $0x1250] sm:$0xf]  ;;  %v8302_v58 = vor.u32 %v9560_v4, %v8301_v49  ;;  %4873 = vmatpush.bf16.msra.mxu1 %v8590_v46  ;;  %4899 = vmatpush.bf16.msra.mxu3 %v6546_v52  ;;  %v7727_v22 = vld [vmem:[%s10274_s14 + $0xbf0] sm:$0xf0] }
 0x2cf   : > { %v9624_v53 = vld [vmem:[%s10274_s14 + $0x126c] sm:$0xf0]  ;;  %v7730_v30 = vor.u32 %v9412_v19, %v7727_v22  ;;  %v7183_v31 = vld [vmem:[%s10274_s14 + $0x7b0] sm:$0xf0] }
 0x2d0   : > { %v8269_v14 = vld [vmem:[%s10274_s14 + $0x1010] sm:$0xf]  ;;  %v8558_v60 = vor.u32 %v9624_v53, %v8557_v50  ;;  %4861 = vmatpush.bf16.msra.mxu0 %v8302_v58  ;;  %4887 = vmatpush.bf16.msra.mxu2 %v6258_v61  ;;  %v9404_v38 = vld [vmem:[%s10274_s14 + $0xb94] sm:$0xf]  ;;  %v7186_v46 = vor.u32 %v9276_v33, %v7183_v31  ;;  %v4682_v31 = vpop.f32.mrf.mxu2 }
 0x2d1   : > { %v9552_v59 = vld [vmem:[%s10274_s14 + $0x102c] sm:$0xf0]  ;;  %v7695_v41 = vld [vmem:[%s10274_s14 + $0xbb0] sm:$0xf0] }
 0x2d2   : > { %v8525_v62 = vld [vmem:[%s10274_s14 + $0x1210] sm:$0xf]  ;;  %v8270_v10 = vor.u32 %v9552_v59, %v8269_v14  ;;  %4874 = vmatpush.bf16.msra.mxu1 %v8558_v60  ;;  %4900 = vmatpush.bf16.msra.mxu3 %v6514_v54  ;;  %v9204_v49 = vld [vmem:[%s10274_s14 + $0x554] sm:$0xf]  ;;  %v7698_v52 = vor.u32 %v9404_v38, %v7695_v41 }
 0x2d3   : > { %v9616_v63 = vld [vmem:[%s10274_s14 + $0x122c] sm:$0xf0]  ;;  %v6895_v4 = vld [vmem:[%s10274_s14 + $0x570] sm:$0xf0] }
 0x2d4   : > { %v8526_v16 = vor.u32 %v9616_v63, %v8525_v62  ;;  %4862 = vmatpush.bf16.msra.mxu0 %v8270_v10  ;;  %4888 = vmatpush.bf16.msra.mxu2 %v6226_v18  ;;  %v9268_v50 = vld [vmem:[%s10274_s14 + $0x754] sm:$0xf]  ;;  %v6898_v58 = vor.u32 %v9204_v49, %v6895_v4 }
 0x2d5   : > { %v7151_v53 = vld [vmem:[%s10274_s14 + $0x770] sm:$0xf0] }
 0x2d6   : > { %4875 = vmatpush.bf16.msra.mxu1 %v8526_v16  ;;  %4901 = vmatpush.bf16.msra.mxu3 %v6482_v23  ;;  %v9332_v55 = vld [vmem:[%s10274_s14 + $0x954] sm:$0xf]  ;;  %v7154_v14 = vor.u32 %v9268_v50, %v7151_v53 }
 0x2d7   : > { %4863 = vmatmul.bf16.vlgmr.msra.gmra.mxu0 %v10524_v17  ;;  %v7407_v56 = vld [vmem:[%s10274_s14 + $0x970] sm:$0xf0]  ;;  %4889 = vmatmul.bf16.vlgmr.msra.gmra.mxu2 %v10407_v37 }
 0x2d8   : > { %4907 = vmatpush.bf16.msrb.mxu0 %v6962_v24  ;;  %4933 = vmatpush.bf16.msrb.mxu2 %v7474_v26  ;;  %v9396_v57 = vld [vmem:[%s10274_s14 + $0xb54] sm:$0xf]  ;;  %v7410_v59 = vor.u32 %v9332_v55, %v7407_v56 }
 0x2d9   : > { %4876 = vmatmul.bf16.vlgmr.msra.gmra.mxu1 %v10529_v21  ;;  %v7663_v9 = vld [vmem:[%s10274_s14 + $0xb70] sm:$0xf0]  ;;  %4902 = vmatmul.bf16.vlgmr.msra.gmra.mxu3 %v10413_v44 }
 0x2da   : > { %4920 = vmatpush.bf16.msrb.mxu1 %v7218_v25  ;;  %4946 = vmatpush.bf16.msrb.mxu3 %v7730_v30  ;;  %v9196_v60 = vld [vmem:[%s10274_s14 + $0x514] sm:$0xf]  ;;  %v7666_v63 = vor.u32 %v9396_v57, %v7663_v9  ;;  %v4670_v25 = vadd.f32 %v4669_v13, %v4657_v12 }
 0x2db   : > { %v6863_v61 = vld [vmem:[%s10274_s14 + $0x530] sm:$0xf0] }
 0x2dc   : > { %4908 = vmatpush.bf16.msrb.mxu0 %v6930_v45  ;;  %4934 = vmatpush.bf16.msrb.mxu2 %v7442_v47  ;;  %v9260_v62 = vld [vmem:[%s10274_s14 + $0x714] sm:$0xf]  ;;  %v6866_v5 = vor.u32 %v9196_v60, %v6863_v61  ;;  %v4683_v45 = vadd.f32 %v4682_v31, %v4670_v25 }
 0x2dd   : > { %v7119_v0 = vld [vmem:[%s10274_s14 + $0x730] sm:$0xf0] }
 0x2de   : > { %4921 = vmatpush.bf16.msrb.mxu1 %v7186_v46  ;;  %4947 = vmatpush.bf16.msrb.mxu3 %v7698_v52  ;;  %v9324_v54 = vld [vmem:[%s10274_s14 + $0x914] sm:$0xf]  ;;  %v7122_v7 = vor.u32 %v9260_v62, %v7119_v0  ;;  %v4695_v46 = vpop.f32.mrf.mxu3  ;;  %v4658_v52 = vpop.f32.mrf.mxu0 }
 0x2df   : > { %v7375_v1 = vld [vmem:[%s10274_s14 + $0x930] sm:$0xf0]  ;;  %v11290_v50 = vadd.f32 %v4695_v46, %v4683_v45 }
 0x2e0   : > { %v9388_v2 = vld [vmem:[%s10274_s14 + $0xb14] sm:$0xf]  ;;  %4909 = vmatpush.bf16.msrb.mxu0 %v6898_v58  ;;  %4935 = vmatpush.bf16.msrb.mxu2 %v7410_v59  ;;  %v7378_v8 = vor.u32 %v9324_v54, %v7375_v1  ;;  %v4671_v58 = vpop.f32.mrf.mxu1 }
 0x2e1   : > { %v7631_v3 = vld [vmem:[%s10274_s14 + $0xb30] sm:$0xf0] }
 0x2e2   : > { %4922 = vmatpush.bf16.msrb.mxu1 %v7154_v14  ;;  %v9188_v28 = vld [vmem:[%s10274_s14 + $0x4d4] sm:$0xf]  ;;  %4948 = vmatpush.bf16.msrb.mxu3 %v7666_v63  ;;  %v7634_v16 = vor.u32 %v9388_v2, %v7631_v3 }
 0x2e3   : > { %v6831_v10 = vld [vmem:[%s10274_s14 + $0x4f0] sm:$0xf0] }
 0x2e4   : > { %v9252_v11 = vld [vmem:[%s10274_s14 + $0x6d4] sm:$0xf]  ;;  %4910 = vmatpush.bf16.msrb.mxu0 %v6866_v5  ;;  %v6834_v26 = vor.u32 %v9188_v28, %v6831_v10  ;;  %4936 = vmatpush.bf16.msrb.mxu2 %v7378_v8  ;;  %v4684_v8 = vpop.f32.mrf.mxu2 }
 0x2e5   : > { %v7087_v18 = vld [vmem:[%s10274_s14 + $0x6f0] sm:$0xf0] }
 0x2e6   : > { %v9316_v19 = vld [vmem:[%s10274_s14 + $0x8d4] sm:$0xf]  ;;  %4923 = vmatpush.bf16.msrb.mxu1 %v7122_v7  ;;  %v7090_v51 = vor.u32 %v9252_v11, %v7087_v18  ;;  %4949 = vmatpush.bf16.msrb.mxu3 %v7634_v16  ;;  %v4697_v13 = vpop.f32.mrf.mxu3 }
 0x2e7   : > { %v7343_v22 = vld [vmem:[%s10274_s14 + $0x8f0] sm:$0xf0] }
 0x2e8   : > { %v9380_v23 = vld [vmem:[%s10274_s14 + $0xad4] sm:$0xf]  ;;  %v7346_v27 = vor.u32 %v9316_v19, %v7343_v22  ;;  %4911 = vmatpush.bf16.msrb.mxu0 %v6834_v26 }
 0x2e9   : > { %v7599_v24 = vld [vmem:[%s10274_s14 + $0xaf0] sm:$0xf0] }
 0x2ea   : > { %v9180_v29 = vld [vmem:[%s10274_s14 + $0x494] sm:$0xf]  ;;  %v7602_v32 = vor.u32 %v9380_v23, %v7599_v24  ;;  %4924 = vmatpush.bf16.msrb.mxu1 %v7090_v51  ;;  %4937 = vmatpush.bf16.msrb.mxu2 %v7346_v27 }
 0x2eb   : > { %v6799_v33 = vld [vmem:[%s10274_s14 + $0x4b0] sm:$0xf0] }
 0x2ec   : > { %v9244_v30 = vld [vmem:[%s10274_s14 + $0x694] sm:$0xf]  ;;  %v6802_v4 = vor.u32 %v9180_v29, %v6799_v33  ;;  %4950 = vmatpush.bf16.msrb.mxu3 %v7602_v32 }
 0x2ed   : > { %v7055_v35 = vld [vmem:[%s10274_s14 + $0x6b0] sm:$0xf0] }
 0x2ee   : > { %v9308_v38 = vld [vmem:[%s10274_s14 + $0x894] sm:$0xf]  ;;  %v7058_v53 = vor.u32 %v9244_v30, %v7055_v35  ;;  %4912 = vmatpush.bf16.msrb.mxu0 %v6802_v4 }
 0x2ef   : > { %v7311_v41 = vld [vmem:[%s10274_s14 + $0x8b0] sm:$0xf0] }
 0x2f0   : > { %v9372_v47 = vld [vmem:[%s10274_s14 + $0xa94] sm:$0xf]  ;;  %v7314_v55 = vor.u32 %v9308_v38, %v7311_v41  ;;  %4925 = vmatpush.bf16.msrb.mxu1 %v7058_v53 }
 0x2f1   : > { %v7567_v49 = vld [vmem:[%s10274_s14 + $0xab0] sm:$0xf0] }
 0x2f2   : > { %v9172_v56 = vld [vmem:[%s10274_s14 + $0x454] sm:$0xf]  ;;  %v7570_v14 = vor.u32 %v9372_v47, %v7567_v49  ;;  %4938 = vmatpush.bf16.msrb.mxu2 %v7314_v55 }
 0x2f3   : > { %v6767_v57 = vld [vmem:[%s10274_s14 + $0x470] sm:$0xf0] }
 0x2f4   : > { %v9236_v9 = vld [vmem:[%s10274_s14 + $0x654] sm:$0xf]  ;;  %v6770_v0 = vor.u32 %v9172_v56, %v6767_v57  ;;  %4951 = vmatpush.bf16.msrb.mxu3 %v7570_v14 }
 0x2f5   : > { %v7023_v59 = vld [vmem:[%s10274_s14 + $0x670] sm:$0xf0] }
 0x2f6   : > { %v9300_v60 = vld [vmem:[%s10274_s14 + $0x854] sm:$0xf]  ;;  %v7026_v2 = vor.u32 %v9236_v9, %v7023_v59  ;;  %4913 = vmatpush.bf16.msrb.mxu0 %v6770_v0 }
 0x2f7   : > { %v7279_v61 = vld [vmem:[%s10274_s14 + $0x870] sm:$0xf0] }
 0x2f8   : > { %v9364_v62 = vld [vmem:[%s10274_s14 + $0xa54] sm:$0xf]  ;;  %v7282_v3 = vor.u32 %v9300_v60, %v7279_v61  ;;  %4926 = vmatpush.bf16.msrb.mxu1 %v7026_v2 }
 0x2f9   : > { %v7535_v63 = vld [vmem:[%s10274_s14 + $0xa70] sm:$0xf0] }
 0x2fa   : > { %v9164_v54 = vld [vmem:[%s10274_s14 + $0x414] sm:$0xf]  ;;  %v7538_v28 = vor.u32 %v9364_v62, %v7535_v63  ;;  %4939 = vmatpush.bf16.msrb.mxu2 %v7282_v3 }
 0x2fb   : > { %v6735_v1 = vld [vmem:[%s10274_s14 + $0x430] sm:$0xf0] }
 0x2fc   : > { %v9228_v5 = vld [vmem:[%s10274_s14 + $0x614] sm:$0xf]  ;;  %v6738_v22 = vor.u32 %v9164_v54, %v6735_v1  ;;  %4952 = vmatpush.bf16.msrb.mxu3 %v7538_v28 }
 0x2fd   : > { %v6991_v6 = vld [vmem:[%s10274_s14 + $0x630] sm:$0xf0] }
 0x2fe   : > { %v9292_v7 = vld [vmem:[%s10274_s14 + $0x814] sm:$0xf]  ;;  %v6994_v26 = vor.u32 %v9228_v5, %v6991_v6  ;;  %4914 = vmatpush.bf16.msrb.mxu0 %v6738_v22 }
 0x2ff   : > { %v7247_v10 = vld [vmem:[%s10274_s14 + $0x830] sm:$0xf0] }
 0x300   : > { %v9356_v11 = vld [vmem:[%s10274_s14 + $0xa14] sm:$0xf]  ;;  %v7250_v51 = vor.u32 %v9292_v7, %v7247_v10  ;;  %4927 = vmatpush.bf16.msrb.mxu1 %v6994_v26  ;;  %v4708_v10 = vpop.f32.mrf.mxu0 }
 0x301   : > { %v7503_v12 = vld [vmem:[%s10274_s14 + $0xa30] sm:$0xf0]  ;;  %4915 = vmatmul.bf16.vlgmr.msrb.gmra.mxu0 %v10405_v36  ;;  %v4709_v13 = vadd.f32 %v4708_v10, %v11290_v50 }
 0x302   : > { %v9476_v16 = vld [vmem:[%s10274_s14 + $0xdd4] sm:$0xf]  ;;  %v7506_v33 = vor.u32 %v9356_v11, %v7503_v12  ;;  %4940 = vmatpush.bf16.msrb.mxu2 %v7250_v51 }
 0x303   : > { %v7983_v18 = vld [vmem:[%s10274_s14 + $0xdf0] sm:$0xf0]  ;;  %4928 = vmatmul.bf16.vlgmr.msrb.gmra.mxu1 %v10411_v43 }
 0x304   : > { %v9540_v19 = vld [vmem:[%s10274_s14 + $0xfd4] sm:$0xf]  ;;  %v7986_v30 = vor.u32 %v9476_v16, %v7983_v18  ;;  %4953 = vmatpush.bf16.msrb.mxu3 %v7506_v33  ;;  %v4721_v18 = vpop.f32.mrf.mxu1 }
 0x305   : > { %v8239_v23 = vld [vmem:[%s10274_s14 + $0xff0] sm:$0xf0]  ;;  %4941 = vmatmul.bf16.vlgmr.msrb.gmra.mxu2 %v10455_v39  ;;  %v4722_v51 = vadd.f32 %v4721_v18, %v4709_v13 }
 0x306   : > { %v9604_v24 = vld [vmem:[%s10274_s14 + $0x11d4] sm:$0xf]  ;;  %v8242_v31 = vor.u32 %v9540_v19, %v8239_v23  ;;  %4959 = vmatpush.bf16.msra.mxu0 %v7986_v30 }
 0x307   : > { %v8495_v25 = vld [vmem:[%s10274_s14 + $0x11f0] sm:$0xf0]  ;;  %4954 = vmatmul.bf16.vlgmr.msrb.gmra.mxu3 %v10459_v42 }
 0x308   : > { %v9668_v27 = vld [vmem:[%s10274_s14 + $0x13d4] sm:$0xf]  ;;  %v8498_v32 = vor.u32 %v9604_v24, %v8495_v25  ;;  %4972 = vmatpush.bf16.msra.mxu1 %v8242_v31 }
 0x309   : > { %v8751_v29 = vld [vmem:[%s10274_s14 + $0x13f0] sm:$0xf0] }
 0x30a   : > { %v9468_v35 = vld [vmem:[%s10274_s14 + $0xd94] sm:$0xf]  ;;  %v8754_v45 = vor.u32 %v9668_v27, %v8751_v29  ;;  %4985 = vmatpush.bf16.msra.mxu2 %v8498_v32 }
 0x30b   : > { %v7951_v38 = vld [vmem:[%s10274_s14 + $0xdb0] sm:$0xf0] }
 0x30c   : > { %v9532_v41 = vld [vmem:[%s10274_s14 + $0xf94] sm:$0xf]  ;;  %v7954_v53 = vor.u32 %v9468_v35, %v7951_v38  ;;  %4998 = vmatpush.bf16.msra.mxu3 %v8754_v45 }
 0x30d   : > { %v8207_v46 = vld [vmem:[%s10274_s14 + $0xfb0] sm:$0xf0] }
 0x30e   : > { %v9596_v47 = vld [vmem:[%s10274_s14 + $0x1194] sm:$0xf]  ;;  %v8210_v55 = vor.u32 %v9532_v41, %v8207_v46  ;;  %4960 = vmatpush.bf16.msra.mxu0 %v7954_v53 }
 0x30f   : > { %v8463_v49 = vld [vmem:[%s10274_s14 + $0x11b0] sm:$0xf0] }
 0x310   : > { %v9660_v4 = vld [vmem:[%s10274_s14 + $0x1394] sm:$0xf]  ;;  %v8466_v56 = vor.u32 %v9596_v47, %v8463_v49  ;;  %4973 = vmatpush.bf16.msra.mxu1 %v8210_v55  ;;  %v4734_v47 = vpop.f32.mrf.mxu2  ;;  %v4747_v55 = vpop.f32.mrf.mxu3 }
 0x311   : > { %v8719_v52 = vld [vmem:[%s10274_s14 + $0x13b0] sm:$0xf0]  ;;  %v4735_v53 = vadd.f32 %v4734_v47, %v4722_v51  ;;  %v6709_v51 = vld [vmem:[%s10274_s14 + $0x3d8] sm:$0xf] }
 0x312   : > { %v9460_v57 = vld [vmem:[%s10274_s14 + $0xd54] sm:$0xf]  ;;  %v8722_v14 = vor.u32 %v9660_v4, %v8719_v52  ;;  %4986 = vmatpush.bf16.msra.mxu2 %v8466_v56 }
 0x313   : > { %v7919_v9 = vld [vmem:[%s10274_s14 + $0xd70] sm:$0xf0] }
 0x314   : > { %v9524_v58 = vld [vmem:[%s10274_s14 + $0xf54] sm:$0xf]  ;;  %v7922_v0 = vor.u32 %v9460_v57, %v7919_v9  ;;  %4999 = vmatpush.bf16.msra.mxu3 %v8722_v14  ;;  %v4710_v9 = vpop.f32.mrf.mxu0  ;;  %v4723_v14 = vpop.f32.mrf.mxu1 }
 0x315   : > { %v8175_v59 = vld [vmem:[%s10274_s14 + $0xf70] sm:$0xf0]  ;;  %v7189_v9 = vld [vmem:[%s10274_s14 + $0x798] sm:$0xf] }
 0x316   : > { %v9588_v60 = vld [vmem:[%s10274_s14 + $0x1154] sm:$0xf]  ;;  %v8178_v54 = vor.u32 %v9524_v58, %v8175_v59  ;;  %4961 = vmatpush.bf16.msra.mxu0 %v7922_v0  ;;  %v11361_v59 = vadd.f32 %v4747_v55, %v4735_v53  ;;  %v9153_v55 = vld [vmem:[%s10274_s14 + $0x3b4] sm:$0xf0] }
 0x317   : > { %v8431_v61 = vld [vmem:[%s10274_s14 + $0x1170] sm:$0xf0] }
 0x318   : > { %v9652_v62 = vld [vmem:[%s10274_s14 + $0x1354] sm:$0xf]  ;;  %v8434_v1 = vor.u32 %v9588_v60, %v8431_v61  ;;  %4974 = vmatpush.bf16.msra.mxu1 %v8178_v54 }
 0x319   : > { %v8687_v63 = vld [vmem:[%s10274_s14 + $0x1370] sm:$0xf0] }
 0x31a   : > { %v9452_v2 = vld [vmem:[%s10274_s14 + $0xd14] sm:$0xf]  ;;  %v8690_v6 = vor.u32 %v9652_v62, %v8687_v63  ;;  %4987 = vmatpush.bf16.msra.mxu2 %v8434_v1 }
 0x31b   : > { %v7887_v3 = vld [vmem:[%s10274_s14 + $0xd30] sm:$0xf0] }
 0x31c   : > { %v9516_v5 = vld [vmem:[%s10274_s14 + $0xf14] sm:$0xf]  ;;  %v7890_v16 = vor.u32 %v9452_v2, %v7887_v3  ;;  %5000 = vmatpush.bf16.msra.mxu3 %v8690_v6 }
 0x31d   : > { %v8143_v7 = vld [vmem:[%s10274_s14 + $0xf30] sm:$0xf0] }
 0x31e   : > { %v9580_v8 = vld [vmem:[%s10274_s14 + $0x1114] sm:$0xf]  ;;  %v8146_v19 = vor.u32 %v9516_v5, %v8143_v7  ;;  %4962 = vmatpush.bf16.msra.mxu0 %v7890_v16 }
 0x31f   : > { %v8399_v28 = vld [vmem:[%s10274_s14 + $0x1130] sm:$0xf0] }
 0x320   : > { %v9644_v11 = vld [vmem:[%s10274_s14 + $0x1314] sm:$0xf]  ;;  %v8402_v22 = vor.u32 %v9580_v8, %v8399_v28  ;;  %4975 = vmatpush.bf16.msra.mxu1 %v8146_v19 }
 0x321   : > { %v8655_v12 = vld [vmem:[%s10274_s14 + $0x1330] sm:$0xf0] }
 0x322   : > { %v9444_v23 = vld [vmem:[%s10274_s14 + $0xcd4] sm:$0xf]  ;;  %v8658_v26 = vor.u32 %v9644_v11, %v8655_v12  ;;  %4988 = vmatpush.bf16.msra.mxu2 %v8402_v22 }
 0x323   : > { %v7855_v24 = vld [vmem:[%s10274_s14 + $0xcf0] sm:$0xf0] }
 0x324   : > { %v9508_v25 = vld [vmem:[%s10274_s14 + $0xed4] sm:$0xf]  ;;  %v7858_v31 = vor.u32 %v9444_v23, %v7855_v24  ;;  %5001 = vmatpush.bf16.msra.mxu3 %v8658_v26  ;;  %v4736_v24 = vpop.f32.mrf.mxu2  ;;  %v9097_v26 = vld [vmem:[%s10274_s14 + $0x1f4] sm:$0xf0] }
 0x325   : > { %v8111_v27 = vld [vmem:[%s10274_s14 + $0xef0] sm:$0xf0]  ;;  %v7125_v24 = vld [vmem:[%s10274_s14 + $0x718] sm:$0xf] }
 0x326   : > { %v9572_v29 = vld [vmem:[%s10274_s14 + $0x10d4] sm:$0xf]  ;;  %v8114_v32 = vor.u32 %v9508_v25, %v8111_v27  ;;  %4963 = vmatpush.bf16.msra.mxu0 %v7858_v31  ;;  %v6453_v25 = vld [vmem:[%s10274_s14 + $0x1d8] sm:$0xf]  ;;  %v4749_v27 = vpop.f32.mrf.mxu3 }
 0x327   : > { %v8367_v50 = vld [vmem:[%s10274_s14 + $0x10f0] sm:$0xf0] }
 0x328   : > { %v9636_v33 = vld [vmem:[%s10274_s14 + $0x12d4] sm:$0xf]  ;;  %v8370_v35 = vor.u32 %v9572_v29, %v8367_v50  ;;  %4976 = vmatpush.bf16.msra.mxu1 %v8114_v32  ;;  %v9161_v50 = vld [vmem:[%s10274_s14 + $0x3f4] sm:$0xf0] }
 0x329   : > { %v8623_v30 = vld [vmem:[%s10274_s14 + $0x12f0] sm:$0xf0] }
 0x32a   : > { %v9436_v38 = vld [vmem:[%s10274_s14 + $0xc94] sm:$0xf]  ;;  %v8626_v46 = vor.u32 %v9636_v33, %v8623_v30  ;;  %4989 = vmatpush.bf16.msra.mxu2 %v8370_v35  ;;  %v6965_v33 = vld [vmem:[%s10274_s14 + $0x5d8] sm:$0xf] }
 0x32b   : > { %v7823_v41 = vld [vmem:[%s10274_s14 + $0xcb0] sm:$0xf0]  ;;  %v9225_v30 = vld [vmem:[%s10274_s14 + $0x5f4] sm:$0xf0] }
 0x32c   : > { %v9500_v45 = vld [vmem:[%s10274_s14 + $0xe94] sm:$0xf]  ;;  %v7826_v58 = vor.u32 %v9436_v38, %v7823_v41  ;;  %5002 = vmatpush.bf16.msra.mxu3 %v8626_v46  ;;  %v7221_v35 = vld [vmem:[%s10274_s14 + $0x7d8] sm:$0xf]  ;;  %v6710_v46 = vor.u32 %v9161_v50, %v6709_v51  ;;  %v6966_v47 = vor.u32 %v9225_v30, %v6965_v33  ;;  %v4760_v51 = vpop.f32.mrf.mxu0 }
 0x32d   : > { %v8079_v49 = vld [vmem:[%s10274_s14 + $0xeb0] sm:$0xf0]  ;;  %v9289_v38 = vld [vmem:[%s10274_s14 + $0x7f4] sm:$0xf0] }
 0x32e   : > { %v9564_v4 = vld [vmem:[%s10274_s14 + $0x1094] sm:$0xf]  ;;  %v8082_v60 = vor.u32 %v9500_v45, %v8079_v49  ;;  %4964 = vmatpush.bf16.msra.mxu0 %v7826_v58  ;;  %v6454_v45 = vor.u32 %v9097_v26, %v6453_v25  ;;  %v6421_v49 = vld [vmem:[%s10274_s14 + $0x198] sm:$0xf]  ;;  %v7222_v53 = vor.u32 %v9289_v38, %v7221_v35 }
 0x32f   : > { %v8335_v52 = vld [vmem:[%s10274_s14 + $0x10b0] sm:$0xf0]  ;;  %v9281_v58 = vld [vmem:[%s10274_s14 + $0x7b4] sm:$0xf0] }
 0x330   : > { %v9628_v56 = vld [vmem:[%s10274_s14 + $0x1294] sm:$0xf]  ;;  %v8338_v61 = vor.u32 %v9564_v4, %v8335_v52  ;;  %4977 = vmatpush.bf16.msra.mxu1 %v8082_v60  ;;  %v9089_v4 = vld [vmem:[%s10274_s14 + $0x1b4] sm:$0xf0] }
 0x331   : > { %v8591_v57 = vld [vmem:[%s10274_s14 + $0x12b0] sm:$0xf0]  ;;  %v6677_v52 = vld [vmem:[%s10274_s14 + $0x398] sm:$0xf]  ;;  %v6422_v14 = vor.u32 %v9089_v4, %v6421_v49 }
 0x332   : > { %v9428_v62 = vld [vmem:[%s10274_s14 + $0xc54] sm:$0xf]  ;;  %v8594_v54 = vor.u32 %v9628_v56, %v8591_v57  ;;  %4990 = vmatpush.bf16.msra.mxu2 %v8338_v61  ;;  %v6933_v56 = vld [vmem:[%s10274_s14 + $0x598] sm:$0xf]  ;;  %v6678_v60 = vor.u32 %v9153_v55, %v6677_v52 }
 0x333   : > { %v7791_v63 = vld [vmem:[%s10274_s14 + $0xc70] sm:$0xf0]  ;;  %v9217_v57 = vld [vmem:[%s10274_s14 + $0x5b4] sm:$0xf0] }
 0x334   : > { %v9492_v0 = vld [vmem:[%s10274_s14 + $0xe54] sm:$0xf]  ;;  %v7794_v7 = vor.u32 %v9428_v62, %v7791_v63  ;;  %5003 = vmatpush.bf16.msra.mxu3 %v8594_v54  ;;  %v6934_v61 = vor.u32 %v9217_v57, %v6933_v56  ;;  %v6389_v62 = vld [vmem:[%s10274_s14 + $0x158] sm:$0xf]  ;;  %v7190_v54 = vor.u32 %v9281_v58, %v7189_v9  ;;  %v4786_v9 = vpop.f32.mrf.mxu2 }
 0x335   : > { %v8047_v1 = vld [vmem:[%s10274_s14 + $0xe70] sm:$0xf0]  ;;  %v9081_v63 = vld [vmem:[%s10274_s14 + $0x174] sm:$0xf0] }
 0x336   : > { %v9556_v2 = vld [vmem:[%s10274_s14 + $0x1054] sm:$0xf]  ;;  %v8050_v10 = vor.u32 %v9492_v0, %v8047_v1  ;;  %4965 = vmatpush.bf16.msra.mxu0 %v7794_v7  ;;  %v6645_v0 = vld [vmem:[%s10274_s14 + $0x358] sm:$0xf]  ;;  %v6390_v7 = vor.u32 %v9081_v63, %v6389_v62  ;;  %v4799_v63 = vpop.f32.mrf.mxu3 }
 0x337   : > { %v8303_v3 = vld [vmem:[%s10274_s14 + $0x1070] sm:$0xf0]  ;;  %v9145_v1 = vld [vmem:[%s10274_s14 + $0x374] sm:$0xf0] }
 0x338   : > { %v9620_v5 = vld [vmem:[%s10274_s14 + $0x1254] sm:$0xf]  ;;  %v8306_v11 = vor.u32 %v9556_v2, %v8303_v3  ;;  %4978 = vmatpush.bf16.msra.mxu1 %v8050_v10  ;;  %v6901_v2 = vld [vmem:[%s10274_s14 + $0x558] sm:$0xf] }
 0x339   : > { %v8559_v6 = vld [vmem:[%s10274_s14 + $0x1270] sm:$0xf0]  ;;  %v9209_v3 = vld [vmem:[%s10274_s14 + $0x574] sm:$0xf0] }
 0x33a   : > { %v9420_v8 = vld [vmem:[%s10274_s14 + $0xc14] sm:$0xf]  ;;  %v8562_v18 = vor.u32 %v9620_v5, %v8559_v6  ;;  %4991 = vmatpush.bf16.msra.mxu2 %v8306_v11  ;;  %v7157_v5 = vld [vmem:[%s10274_s14 + $0x758] sm:$0xf]  ;;  %v6902_v10 = vor.u32 %v9209_v3, %v6901_v2  ;;  %v4762_v3 = vpop.f32.mrf.mxu0 }
 0x33b   : > { %v7759_v28 = vld [vmem:[%s10274_s14 + $0xc30] sm:$0xf0]  ;;  %v9273_v6 = vld [vmem:[%s10274_s14 + $0x774] sm:$0xf0] }
 0x33c   : > { %v9484_v12 = vld [vmem:[%s10274_s14 + $0xe14] sm:$0xf]  ;;  %v7762_v29 = vor.u32 %v9420_v8, %v7759_v28  ;;  %5004 = vmatpush.bf16.msra.mxu3 %v8562_v18  ;;  %v6357_v8 = vld [vmem:[%s10274_s14 + $0x118] sm:$0xf]  ;;  %v6646_v28 = vor.u32 %v9145_v1, %v6645_v0  ;;  %v7158_v18 = vor.u32 %v9273_v6, %v7157_v5 }
 0x33d   : > { %v8015_v13 = vld [vmem:[%s10274_s14 + $0xe30] sm:$0xf0]  ;;  %v9073_v11 = vld [vmem:[%s10274_s14 + $0x134] sm:$0xf0] }
 0x33e   : > { %v9548_v16 = vld [vmem:[%s10274_s14 + $0x1014] sm:$0xf]  ;;  %v8018_v31 = vor.u32 %v9484_v12, %v8015_v13  ;;  %4966 = vmatpush.bf16.msra.mxu0 %v7762_v29  ;;  %v6613_v12 = vld [vmem:[%s10274_s14 + $0x318] sm:$0xf]  ;;  %v11411_v13 = vld [vmem:[%s10708_s8] ss:$2 sm:$0xff]  ;;  %v6358_v26 = vor.u32 %v9073_v11, %v6357_v8 }
 0x33f   : > { %v8271_v19 = vld [vmem:[%s10274_s14 + $0x1030] sm:$0xf0]  ;;  %v9265_v25 = vld [vmem:[%s10274_s14 + $0x734] sm:$0xf0] }
 0x340   : > { %v9612_v22 = vld [vmem:[%s10274_s14 + $0x1214] sm:$0xf]  ;;  %v8274_v32 = vor.u32 %v9548_v16, %v8271_v19  ;;  %4979 = vmatpush.bf16.msra.mxu1 %v8018_v31  ;;  %v1019_v16 = vperm.slane %v11411_v13, 4  ;;  %v9137_v19 = vld [vmem:[%s10274_s14 + $0x334] sm:$0xf0]  ;;  %v7126_v35 = vor.u32 %v9265_v25, %v7125_v24 }
 0x341   : > { %v8527_v23 = vld [vmem:[%s10274_s14 + $0x1230] sm:$0xf0]  ;;  %4967 = vmatmul.bf16.vlgmr.msra.gmra.mxu0 %v10451_v34  ;;  %v6614_v27 = vor.u32 %v9137_v19, %v6613_v12  ;;  %v6325_v50 = vld [vmem:[%s10274_s14 + $0xd8] sm:$0xf] }
 0x342   : > { %v8530_v41 = vor.u32 %v9612_v22, %v8527_v23  ;;  %4992 = vmatpush.bf16.msra.mxu2 %v8274_v32  ;;  %5011 = vmatpush.bf16.msrb.mxu0 %v6454_v45  ;;  %v6869_v22 = vld [vmem:[%s10274_s14 + $0x518] sm:$0xf]  ;;  %v4761_v31 = vadd.f32 %v4760_v51, %v1019_v16  ;;  %v4773_v32 = vpop.f32.mrf.mxu1 }
 0x343   : > { %4980 = vmatmul.bf16.vlgmr.msra.gmra.mxu1 %v10457_v40  ;;  %v9201_v23 = vld [vmem:[%s10274_s14 + $0x534] sm:$0xf0] }
 0x344   : > { %5005 = vmatpush.bf16.msra.mxu3 %v8530_v41  ;;  %5024 = vmatpush.bf16.msrb.mxu1 %v6710_v46  ;;  %v6870_v29 = vor.u32 %v9201_v23, %v6869_v22  ;;  %v9065_v33 = vld [vmem:[%s10274_s14 + $0xf4] sm:$0xf0]  ;;  %v4774_v49 = vadd.f32 %v4773_v32, %v4761_v31 }
 0x345   : > { %4993 = vmatmul.bf16.vlgmr.msra.gmra.mxu2 %v10524_v17  ;;  %v6581_v30 = vld [vmem:[%s10274_s14 + $0x2d8] sm:$0xf]  ;;  %v6326_v4 = vor.u32 %v9065_v33, %v6325_v50  ;;  %v4788_v33 = vpop.f32.mrf.mxu2 }
 0x346   : > { %5037 = vmatpush.bf16.msrb.mxu2 %v6966_v47  ;;  %5012 = vmatpush.bf16.msrb.mxu0 %v6422_v14  ;;  %v9129_v38 = vld [vmem:[%s10274_s14 + $0x2f4] sm:$0xf0]  ;;  %v4787_v62 = vadd.f32 %v4786_v9, %v4774_v49 }
 0x347   : > { %5006 = vmatmul.bf16.vlgmr.msra.gmra.mxu3 %v10529_v21  ;;  %v6837_v41 = vld [vmem:[%s10274_s14 + $0x4d8] sm:$0xf]  ;;  %v6582_v52 = vor.u32 %v9129_v38, %v6581_v30  ;;  %v4801_v38 = vpop.f32.mrf.mxu3 }
 0x348   : > { %5050 = vmatpush.bf16.msrb.mxu3 %v7222_v53  ;;  %5025 = vmatpush.bf16.msrb.mxu1 %v6678_v60  ;;  %v9193_v45 = vld [vmem:[%s10274_s14 + $0x4f4] sm:$0xf0]  ;;  %v11435_v2 = vadd.f32 %v4799_v63, %v4787_v62 }
 0x349   : > { %v7093_v46 = vld [vmem:[%s10274_s14 + $0x6d8] sm:$0xf]  ;;  %v6838_v53 = vor.u32 %v9193_v45, %v6837_v41 }
 0x34a   : > { %5038 = vmatpush.bf16.msrb.mxu2 %v6934_v61  ;;  %5013 = vmatpush.bf16.msrb.mxu0 %v6390_v7  ;;  %v9257_v47 = vld [vmem:[%s10274_s14 + $0x6f4] sm:$0xf0] }
 0x34b   : > { %v6293_v55 = vld [vmem:[%s10274_s14 + $0x98] sm:$0xf]  ;;  %v7094_v58 = vor.u32 %v9257_v47, %v7093_v46 }
 0x34c   : > { %5051 = vmatpush.bf16.msrb.mxu3 %v7190_v54  ;;  %5026 = vmatpush.bf16.msrb.mxu1 %v6646_v28  ;;  %v9057_v56 = vld [vmem:[%s10274_s14 + $0xb4] sm:$0xf0] }
 0x34d   : > { %v6549_v57 = vld [vmem:[%s10274_s14 + $0x298] sm:$0xf]  ;;  %v6294_v1 = vor.u32 %v9057_v56, %v6293_v55 }
 0x34e   : > { %5039 = vmatpush.bf16.msrb.mxu2 %v6902_v10  ;;  %5014 = vmatpush.bf16.msrb.mxu0 %v6358_v26  ;;  %v9121_v14 = vld [vmem:[%s10274_s14 + $0x2b4] sm:$0xf0]  ;;  %v4775_v10 = vpop.f32.mrf.mxu1 }
 0x34f   : > { %v6805_v60 = vld [vmem:[%s10274_s14 + $0x498] sm:$0xf]  ;;  %v6550_v5 = vor.u32 %v9121_v14, %v6549_v57 }
 0x350   : > { %5052 = vmatpush.bf16.msrb.mxu3 %v7158_v18  ;;  %5027 = vmatpush.bf16.msrb.mxu1 %v6614_v27  ;;  %v9185_v61 = vld [vmem:[%s10274_s14 + $0x4b4] sm:$0xf0] }
 0x351   : > { %v7061_v0 = vld [vmem:[%s10274_s14 + $0x698] sm:$0xf]  ;;  %v6806_v6 = vor.u32 %v9185_v61, %v6805_v60 }
 0x352   : > { %5040 = vmatpush.bf16.msrb.mxu2 %v6870_v29  ;;  %v9249_v54 = vld [vmem:[%s10274_s14 + $0x6b4] sm:$0xf0]  ;;  %5015 = vmatpush.bf16.msrb.mxu0 %v6326_v4 }
 0x353   : > { %v6261_v7 = vld [vmem:[%s10274_s14 + $0x58] sm:$0xf]  ;;  %v7062_v11 = vor.u32 %v9249_v54, %v7061_v0 }
 0x354   : > { %5053 = vmatpush.bf16.msrb.mxu3 %v7126_v35  ;;  %5028 = vmatpush.bf16.msrb.mxu1 %v6582_v52  ;;  %v9049_v8 = vld [vmem:[%s10274_s14 + $0x74] sm:$0xf0] }
 0x355   : > { %v6517_v28 = vld [vmem:[%s10274_s14 + $0x258] sm:$0xf]  ;;  %v6262_v23 = vor.u32 %v9049_v8, %v6261_v7 }
 0x356   : > { %5041 = vmatpush.bf16.msrb.mxu2 %v6838_v53  ;;  %v9113_v12 = vld [vmem:[%s10274_s14 + $0x274] sm:$0xf0]  ;;  %5016 = vmatpush.bf16.msrb.mxu0 %v6294_v1 }
 0x357   : > { %v6773_v16 = vld [vmem:[%s10274_s14 + $0x458] sm:$0xf]  ;;  %v6518_v26 = vor.u32 %v9113_v12, %v6517_v28 }
 0x358   : > { %5054 = vmatpush.bf16.msrb.mxu3 %v7094_v58  ;;  %v9177_v18 = vld [vmem:[%s10274_s14 + $0x474] sm:$0xf0]  ;;  %5029 = vmatpush.bf16.msrb.mxu1 %v6550_v5 }
 0x359   : > { %v7029_v19 = vld [vmem:[%s10274_s14 + $0x658] sm:$0xf]  ;;  %v6774_v51 = vor.u32 %v9177_v18, %v6773_v16 }
 0x35a   : > { %v9241_v22 = vld [vmem:[%s10274_s14 + $0x674] sm:$0xf0]  ;;  %5042 = vmatpush.bf16.msrb.mxu2 %v6806_v6  ;;  %5017 = vmatpush.bf16.msrb.mxu0 %v6262_v23 }
 0x35b   : > { %v6229_v24 = vld [vmem:[%s10274_s14 + $0x18] sm:$0xf]  ;;  %v7030_v30 = vor.u32 %v9241_v22, %v7029_v19 }
 0x35c   : > { %v9041_v25 = vld [vmem:[%s10274_s14 + $0x34] sm:$0xf0]  ;;  %5055 = vmatpush.bf16.msrb.mxu3 %v7062_v11  ;;  %5030 = vmatpush.bf16.msrb.mxu1 %v6518_v26 }
 0x35d   : > { %v6485_v27 = vld [vmem:[%s10274_s14 + $0x218] sm:$0xf]  ;;  %v6230_v47 = vor.u32 %v9041_v25, %v6229_v24 }
 0x35e   : > { %v9105_v29 = vld [vmem:[%s10274_s14 + $0x234] sm:$0xf0]  ;;  %5043 = vmatpush.bf16.msrb.mxu2 %v6774_v51 }
 0x35f   : > { %v6741_v50 = vld [vmem:[%s10274_s14 + $0x418] sm:$0xf]  ;;  %v6486_v53 = vor.u32 %v9105_v29, %v6485_v27  ;;  %5018 = vmatpush.bf16.msrb.mxu0 %v6230_v47 }
 0x360   : > { %v9169_v31 = vld [vmem:[%s10274_s14 + $0x434] sm:$0xf0]  ;;  %5056 = vmatpush.bf16.msrb.mxu3 %v7030_v30 }
 0x361   : > { %v6997_v32 = vld [vmem:[%s10274_s14 + $0x618] sm:$0xf]  ;;  %v6742_v55 = vor.u32 %v9169_v31, %v6741_v50  ;;  %5031 = vmatpush.bf16.msrb.mxu1 %v6486_v53 }
 0x362   : > { %v9233_v35 = vld [vmem:[%s10274_s14 + $0x634] sm:$0xf0]  ;;  %5019 = vmatmul.bf16.vlgmr.msrb.gmra.mxu0 %v10407_v37 }
 0x363   : > { %v7477_v41 = vld [vmem:[%s10274_s14 + $0x9d8] sm:$0xf]  ;;  %v6998_v9 = vor.u32 %v9233_v35, %v6997_v32  ;;  %5044 = vmatpush.bf16.msrb.mxu2 %v6742_v55  ;;  %v4825_v55 = vpop.f32.mrf.mxu1 }
 0x364   : > { %v9353_v45 = vld [vmem:[%s10274_s14 + $0x9f4] sm:$0xf0]  ;;  %5032 = vmatmul.bf16.vlgmr.msrb.gmra.mxu1 %v10413_v44 }
 0x365   : > { %v7733_v46 = vld [vmem:[%s10274_s14 + $0xbd8] sm:$0xf]  ;;  %v7478_v58 = vor.u32 %v9353_v45, %v7477_v41  ;;  %5057 = vmatpush.bf16.msrb.mxu3 %v6998_v9  ;;  %v4812_v45 = vpop.f32.mrf.mxu0 }
 0x366   : > { %v9417_v49 = vld [vmem:[%s10274_s14 + $0xbf4] sm:$0xf0]  ;;  %5045 = vmatmul.bf16.vlgmr.msrb.gmra.mxu2 %v10405_v36  ;;  %v4813_v53 = vadd.f32 %v4812_v45, %v11435_v2 }
 0x367   : > { %v7989_v4 = vld [vmem:[%s10274_s14 + $0xdd8] sm:$0xf]  ;;  %v7734_v14 = vor.u32 %v9417_v49, %v7733_v46  ;;  %5063 = vmatpush.bf16.msra.mxu0 %v7478_v58 }
 0x368   : > { %v9481_v52 = vld [vmem:[%s10274_s14 + $0xdf4] sm:$0xf0]  ;;  %5058 = vmatmul.bf16.vlgmr.msrb.gmra.mxu3 %v10411_v43 }
 0x369   : > { %v8245_v56 = vld [vmem:[%s10274_s14 + $0xfd8] sm:$0xf]  ;;  %v7990_v60 = vor.u32 %v9481_v52, %v7989_v4  ;;  %5076 = vmatpush.bf16.msra.mxu1 %v7734_v14 }
 0x36a   : > { %v9545_v57 = vld [vmem:[%s10274_s14 + $0xff4] sm:$0xf0] }
 0x36b   : > { %v7445_v61 = vld [vmem:[%s10274_s14 + $0x998] sm:$0xf]  ;;  %v8246_v0 = vor.u32 %v9545_v57, %v8245_v56  ;;  %5089 = vmatpush.bf16.msra.mxu2 %v7990_v60 }
 0x36c   : > { %v9345_v62 = vld [vmem:[%s10274_s14 + $0x9b4] sm:$0xf0] }
 0x36d   : > { %v7701_v63 = vld [vmem:[%s10274_s14 + $0xb98] sm:$0xf]  ;;  %v7446_v7 = vor.u32 %v9345_v62, %v7445_v61  ;;  %5102 = vmatpush.bf16.msra.mxu3 %v8246_v0  ;;  %v4826_v61 = vadd.f32 %v4825_v55, %v4813_v53 }
 0x36e   : > { %v9409_v54 = vld [vmem:[%s10274_s14 + $0xbb4] sm:$0xf0] }
 0x36f   : > { %v7957_v1 = vld [vmem:[%s10274_s14 + $0xd98] sm:$0xf]  ;;  %v7702_v8 = vor.u32 %v9409_v54, %v7701_v63  ;;  %5064 = vmatpush.bf16.msra.mxu0 %v7446_v7 }
 0x370   : > { %v9473_v3 = vld [vmem:[%s10274_s14 + $0xdb4] sm:$0xf0] }
 0x371   : > { %v8213_v5 = vld [vmem:[%s10274_s14 + $0xf98] sm:$0xf]  ;;  %v7958_v28 = vor.u32 %v9473_v3, %v7957_v1  ;;  %5077 = vmatpush.bf16.msra.mxu1 %v7702_v8  ;;  %v4838_v3 = vpop.f32.mrf.mxu2 }
 0x372   : > { %v9537_v6 = vld [vmem:[%s10274_s14 + $0xfb4] sm:$0xf0] }
 0x373   : > { %v7413_v10 = vld [vmem:[%s10274_s14 + $0x958] sm:$0xf]  ;;  %v8214_v16 = vor.u32 %v9537_v6, %v8213_v5  ;;  %5090 = vmatpush.bf16.msra.mxu2 %v7958_v28  ;;  %v4839_v28 = vadd.f32 %v4838_v3, %v4826_v61 }
 0x374   : > { %v9337_v11 = vld [vmem:[%s10274_s14 + $0x974] sm:$0xf0] }
 0x375   : > { %v7669_v12 = vld [vmem:[%s10274_s14 + $0xb58] sm:$0xf]  ;;  %v7414_v25 = vor.u32 %v9337_v11, %v7413_v10  ;;  %5103 = vmatpush.bf16.msra.mxu3 %v8214_v16  ;;  %v4851_v10 = vpop.f32.mrf.mxu3 }
 0x376   : > { %v9401_v18 = vld [vmem:[%s10274_s14 + $0xb74] sm:$0xf0] }
 0x377   : > { %v7925_v19 = vld [vmem:[%s10274_s14 + $0xd58] sm:$0xf]  ;;  %v7670_v26 = vor.u32 %v9401_v18, %v7669_v12  ;;  %5065 = vmatpush.bf16.msra.mxu0 %v7414_v25  ;;  %v11506_v18 = vadd.f32 %v4851_v10, %v4839_v28 }
 0x378   : > { %v9465_v22 = vld [vmem:[%s10274_s14 + $0xd74] sm:$0xf0] }
 0x379   : > { %v8181_v23 = vld [vmem:[%s10274_s14 + $0xf58] sm:$0xf]  ;;  %v7926_v51 = vor.u32 %v9465_v22, %v7925_v19  ;;  %5078 = vmatpush.bf16.msra.mxu1 %v7670_v26  ;;  %v4814_v19 = vpop.f32.mrf.mxu0 }
 0x37a   : > { %v9529_v24 = vld [vmem:[%s10274_s14 + $0xf74] sm:$0xf0]  ;;  %v6423_v19 = vld [vmem:[%s10274_s14 + $0x1b8] sm:$0xf0] }
 0x37b   : > { %v7381_v27 = vld [vmem:[%s10274_s14 + $0x918] sm:$0xf]  ;;  %v8182_v33 = vor.u32 %v9529_v24, %v8181_v23  ;;  %5091 = vmatpush.bf16.msra.mxu2 %v7926_v51  ;;  %v4827_v51 = vpop.f32.mrf.mxu1 }
 0x37c   : > { %v9329_v29 = vld [vmem:[%s10274_s14 + $0x934] sm:$0xf0] }
 0x37d   : > { %v7637_v50 = vld [vmem:[%s10274_s14 + $0xb18] sm:$0xf]  ;;  %v7382_v41 = vor.u32 %v9329_v29, %v7381_v27  ;;  %5104 = vmatpush.bf16.msra.mxu3 %v8182_v33 }
 0x37e   : > { %v9393_v30 = vld [vmem:[%s10274_s14 + $0xb34] sm:$0xf0] }
 0x37f   : > { %v7893_v31 = vld [vmem:[%s10274_s14 + $0xd18] sm:$0xf]  ;;  %v7638_v46 = vor.u32 %v9393_v30, %v7637_v50  ;;  %5066 = vmatpush.bf16.msra.mxu0 %v7382_v41 }
 0x380   : > { %v9457_v32 = vld [vmem:[%s10274_s14 + $0xd34] sm:$0xf0] }
 0x381   : > { %v8149_v35 = vld [vmem:[%s10274_s14 + $0xf18] sm:$0xf]  ;;  %v7894_v47 = vor.u32 %v9457_v32, %v7893_v31  ;;  %5079 = vmatpush.bf16.msra.mxu1 %v7638_v46 }
 0x382   : > { %v9521_v38 = vld [vmem:[%s10274_s14 + $0xf34] sm:$0xf0] }
 0x383   : > { %v7349_v49 = vld [vmem:[%s10274_s14 + $0x8d8] sm:$0xf]  ;;  %v8150_v56 = vor.u32 %v9521_v38, %v8149_v35  ;;  %5092 = vmatpush.bf16.msra.mxu2 %v7894_v47 }
 0x384   : > { %v9321_v4 = vld [vmem:[%s10274_s14 + $0x8f4] sm:$0xf0] }
 0x385   : > { %v7605_v52 = vld [vmem:[%s10274_s14 + $0xad8] sm:$0xf]  ;;  %v7350_v62 = vor.u32 %v9321_v4, %v7349_v49  ;;  %5105 = vmatpush.bf16.msra.mxu3 %v8150_v56  ;;  %v4840_v4 = vpop.f32.mrf.mxu2 }
 0x386   : > { %v9385_v57 = vld [vmem:[%s10274_s14 + $0xaf4] sm:$0xf0] }
 0x387   : > { %v7861_v9 = vld [vmem:[%s10274_s14 + $0xcd8] sm:$0xf]  ;;  %v7606_v2 = vor.u32 %v9385_v57, %v7605_v52  ;;  %5067 = vmatpush.bf16.msra.mxu0 %v7350_v62  ;;  %v4853_v57 = vpop.f32.mrf.mxu3  ;;  %v9093_v62 = vld [vmem:[%s10274_s14 + $0x1dc] sm:$0xf] }
 0x388   : > { %v9449_v58 = vld [vmem:[%s10274_s14 + $0xcf4] sm:$0xf0]  ;;  %v9133_v57 = vld [vmem:[%s10274_s14 + $0x31c] sm:$0xf] }
 0x389   : > { %v8117_v14 = vld [vmem:[%s10274_s14 + $0xed8] sm:$0xf]  ;;  %v7862_v63 = vor.u32 %v9449_v58, %v7861_v9  ;;  %5080 = vmatpush.bf16.msra.mxu1 %v7606_v2  ;;  %v6455_v2 = vld [vmem:[%s10274_s14 + $0x1f8] sm:$0xf0] }
 0x38a   : > { %v9513_v60 = vld [vmem:[%s10274_s14 + $0xef4] sm:$0xf0] }
 0x38b   : > { %v7317_v0 = vld [vmem:[%s10274_s14 + $0x898] sm:$0xf]  ;;  %v8118_v5 = vor.u32 %v9513_v60, %v8117_v14  ;;  %5093 = vmatpush.bf16.msra.mxu2 %v7862_v63 }
 0x38c   : > { %v9313_v54 = vld [vmem:[%s10274_s14 + $0x8b4] sm:$0xf0] }
 0x38d   : > { %v7573_v1 = vld [vmem:[%s10274_s14 + $0xa98] sm:$0xf]  ;;  %v7318_v16 = vor.u32 %v9313_v54, %v7317_v0  ;;  %5106 = vmatpush.bf16.msra.mxu3 %v8118_v5  ;;  %v9157_v54 = vld [vmem:[%s10274_s14 + $0x3dc] sm:$0xf] }
 0x38e   : > { %v9377_v6 = vld [vmem:[%s10274_s14 + $0xab4] sm:$0xf0] }
 0x38f   : > { %v7829_v7 = vld [vmem:[%s10274_s14 + $0xc98] sm:$0xf]  ;;  %v7574_v22 = vor.u32 %v9377_v6, %v7573_v1  ;;  %5068 = vmatpush.bf16.msra.mxu0 %v7318_v16  ;;  %v6711_v1 = vld [vmem:[%s10274_s14 + $0x3f8] sm:$0xf0] }
 0x390   : > { %v9441_v8 = vld [vmem:[%s10274_s14 + $0xcb4] sm:$0xf0]  ;;  %v9085_v16 = vld [vmem:[%s10274_s14 + $0x19c] sm:$0xf] }
 0x391   : > { %v8085_v11 = vld [vmem:[%s10274_s14 + $0xe98] sm:$0xf]  ;;  %v7830_v23 = vor.u32 %v9441_v8, %v7829_v7  ;;  %5081 = vmatpush.bf16.msra.mxu1 %v7574_v22  ;;  %v6458_v7 = vor.u32 %v9093_v62, %v6455_v2  ;;  %v9149_v22 = vld [vmem:[%s10274_s14 + $0x39c] sm:$0xf] }
 0x392   : > { %v9505_v12 = vld [vmem:[%s10274_s14 + $0xeb4] sm:$0xf0] }
 0x393   : > { %v7285_v24 = vld [vmem:[%s10274_s14 + $0x858] sm:$0xf]  ;;  %v8086_v27 = vor.u32 %v9505_v12, %v8085_v11  ;;  %5094 = vmatpush.bf16.msra.mxu2 %v7830_v23  ;;  %v6714_v11 = vor.u32 %v9157_v54, %v6711_v1  ;;  %v6679_v23 = vld [vmem:[%s10274_s14 + $0x3b8] sm:$0xf0] }
 0x394   : > { %v9305_v25 = vld [vmem:[%s10274_s14 + $0x874] sm:$0xf0] }
 0x395   : > { %v7541_v26 = vld [vmem:[%s10274_s14 + $0xa58] sm:$0xf]  ;;  %v7286_v32 = vor.u32 %v9305_v25, %v7285_v24  ;;  %5107 = vmatpush.bf16.msra.mxu3 %v8086_v27 }
 0x396   : > { %v9369_v29 = vld [vmem:[%s10274_s14 + $0xa74] sm:$0xf0] }
 0x397   : > { %v7797_v50 = vld [vmem:[%s10274_s14 + $0xc58] sm:$0xf]  ;;  %v7542_v41 = vor.u32 %v9369_v29, %v7541_v26  ;;  %5069 = vmatpush.bf16.msra.mxu0 %v7286_v32  ;;  %v6426_v26 = vor.u32 %v9085_v16, %v6423_v19  ;;  %v9141_v32 = vld [vmem:[%s10274_s14 + $0x35c] sm:$0xf] }
 0x398   : > { %v9433_v33 = vld [vmem:[%s10274_s14 + $0xc74] sm:$0xf0] }
 0x399   : > { %v8053_v30 = vld [vmem:[%s10274_s14 + $0xe58] sm:$0xf]  ;;  %v7798_v45 = vor.u32 %v9433_v33, %v7797_v50  ;;  %5082 = vmatpush.bf16.msra.mxu1 %v7542_v41  ;;  %v6682_v50 = vor.u32 %v9149_v22, %v6679_v23 }
 0x39a   : > { %v9497_v31 = vld [vmem:[%s10274_s14 + $0xe74] sm:$0xf0] }
 0x39b   : > { %v7253_v35 = vld [vmem:[%s10274_s14 + $0x818] sm:$0xf]  ;;  %v8054_v52 = vor.u32 %v9497_v31, %v8053_v30  ;;  %5095 = vmatpush.bf16.msra.mxu2 %v7798_v45  ;;  %v9077_v30 = vld [vmem:[%s10274_s14 + $0x15c] sm:$0xf] }
 0x39c   : > { %v9297_v38 = vld [vmem:[%s10274_s14 + $0x834] sm:$0xf0]  ;;  %v6391_v31 = vld [vmem:[%s10274_s14 + $0x178] sm:$0xf0] }
 0x39d   : > { %v7509_v46 = vld [vmem:[%s10274_s14 + $0xa18] sm:$0xf]  ;;  %v7254_v60 = vor.u32 %v9297_v38, %v7253_v35  ;;  %5108 = vmatpush.bf16.msra.mxu3 %v8054_v52  ;;  %v6647_v35 = vld [vmem:[%s10274_s14 + $0x378] sm:$0xf0]  ;;  %v6394_v45 = vor.u32 %v9077_v30, %v6391_v31 }
 0x39e   : > { %v9361_v47 = vld [vmem:[%s10274_s14 + $0xa34] sm:$0xf0]  ;;  %v6650_v4 = vor.u32 %v9141_v32, %v6647_v35 }
 0x39f   : > { %v7765_v49 = vld [vmem:[%s10274_s14 + $0xc18] sm:$0xf]  ;;  %v7510_v63 = vor.u32 %v9361_v47, %v7509_v46  ;;  %5070 = vmatpush.bf16.msra.mxu0 %v7254_v60  ;;  %v4877_v60 = vpop.f32.mrf.mxu1 }
 0x3a0   : > { %v9425_v53 = vld [vmem:[%s10274_s14 + $0xc34] sm:$0xf0] }
 0x3a1   : > { %v8021_v55 = vld [vmem:[%s10274_s14 + $0xe18] sm:$0xf]  ;;  %v7766_v0 = vor.u32 %v9425_v53, %v7765_v49  ;;  %5083 = vmatpush.bf16.msra.mxu1 %v7510_v63  ;;  %v9069_v53 = vld [vmem:[%s10274_s14 + $0x11c] sm:$0xf] }
 0x3a2   : > { %v9489_v56 = vld [vmem:[%s10274_s14 + $0xe34] sm:$0xf0]  ;;  %5071 = vmatmul.bf16.vlgmr.msra.gmra.mxu0 %v10455_v39 }
 0x3a3   : > { %v8501_v9 = vld [vmem:[%s10274_s14 + $0x11d8] sm:$0xf]  ;;  %v8022_v3 = vor.u32 %v9489_v56, %v8021_v55  ;;  %5096 = vmatpush.bf16.msra.mxu2 %v7766_v0  ;;  %v6359_v55 = vld [vmem:[%s10274_s14 + $0x138] sm:$0xf0]  ;;  %v4864_v56 = vpop.f32.mrf.mxu0 }
 0x3a4   : > { %v9609_v58 = vld [vmem:[%s10274_s14 + $0x11f4] sm:$0xf0]  ;;  %5084 = vmatmul.bf16.vlgmr.msra.gmra.mxu1 %v10459_v42  ;;  %v6362_v62 = vor.u32 %v9069_v53, %v6359_v55  ;;  %v6519_v53 = vld [vmem:[%s10274_s14 + $0x278] sm:$0xf0] }
 0x3a5   : > { %v8757_v14 = vld [vmem:[%s10274_s14 + $0x13d8] sm:$0xf]  ;;  %v8502_v5 = vor.u32 %v9609_v58, %v8501_v9  ;;  %5109 = vmatpush.bf16.msra.mxu3 %v8022_v3  ;;  %v6615_v9 = vld [vmem:[%s10274_s14 + $0x338] sm:$0xf0]  ;;  %v4865_v58 = vadd.f32 %v4864_v56, %v11506_v18 }
 0x3a6   : > { %v9673_v61 = vld [vmem:[%s10274_s14 + $0x13f4] sm:$0xf0]  ;;  %5097 = vmatmul.bf16.vlgmr.msra.gmra.mxu2 %v10451_v34  ;;  %v6618_v54 = vor.u32 %v9133_v57, %v6615_v9  ;;  %v9061_v18 = vld [vmem:[%s10274_s14 + $0xdc] sm:$0xf] }
 0x3a7   : > { %v8758_v6 = vor.u32 %v9673_v61, %v8757_v14  ;;  %v8469_v8 = vld [vmem:[%s10274_s14 + $0x1198] sm:$0xf]  ;;  %5115 = vmatpush.bf16.msrb.mxu0 %v8502_v5  ;;  %5141 = vmatpush.bf16.msrb.mxu2 %v6458_v7  ;;  %v11564_v1 = vadd.f32 %v4877_v60, %v4865_v58  ;;  %v6327_v5 = vld [vmem:[%s10274_s14 + $0xf8] sm:$0xf0]  ;;  %v4879_v30 = vpop.f32.mrf.mxu1 }
 0x3a8   : > { %v9601_v28 = vld [vmem:[%s10274_s14 + $0x11b4] sm:$0xf0]  ;;  %5110 = vmatmul.bf16.vlgmr.msra.gmra.mxu3 %v10457_v40  ;;  %v6583_v7 = vld [vmem:[%s10274_s14 + $0x2f8] sm:$0xf0] }
 0x3a9   : > { %v8725_v10 = vld [vmem:[%s10274_s14 + $0x1398] sm:$0xf]  ;;  %v8470_v24 = vor.u32 %v9601_v28, %v8469_v8  ;;  %5128 = vmatpush.bf16.msrb.mxu1 %v8758_v6  ;;  %5154 = vmatpush.bf16.msrb.mxu3 %v6714_v11  ;;  %v9125_v6 = vld [vmem:[%s10274_s14 + $0x2dc] sm:$0xf]  ;;  %v1020_v8 = vperm.slane %v11411_v13, 5  ;;  %v6330_v11 = vor.u32 %v9061_v18, %v6327_v5  ;;  %v4890_v13 = vpop.f32.mrf.mxu2 }
 0x3aa   : > { %v9665_v12 = vld [vmem:[%s10274_s14 + $0x13b4] sm:$0xf0]  ;;  %v6586_v22 = vor.u32 %v9125_v6, %v6583_v7  ;;  %v6967_v18 = vld [vmem:[%s10274_s14 + $0x5f8] sm:$0xf0] }
 0x3ab   : > { %v8726_v25 = vor.u32 %v9665_v12, %v8725_v10  ;;  %v8437_v51 = vld [vmem:[%s10274_s14 + $0x1158] sm:$0xf]  ;;  %5116 = vmatpush.bf16.msrb.mxu0 %v8470_v24  ;;  %5142 = vmatpush.bf16.msrb.mxu2 %v6426_v26  ;;  %v9053_v24 = vld [vmem:[%s10274_s14 + $0x9c] sm:$0xf] }
 0x3ac   : > { %v9593_v27 = vld [vmem:[%s10274_s14 + $0x1174] sm:$0xf0]  ;;  %v9117_v26 = vld [vmem:[%s10274_s14 + $0x29c] sm:$0xf] }
 0x3ad   : > { %v8693_v29 = vld [vmem:[%s10274_s14 + $0x1358] sm:$0xf]  ;;  %v8438_v38 = vor.u32 %v9593_v27, %v8437_v51  ;;  %5129 = vmatpush.bf16.msrb.mxu1 %v8726_v25  ;;  %5155 = vmatpush.bf16.msrb.mxu3 %v6682_v50  ;;  %v6295_v25 = vld [vmem:[%s10274_s14 + $0xb8] sm:$0xf0]  ;;  %v4891_v27 = vadd.f32 %v4890_v13, %v1020_v8  ;;  %v4866_v50 = vpop.f32.mrf.mxu0 }
 0x3ae   : > { %v9657_v33 = vld [vmem:[%s10274_s14 + $0x1374] sm:$0xf0]  ;;  %v6551_v51 = vld [vmem:[%s10274_s14 + $0x2b8] sm:$0xf0]  ;;  %v6298_v32 = vor.u32 %v9053_v24, %v6295_v25 }
 0x3af   : > { %v8694_v41 = vor.u32 %v9657_v33, %v8693_v29  ;;  %v8405_v46 = vld [vmem:[%s10274_s14 + $0x1118] sm:$0xf]  ;;  %5117 = vmatpush.bf16.msrb.mxu0 %v8438_v38  ;;  %5143 = vmatpush.bf16.msrb.mxu2 %v6394_v45  ;;  %v4903_v29 = vpop.f32.mrf.mxu3  ;;  %v9285_v5 = vld [vmem:[%s10274_s14 + $0x7dc] sm:$0xf] }
 0x3b0   : > { %v9585_v47 = vld [vmem:[%s10274_s14 + $0x1134] sm:$0xf0]  ;;  %v11583_v45 = vadd.f32 %v4903_v29, %v4891_v27  ;;  %v7223_v8 = vld [vmem:[%s10274_s14 + $0x7f8] sm:$0xf0] }
 0x3b1   : > { %v8661_v49 = vld [vmem:[%s10274_s14 + $0x1318] sm:$0xf]  ;;  %v8406_v14 = vor.u32 %v9585_v47, %v8405_v46  ;;  %5130 = vmatpush.bf16.msrb.mxu1 %v8694_v41  ;;  %5156 = vmatpush.bf16.msrb.mxu3 %v6650_v4  ;;  %v6554_v46 = vor.u32 %v9117_v26, %v6551_v51  ;;  %v6263_v4 = vld [vmem:[%s10274_s14 + $0x78] sm:$0xf0]  ;;  %v7226_v24 = vor.u32 %v9285_v5, %v7223_v8 }
 0x3b2   : > { %v9649_v52 = vld [vmem:[%s10274_s14 + $0x1334] sm:$0xf0]  ;;  %v9213_v13 = vld [vmem:[%s10274_s14 + $0x59c] sm:$0xf] }
 0x3b3   : > { %v8662_v61 = vor.u32 %v9649_v52, %v8661_v49  ;;  %v8373_v2 = vld [vmem:[%s10274_s14 + $0x10d8] sm:$0xf]  ;;  %5118 = vmatpush.bf16.msrb.mxu0 %v8406_v14  ;;  %5144 = vmatpush.bf16.msrb.mxu2 %v6362_v62  ;;  %v9045_v49 = vld [vmem:[%s10274_s14 + $0x5c] sm:$0xf] }
 0x3b4   : > { %v9577_v63 = vld [vmem:[%s10274_s14 + $0x10f4] sm:$0xf0]  ;;  %v9109_v52 = vld [vmem:[%s10274_s14 + $0x25c] sm:$0xf]  ;;  %v6266_v58 = vor.u32 %v9045_v49, %v6263_v4 }
 0x3b5   : > { %v8629_v0 = vld [vmem:[%s10274_s14 + $0x12d8] sm:$0xf]  ;;  %v8374_v28 = vor.u32 %v9577_v63, %v8373_v2  ;;  %5131 = vmatpush.bf16.msrb.mxu1 %v8662_v61  ;;  %5157 = vmatpush.bf16.msrb.mxu3 %v6618_v54  ;;  %v9037_v61 = vld [vmem:[%s10274_s14 + $0x1c] sm:$0xf]  ;;  %v6522_v62 = vor.u32 %v9109_v52, %v6519_v53  ;;  %v4892_v54 = vpop.f32.mrf.mxu2 }
 0x3b6   : > { %v9641_v3 = vld [vmem:[%s10274_s14 + $0x12f4] sm:$0xf0]  ;;  %v6231_v2 = vld [vmem:[%s10274_s14 + $0x38] sm:$0xf0] }
 0x3b7   : > { %v8630_v10 = vor.u32 %v9641_v3, %v8629_v0  ;;  %v8341_v12 = vld [vmem:[%s10274_s14 + $0x1098] sm:$0xf]  ;;  %5119 = vmatpush.bf16.msrb.mxu0 %v8374_v28  ;;  %5145 = vmatpush.bf16.msrb.mxu2 %v6330_v11  ;;  %v9101_v63 = vld [vmem:[%s10274_s14 + $0x21c] sm:$0xf]  ;;  %v4905_v6 = vpop.f32.mrf.mxu3 }
 0x3b8   : > { %v9569_v16 = vld [vmem:[%s10274_s14 + $0x10b4] sm:$0xf0]  ;;  %v6487_v0 = vld [vmem:[%s10274_s14 + $0x238] sm:$0xf0] }
 0x3b9   : > { %v8597_v19 = vld [vmem:[%s10274_s14 + $0x1298] sm:$0xf]  ;;  %v8342_v33 = vor.u32 %v9569_v16, %v8341_v12  ;;  %5132 = vmatpush.bf16.msrb.mxu1 %v8630_v10  ;;  %5158 = vmatpush.bf16.msrb.mxu3 %v6586_v22  ;;  %v9221_v3 = vld [vmem:[%s10274_s14 + $0x5dc] sm:$0xf]  ;;  %v6234_v12 = vor.u32 %v9037_v61, %v6231_v2  ;;  %v6490_v22 = vor.u32 %v9101_v63, %v6487_v0 }
 0x3ba   : > { %v9633_v23 = vld [vmem:[%s10274_s14 + $0x12b4] sm:$0xf0]  ;;  %v9349_v28 = vld [vmem:[%s10274_s14 + $0x9dc] sm:$0xf] }
 0x3bb   : > { %v8598_v31 = vor.u32 %v9633_v23, %v8597_v19  ;;  %v8309_v35 = vld [vmem:[%s10274_s14 + $0x1058] sm:$0xf]  ;;  %5120 = vmatpush.bf16.msrb.mxu0 %v8342_v33  ;;  %5146 = vmatpush.bf16.msrb.mxu2 %v6298_v32  ;;  %v7479_v10 = vld [vmem:[%s10274_s14 + $0x9f8] sm:$0xf0]  ;;  %v6970_v23 = vor.u32 %v9221_v3, %v6967_v18  ;;  %v4916_v3 = vpop.f32.mrf.mxu0 }
 0x3bc   : > { %v9561_v38 = vld [vmem:[%s10274_s14 + $0x1074] sm:$0xf0]  ;;  %v9413_v16 = vld [vmem:[%s10274_s14 + $0xbdc] sm:$0xf]  ;;  %v7482_v25 = vor.u32 %v9349_v28, %v7479_v10  ;;  %v4917_v28 = vadd.f32 %v4916_v3, %v11583_v45  ;;  %v4929_v10 = vpop.f32.mrf.mxu1 }
 0x3bd   : > { %v8565_v41 = vld [vmem:[%s10274_s14 + $0x1258] sm:$0xf]  ;;  %v8310_v55 = vor.u32 %v9561_v38, %v8309_v35  ;;  %5133 = vmatpush.bf16.msrb.mxu1 %v8598_v31  ;;  %5159 = vmatpush.bf16.msrb.mxu3 %v6554_v46  ;;  %v7735_v19 = vld [vmem:[%s10274_s14 + $0xbf8] sm:$0xf0] }
 0x3be   : > { %v9625_v47 = vld [vmem:[%s10274_s14 + $0x1274] sm:$0xf0]  ;;  %v6935_v26 = vld [vmem:[%s10274_s14 + $0x5b8] sm:$0xf0]  ;;  %v7738_v27 = vor.u32 %v9413_v16, %v7735_v19 }
 0x3bf   : > { %v8277_v56 = vld [vmem:[%s10274_s14 + $0x1018] sm:$0xf]  ;;  %v8566_v9 = vor.u32 %v9625_v47, %v8565_v41  ;;  %5121 = vmatpush.bf16.msrb.mxu0 %v8310_v55  ;;  %5147 = vmatpush.bf16.msrb.mxu2 %v6266_v58  ;;  %v9277_v51 = vld [vmem:[%s10274_s14 + $0x79c] sm:$0xf]  ;;  %v6938_v32 = vor.u32 %v9213_v13, %v6935_v26 }
 0x3c0   : > { %v9553_v57 = vld [vmem:[%s10274_s14 + $0x1034] sm:$0xf0]  ;;  %v7191_v29 = vld [vmem:[%s10274_s14 + $0x7b8] sm:$0xf0] }
 0x3c1   : > { %v8533_v14 = vld [vmem:[%s10274_s14 + $0x1218] sm:$0xf]  ;;  %v8278_v7 = vor.u32 %v9553_v57, %v8277_v56  ;;  %5134 = vmatpush.bf16.msrb.mxu1 %v8566_v9  ;;  %5160 = vmatpush.bf16.msrb.mxu3 %v6522_v62  ;;  %v9341_v50 = vld [vmem:[%s10274_s14 + $0x99c] sm:$0xf]  ;;  %v7194_v35 = vor.u32 %v9277_v51, %v7191_v29  ;;  %v4942_v29 = vpop.f32.mrf.mxu2 }
 0x3c2   : > { %v9617_v60 = vld [vmem:[%s10274_s14 + $0x1234] sm:$0xf0]  ;;  %v7447_v33 = vld [vmem:[%s10274_s14 + $0x9b8] sm:$0xf0] }
 0x3c3   : > { %v8534_v11 = vor.u32 %v9617_v60, %v8533_v14  ;;  %5122 = vmatpush.bf16.msrb.mxu0 %v8278_v7  ;;  %5148 = vmatpush.bf16.msrb.mxu2 %v6234_v12  ;;  %v9405_v30 = vld [vmem:[%s10274_s14 + $0xb9c] sm:$0xf]  ;;  %v7450_v38 = vor.u32 %v9341_v50, %v7447_v33 }
 0x3c4   : > { %v7703_v31 = vld [vmem:[%s10274_s14 + $0xbb8] sm:$0xf0] }
 0x3c5   : > { %5135 = vmatpush.bf16.msrb.mxu1 %v8534_v11  ;;  %5161 = vmatpush.bf16.msrb.mxu3 %v6490_v22  ;;  %v9205_v41 = vld [vmem:[%s10274_s14 + $0x55c] sm:$0xf]  ;;  %v7706_v49 = vor.u32 %v9405_v30, %v7703_v31 }
 0x3c6   : > { %v6903_v46 = vld [vmem:[%s10274_s14 + $0x578] sm:$0xf0]  ;;  %5123 = vmatmul.bf16.vlgmr.msrb.gmra.mxu0 %v10524_v17  ;;  %5149 = vmatmul.bf16.vlgmr.msrb.gmra.mxu2 %v10407_v37 }
 0x3c7   : > { %5167 = vmatpush.bf16.msra.mxu0 %v6970_v23  ;;  %5193 = vmatpush.bf16.msra.mxu2 %v7482_v25  ;;  %v9269_v47 = vld [vmem:[%s10274_s14 + $0x75c] sm:$0xf]  ;;  %v6906_v57 = vor.u32 %v9205_v41, %v6903_v46 }
 0x3c8   : > { %v7159_v4 = vld [vmem:[%s10274_s14 + $0x778] sm:$0xf0]  ;;  %5136 = vmatmul.bf16.vlgmr.msrb.gmra.mxu1 %v10529_v21  ;;  %5162 = vmatmul.bf16.vlgmr.msrb.gmra.mxu3 %v10413_v44 }
 0x3c9   : > { %5180 = vmatpush.bf16.msra.mxu1 %v7226_v24  ;;  %5206 = vmatpush.bf16.msra.mxu3 %v7738_v27  ;;  %v9333_v52 = vld [vmem:[%s10274_s14 + $0x95c] sm:$0xf]  ;;  %v7162_v9 = vor.u32 %v9269_v47, %v7159_v4  ;;  %v4930_v24 = vadd.f32 %v4929_v10, %v4917_v28 }
 0x3ca   : > { %v7415_v53 = vld [vmem:[%s10274_s14 + $0x978] sm:$0xf0] }
 0x3cb   : > { %v9397_v55 = vld [vmem:[%s10274_s14 + $0xb5c] sm:$0xf]  ;;  %5168 = vmatpush.bf16.msra.mxu0 %v6938_v32  ;;  %5194 = vmatpush.bf16.msra.mxu2 %v7450_v38  ;;  %v7418_v58 = vor.u32 %v9333_v52, %v7415_v53  ;;  %v4943_v32 = vadd.f32 %v4942_v29, %v4930_v24 }
 0x3cc   : > { %v7671_v56 = vld [vmem:[%s10274_s14 + $0xb78] sm:$0xf0] }
 0x3cd   : > { %5181 = vmatpush.bf16.msra.mxu1 %v7194_v35  ;;  %v9197_v14 = vld [vmem:[%s10274_s14 + $0x51c] sm:$0xf]  ;;  %5207 = vmatpush.bf16.msra.mxu3 %v7706_v49  ;;  %v7674_v62 = vor.u32 %v9397_v55, %v7671_v56  ;;  %v4955_v35 = vpop.f32.mrf.mxu3  ;;  %v4918_v49 = vpop.f32.mrf.mxu0 }
 0x3ce   : > { %v6871_v60 = vld [vmem:[%s10274_s14 + $0x538] sm:$0xf0]  ;;  %v11651_v47 = vadd.f32 %v4955_v35, %v4943_v32 }
 0x3cf   : > { %v9261_v61 = vld [vmem:[%s10274_s14 + $0x71c] sm:$0xf]  ;;  %5169 = vmatpush.bf16.msra.mxu0 %v6906_v57  ;;  %v6874_v44 = vor.u32 %v9197_v14, %v6871_v60  ;;  %5195 = vmatpush.bf16.msra.mxu2 %v7418_v58  ;;  %v4931_v57 = vpop.f32.mrf.mxu1 }
 0x3d0   : > { %v7127_v2 = vld [vmem:[%s10274_s14 + $0x738] sm:$0xf0] }
 0x3d1   : > { %v9325_v37 = vld [vmem:[%s10274_s14 + $0x91c] sm:$0xf]  ;;  %5182 = vmatpush.bf16.msra.mxu1 %v7162_v9  ;;  %v7130_v18 = vor.u32 %v9261_v61, %v7127_v2  ;;  %5208 = vmatpush.bf16.msra.mxu3 %v7674_v62 }
 0x3d2   : > { %v7383_v63 = vld [vmem:[%s10274_s14 + $0x938] sm:$0xf0] }
 0x3d3   : > { %v9389_v0 = vld [vmem:[%s10274_s14 + $0xb1c] sm:$0xf]  ;;  %v7386_v5 = vor.u32 %v9325_v37, %v7383_v63  ;;  %5170 = vmatpush.bf16.msra.mxu0 %v6874_v44 }
 0x3d4   : > { %v7639_v54 = vld [vmem:[%s10274_s14 + $0xb38] sm:$0xf0] }
 0x3d5   : > { %v9189_v6 = vld [vmem:[%s10274_s14 + $0x4dc] sm:$0xf]  ;;  %v7642_v11 = vor.u32 %v9389_v0, %v7639_v54  ;;  %5183 = vmatpush.bf16.msra.mxu1 %v7130_v18  ;;  %5196 = vmatpush.bf16.msra.mxu2 %v7386_v5  ;;  %v4944_v5 = vpop.f32.mrf.mxu2  ;;  %v4957_v10 = vpop.f32.mrf.mxu3 }
 0x3d6   : > { %v6839_v7 = vld [vmem:[%s10274_s14 + $0x4f8] sm:$0xf0] }
 0x3d7   : > { %v9253_v8 = vld [vmem:[%s10274_s14 + $0x6dc] sm:$0xf]  ;;  %v6842_v25 = vor.u32 %v9189_v6, %v6839_v7  ;;  %5209 = vmatpush.bf16.msra.mxu3 %v7642_v11 }
 0x3d8   : > { %v7095_v12 = vld [vmem:[%s10274_s14 + $0x6f8] sm:$0xf0] }
 0x3d9   : > { %v9317_v16 = vld [vmem:[%s10274_s14 + $0x8dc] sm:$0xf]  ;;  %v7098_v45 = vor.u32 %v9253_v8, %v7095_v12  ;;  %5171 = vmatpush.bf16.msra.mxu0 %v6842_v25 }
 0x3da   : > { %v7351_v19 = vld [vmem:[%s10274_s14 + $0x8f8] sm:$0xf0] }
 0x3db   : > { %v9381_v22 = vld [vmem:[%s10274_s14 + $0xadc] sm:$0xf]  ;;  %v7354_v13 = vor.u32 %v9317_v16, %v7351_v19  ;;  %5184 = vmatpush.bf16.msra.mxu1 %v7098_v45 }
 0x3dc   : > { %v7607_v23 = vld [vmem:[%s10274_s14 + $0xaf8] sm:$0xf0] }
 0x3dd   : > { %v9181_v26 = vld [vmem:[%s10274_s14 + $0x49c] sm:$0xf]  ;;  %v7610_v50 = vor.u32 %v9381_v22, %v7607_v23  ;;  %5197 = vmatpush.bf16.msra.mxu2 %v7354_v13 }
 0x3de   : > { %v6807_v51 = vld [vmem:[%s10274_s14 + $0x4b8] sm:$0xf0] }
 0x3df   : > { %v9245_v27 = vld [vmem:[%s10274_s14 + $0x69c] sm:$0xf]  ;;  %v6810_v46 = vor.u32 %v9181_v26, %v6807_v51  ;;  %5210 = vmatpush.bf16.msra.mxu3 %v7610_v50 }
 0x3e0   : > { %v7063_v33 = vld [vmem:[%s10274_s14 + $0x6b8] sm:$0xf0] }
 0x3e1   : > { %v9309_v30 = vld [vmem:[%s10274_s14 + $0x89c] sm:$0xf]  ;;  %v7066_v4 = vor.u32 %v9245_v27, %v7063_v33  ;;  %5172 = vmatpush.bf16.msra.mxu0 %v6810_v46 }
 0x3e2   : > { %v7319_v31 = vld [vmem:[%s10274_s14 + $0x8b8] sm:$0xf0] }
 0x3e3   : > { %v9373_v38 = vld [vmem:[%s10274_s14 + $0xa9c] sm:$0xf]  ;;  %v7322_v52 = vor.u32 %v9309_v30, %v7319_v31  ;;  %5185 = vmatpush.bf16.msra.mxu1 %v7066_v4 }
 0x3e4   : > { %v7575_v41 = vld [vmem:[%s10274_s14 + $0xab8] sm:$0xf0] }
 0x3e5   : > { %v9173_v53 = vld [vmem:[%s10274_s14 + $0x45c] sm:$0xf]  ;;  %v7578_v9 = vor.u32 %v9373_v38, %v7575_v41  ;;  %5198 = vmatpush.bf16.msra.mxu2 %v7322_v52 }
 0x3e6   : > { %v6775_v55 = vld [vmem:[%s10274_s14 + $0x478] sm:$0xf0] }
 0x3e7   : > { %v9237_v56 = vld [vmem:[%s10274_s14 + $0x65c] sm:$0xf]  ;;  %v6778_v2 = vor.u32 %v9173_v53, %v6775_v55  ;;  %5211 = vmatpush.bf16.msra.mxu3 %v7578_v9 }
 0x3e8   : > { %v7031_v58 = vld [vmem:[%s10274_s14 + $0x678] sm:$0xf0] }
 0x3e9   : > { %v9301_v14 = vld [vmem:[%s10274_s14 + $0x85c] sm:$0xf]  ;;  %v7034_v0 = vor.u32 %v9237_v56, %v7031_v58  ;;  %5173 = vmatpush.bf16.msra.mxu0 %v6778_v2  ;;  %v8763_v2 = vmul.f32 -1.442695, %v10842_v48 }
 0x3ea   : > { %v7287_v60 = vld [vmem:[%s10274_s14 + $0x878] sm:$0xf0] }
 0x3eb   : > { %v9365_v61 = vld [vmem:[%s10274_s14 + $0xa5c] sm:$0xf]  ;;  %v7290_v54 = vor.u32 %v9301_v14, %v7287_v60  ;;  %5186 = vmatpush.bf16.msra.mxu1 %v7034_v0  ;;  %9829 = vpow2.f32 %v8763_v2 }
 0x3ec   : > { %v7543_v62 = vld [vmem:[%s10274_s14 + $0xa78] sm:$0xf0] }
 0x3ed   : > { %v9165_v37 = vld [vmem:[%s10274_s14 + $0x41c] sm:$0xf]  ;;  %v7546_v6 = vor.u32 %v9365_v61, %v7543_v62  ;;  %5199 = vmatpush.bf16.msra.mxu2 %v7290_v54 }
 0x3ee   : > { %v6743_v63 = vld [vmem:[%s10274_s14 + $0x438] sm:$0xf0] }
 0x3ef   : > { %v9229_v44 = vld [vmem:[%s10274_s14 + $0x61c] sm:$0xf]  ;;  %v6746_v19 = vor.u32 %v9165_v37, %v6743_v63  ;;  %5212 = vmatpush.bf16.msra.mxu3 %v7546_v6  ;;  %v8764_v37 = vmul.f32 -1.442695, %v11000_v15 }
 0x3f0   : > { %v6999_v3 = vld [vmem:[%s10274_s14 + $0x638] sm:$0xf0] }
 0x3f1   : > { %v9293_v18 = vld [vmem:[%s10274_s14 + $0x81c] sm:$0xf]  ;;  %v7002_v25 = vor.u32 %v9229_v44, %v6999_v3  ;;  %5174 = vmatpush.bf16.msra.mxu0 %v6746_v19  ;;  %9831 = vpow2.f32 %v8764_v37 }
 0x3f2   : > { %v7255_v7 = vld [vmem:[%s10274_s14 + $0x838] sm:$0xf0] }
 0x3f3   : > { %v9357_v8 = vld [vmem:[%s10274_s14 + $0xa1c] sm:$0xf]  ;;  %v7258_v45 = vor.u32 %v9293_v18, %v7255_v7  ;;  %5187 = vmatpush.bf16.msra.mxu1 %v7002_v25  ;;  %v8766_v7 = vmul.f32 -1.442695, %v11361_v59 }
 0x3f4   : > { %v7511_v28 = vld [vmem:[%s10274_s14 + $0xa38] sm:$0xf0]  ;;  %5175 = vmatmul.bf16.vlgmr.msra.gmra.mxu0 %v10405_v36 }
 0x3f5   : > { %v9477_v11 = vld [vmem:[%s10274_s14 + $0xddc] sm:$0xf]  ;;  %v7514_v51 = vor.u32 %v9357_v8, %v7511_v28  ;;  %5200 = vmatpush.bf16.msra.mxu2 %v7258_v45  ;;  %v11707_v8 = vpop.f32.mrf.mxu0 }
 0x3f6   : > { %v7991_v12 = vld [vmem:[%s10274_s14 + $0xdf8] sm:$0xf0]  ;;  %5188 = vmatmul.bf16.vlgmr.msra.gmra.mxu1 %v10411_v43 }
 0x3f7   : > { %v9541_v16 = vld [vmem:[%s10274_s14 + $0xfdc] sm:$0xf]  ;;  %v7994_v27 = vor.u32 %v9477_v11, %v7991_v12  ;;  %5213 = vmatpush.bf16.msra.mxu3 %v7514_v51  ;;  %v11711_v11 = vpop.f32.mrf.mxu1 }
 0x3f8   : > { %v8247_v22 = vld [vmem:[%s10274_s14 + $0xff8] sm:$0xf0]  ;;  %5201 = vmatmul.bf16.vlgmr.msra.gmra.mxu2 %v10455_v39  ;;  %v8765_v39 = vmul.f32 -1.442695, %v11203_v20 }
 0x3f9   : > { %v9605_v23 = vld [vmem:[%s10274_s14 + $0x11dc] sm:$0xf]  ;;  %v8250_v29 = vor.u32 %v9541_v16, %v8247_v22  ;;  %5219 = vmatpush.bf16.msrb.mxu0 %v7994_v27 }
 0x3fa   : > { %v8503_v24 = vld [vmem:[%s10274_s14 + $0x11f8] sm:$0xf0]  ;;  %5214 = vmatmul.bf16.vlgmr.msra.gmra.mxu3 %v10459_v42  ;;  %9833 = vpow2.f32 %v8765_v39 }
 0x3fb   : > { %v9669_v13 = vld [vmem:[%s10274_s14 + $0x13dc] sm:$0xf]  ;;  %v8506_v50 = vor.u32 %v9605_v23, %v8503_v24  ;;  %5232 = vmatpush.bf16.msrb.mxu1 %v8250_v29  ;;  %9835 = vpow2.f32 %v8766_v7 }
 0x3fc   : > { %v8759_v26 = vld [vmem:[%s10274_s14 + $0x13f8] sm:$0xf0] }
 0x3fd   : > { %v9469_v33 = vld [vmem:[%s10274_s14 + $0xd9c] sm:$0xf]  ;;  %v8762_v32 = vor.u32 %v9669_v13, %v8759_v26  ;;  %5245 = vmatpush.bf16.msrb.mxu2 %v8506_v50 }
 0x3fe   : > { %v7959_v30 = vld [vmem:[%s10274_s14 + $0xdb8] sm:$0xf0] }
 0x3ff   : > { %v9533_v31 = vld [vmem:[%s10274_s14 + $0xf9c] sm:$0xf]  ;;  %v7962_v4 = vor.u32 %v9469_v33, %v7959_v30  ;;  %5258 = vmatpush.bf16.msrb.mxu3 %v8762_v32  ;;  %v9830_v32 = vpop.eup %9829 }
 0x400   : > { %v8215_v35 = vld [vmem:[%s10274_s14 + $0xfb8] sm:$0xf0] }
 0x401   : > { %v9597_v38 = vld [vmem:[%s10274_s14 + $0x119c] sm:$0xf]  ;;  %v8218_v52 = vor.u32 %v9533_v31, %v8215_v35  ;;  %5220 = vmatpush.bf16.msrb.mxu0 %v7962_v4  ;;  %v9832_v4 = vpop.eup %9831 }
 0x402   : > { %v8471_v41 = vld [vmem:[%s10274_s14 + $0x11b8] sm:$0xf0] }
 0x403   : > { %v9661_v46 = vld [vmem:[%s10274_s14 + $0x139c] sm:$0xf]  ;;  %v8474_v53 = vor.u32 %v9597_v38, %v8471_v41  ;;  %5233 = vmatpush.bf16.msrb.mxu1 %v8218_v52  ;;  %v11724_v38 = vpop.f32.mrf.mxu2  ;;  %v11729_v52 = vpop.f32.mrf.mxu3 }
 0x404   : > { %v8727_v49 = vld [vmem:[%s10274_s14 + $0x13b8] sm:$0xf0] }
 0x405   : > { %v9461_v55 = vld [vmem:[%s10274_s14 + $0xd5c] sm:$0xf]  ;;  %v8730_v9 = vor.u32 %v9661_v46, %v8727_v49  ;;  %5246 = vmatpush.bf16.msrb.mxu2 %v8474_v53 }
 0x406   : > { %v7927_v56 = vld [vmem:[%s10274_s14 + $0xd78] sm:$0xf0] }
 0x407   : > { %v9525_v57 = vld [vmem:[%s10274_s14 + $0xf5c] sm:$0xf]  ;;  %v7930_v63 = vor.u32 %v9461_v55, %v7927_v56  ;;  %5259 = vmatpush.bf16.msrb.mxu3 %v8730_v9  ;;  %v4970_v56 = vpop.f32.mrf.mxu0 }
 0x408   : > { %v8183_v58 = vld [vmem:[%s10274_s14 + $0xf78] sm:$0xf0] }
 0x409   : > { %v9589_v14 = vld [vmem:[%s10274_s14 + $0x115c] sm:$0xf]  ;;  %v8186_v36 = vor.u32 %v9525_v57, %v8183_v58  ;;  %5221 = vmatpush.bf16.msrb.mxu0 %v7930_v63  ;;  %v9834_v57 = vpop.eup %9833  ;;  %v4983_v58 = vpop.f32.mrf.mxu1 }
 0x40a   : > { %v8439_v60 = vld [vmem:[%s10274_s14 + $0x1178] sm:$0xf0] }
 0x40b   : > { %v9653_v61 = vld [vmem:[%s10274_s14 + $0x135c] sm:$0xf]  ;;  %v8442_v0 = vor.u32 %v9589_v14, %v8439_v60  ;;  %5234 = vmatpush.bf16.msrb.mxu1 %v8186_v36  ;;  %v9836_v14 = vpop.eup %9835 }
 0x40c   : > { %v8695_v62 = vld [vmem:[%s10274_s14 + $0x1378] sm:$0xf0] }
 0x40d   : > { %v9453_v42 = vld [vmem:[%s10274_s14 + $0xd1c] sm:$0xf]  ;;  %v8698_v3 = vor.u32 %v9653_v61, %v8695_v62  ;;  %5247 = vmatpush.bf16.msrb.mxu2 %v8442_v0 }
 0x40e   : > { %v7895_v54 = vld [vmem:[%s10274_s14 + $0xd38] sm:$0xf0] }
 0x40f   : > { %v9517_v44 = vld [vmem:[%s10274_s14 + $0xf1c] sm:$0xf]  ;;  %v7898_v10 = vor.u32 %v9453_v42, %v7895_v54  ;;  %5260 = vmatpush.bf16.msrb.mxu3 %v8698_v3  ;;  %v11739_v42 = vadd.f32 1.0, %v9830_v32  ;;  %v11743_v3 = vadd.f32 1.0, %v9832_v4  ;;  %v9697_v4 = vld [vmem:[%s10285_s17 + $0xb0] sm:$0xff] }
 0x410   : > { %v8151_v18 = vld [vmem:[%s10274_s14 + $0xf38] sm:$0xf0] }
 0x411   : > { %v9581_v5 = vld [vmem:[%s10274_s14 + $0x111c] sm:$0xf]  ;;  %v8154_v12 = vor.u32 %v9517_v44, %v8151_v18  ;;  %5222 = vmatpush.bf16.msrb.mxu0 %v7898_v10  ;;  %v11745_v18 = vadd.f32 1.0, %v9834_v57  ;;  %9837 = vrcp.f32 %v11739_v42  ;;  %vm5308_vm0 = vweird.f32 %v11739_v42 }
 0x412   : > { %v8407_v6 = vld [vmem:[%s10274_s14 + $0x1138] sm:$0xf0]  ;;  %9839 = vrcp.f32 %v11743_v3  ;;  %vm5323_vm3 = vweird.f32 %v11743_v3 }
 0x413   : > { %v9645_v43 = vld [vmem:[%s10274_s14 + $0x131c] sm:$0xf]  ;;  %v8410_v16 = vor.u32 %v9581_v5, %v8407_v6  ;;  %5235 = vmatpush.bf16.msrb.mxu1 %v8154_v12  ;;  %v11747_v5 = vadd.f32 1.0, %v9836_v14  ;;  %9841 = vrcp.f32 %v11745_v18  ;;  %vm5338_vm8 = vweird.f32 %v11745_v18 }
 0x414   : > { %v8663_v28 = vld [vmem:[%s10274_s14 + $0x1338] sm:$0xf0] }
 0x415   : > { %v9445_v19 = vld [vmem:[%s10274_s14 + $0xcdc] sm:$0xf]  ;;  %v8666_v24 = vor.u32 %v9645_v43, %v8663_v28  ;;  %5248 = vmatpush.bf16.msrb.mxu2 %v8410_v16  ;;  %9843 = vrcp.f32 %v11747_v5  ;;  %vm5353_vm11 = vweird.f32 %v11747_v5 }
 0x416   : > { %v7863_v22 = vld [vmem:[%s10274_s14 + $0xcf8] sm:$0xf0] }
 0x417   : > { %v9509_v23 = vld [vmem:[%s10274_s14 + $0xedc] sm:$0xf]  ;;  %v7866_v27 = vor.u32 %v9445_v19, %v7863_v22  ;;  %5261 = vmatpush.bf16.msrb.mxu3 %v8666_v24  ;;  %v4996_v24 = vpop.f32.mrf.mxu2  ;;  %v11768_v32 = vpop.eup %9837 }
 0x418   : > { %v8119_v25 = vld [vmem:[%s10274_s14 + $0xef8] sm:$0xf0]  ;;  %vm5309_vm1 = vweird.f32 %v11768_v32  ;;  %v5312_v24 = vand.u32 2147483647, %v11739_v42 }
 0x419   : > { %v9573_v45 = vld [vmem:[%s10274_s14 + $0x10dc] sm:$0xf]  ;;  %v8122_v29 = vor.u32 %v9509_v23, %v8119_v25  ;;  %5223 = vmatpush.bf16.msrb.mxu0 %v7866_v27  ;;  %vm11837_vm5 = vmor %vm5308_vm0, %vm5309_vm1 }
 0x41a   : > { %v8375_v13 = vld [vmem:[%s10274_s14 + $0x10f8] sm:$0xf0]  ;;  %vm11863_vm9 = vcmp.eq.f32.partialorder %v5312_v24, 8.507059e+37 }
 0x41b   : > { %v9637_v26 = vld [vmem:[%s10274_s14 + $0x12dc] sm:$0xf]  ;;  %v8378_v50 = vor.u32 %v9573_v45, %v8375_v13  ;;  %5236 = vmatpush.bf16.msrb.mxu1 %v8122_v29  ;;  %v5009_v13 = vpop.f32.mrf.mxu3 }
 0x41c   : > { %v8631_v51 = vld [vmem:[%s10274_s14 + $0x12f8] sm:$0xf0] }
 0x41d   : > { %v9437_v33 = vld [vmem:[%s10274_s14 + $0xc9c] sm:$0xf]  ;;  %v8634_v35 = vor.u32 %v9637_v26, %v8631_v51  ;;  %5249 = vmatpush.bf16.msrb.mxu2 %v8378_v50  ;;  %v4969_v26 = vadd.f32 %v11707_v8, %v11651_v47  ;;  %v9706_v8 = vld [vmem:[%s10285_s17 + $0xf8] sm:$0xff] }
 0x41e   : > { %v7831_v30 = vld [vmem:[%s10274_s14 + $0xcb8] sm:$0xf0] }
 0x41f   : > { %v9501_v31 = vld [vmem:[%s10274_s14 + $0xe9c] sm:$0xf]  ;;  %v7834_v9 = vor.u32 %v9437_v33, %v7831_v30  ;;  %5262 = vmatpush.bf16.msrb.mxu3 %v8634_v35  ;;  %v9682_v33 = vld [vmem:[%s10285_s17 + $0x38] sm:$0xff]  ;;  %v4982_v47 = vadd.f32 %v11711_v11, %v4969_v26  ;;  %v11770_v35 = vpop.eup %9839  ;;  %v9689_v11 = vld [vmem:[%s10285_s17 + $0x70] sm:$0xff] }
 0x420   : > { %v8087_v41 = vld [vmem:[%s10274_s14 + $0xeb8] sm:$0xf0]  ;;  %v9690_v30 = vld [vmem:[%s10285_s17 + $0x78] sm:$0xff]  ;;  %v5319_v56 = vmul.f32 %v11770_v35, %v11743_v3  ;;  %vm5324_vm2 = vweird.f32 %v11770_v35  ;;  %v9677_v26 = vld [vmem:[%s10285_s17 + $0x10] sm:$0xff] }
 0x421   : > { %v9565_v46 = vld [vmem:[%s10274_s14 + $0x109c] sm:$0xf]  ;;  %v8090_v60 = vor.u32 %v9501_v31, %v8087_v41  ;;  %5224 = vmatpush.bf16.msrb.mxu0 %v7834_v9  ;;  %v9698_v31 = vld [vmem:[%s10285_s17 + $0xb8] sm:$0xff]  ;;  %v4995_v41 = vadd.f32 %v11724_v38, %v4982_v47  ;;  %v5304_v38 = vmul.f32 %v11768_v32, %v11739_v42  ;;  %v9693_v47 = vld [vmem:[%s10285_s17 + $0x90] sm:$0xff] }
 0x422   : > { %v8343_v49 = vld [vmem:[%s10274_s14 + $0x10b8] sm:$0xf0]  ;;  %vm11851_vm7 = vmor %vm5323_vm3, %vm5324_vm2 }
 0x423   : > { %v9629_v53 = vld [vmem:[%s10274_s14 + $0x129c] sm:$0xf]  ;;  %v8346_v61 = vor.u32 %v9565_v46, %v8343_v49  ;;  %5237 = vmatpush.bf16.msrb.mxu1 %v8090_v60  ;;  %v9681_v46 = vld [vmem:[%s10285_s17 + $0x30] sm:$0xff]  ;;  %v11774_v49 = vpop.eup %9841  ;;  %v11791_v9 = vadd.f32 %v11729_v52, %v4995_v41  ;;  %v5305_v60 = vsub.f32 1.0, %v5304_v38  ;;  %v8767_v52 = vmul.f32 -1.442695, %v11564_v1 }
 0x424   : > { %v8599_v55 = vld [vmem:[%s10274_s14 + $0x12b8] sm:$0xf0]  ;;  %v5334_v57 = vmul.f32 %v11774_v49, %v11745_v18  ;;  %vm5339_vm4 = vweird.f32 %v11774_v49 }
 0x425   : > { %v9429_v62 = vld [vmem:[%s10274_s14 + $0xc5c] sm:$0xf]  ;;  %v8602_v39 = vor.u32 %v9629_v53, %v8599_v55  ;;  %5250 = vmatpush.bf16.msrb.mxu2 %v8346_v61  ;;  %v11778_v53 = vpop.eup %9843  ;;  %v9705_v55 = vld [vmem:[%s10285_s17 + $0xf0] sm:$0xff]  ;;  %v5320_v61 = vsub.f32 1.0, %v5319_v56  ;;  %9845 = vpow2.f32 %v8767_v52  ;;  %vm11869_vm10 = vmor %vm5338_vm8, %vm5339_vm4 }
 0x426   : > { %v7799_v2 = vld [vmem:[%s10274_s14 + $0xc78] sm:$0xf0]  ;;  %v5349_v58 = vmul.f32 %v11778_v53, %v11747_v5  ;;  %vm5354_vm6 = vweird.f32 %v11778_v53  ;;  %v9718_v56 = vld [vmem:[%s10285_s17 + $0x158] sm:$0xff] }
 0x427   : > { %v9493_v37 = vld [vmem:[%s10274_s14 + $0xe5c] sm:$0xf]  ;;  %v7802_v6 = vor.u32 %v9429_v62, %v7799_v2  ;;  %5263 = vmatpush.bf16.msrb.mxu3 %v8602_v39  ;;  %v8768_v62 = vmul.f32 -1.442695, %v11791_v9  ;;  %v9679_v2 = vld [vmem:[%s10285_s17 + $0x20] sm:$0xff]  ;;  %vm11883_vm12 = vmor %vm5353_vm11, %vm5354_vm6 }
 0x428   : > { %v8055_v63 = vld [vmem:[%s10274_s14 + $0xe78] sm:$0xf0]  ;;  %v5350_v39 = vsub.f32 1.0, %v5349_v58  ;;  %v9709_v58 = vld [vmem:[%s10285_s17 + $0x110] sm:$0xff] }
 0x429   : > { %v9557_v36 = vld [vmem:[%s10274_s14 + $0x105c] sm:$0xf]  ;;  %v8058_v7 = vor.u32 %v9493_v37, %v8055_v63  ;;  %5225 = vmatpush.bf16.msrb.mxu0 %v7802_v6  ;;  %v11803_v37 = vpop.f32.mrf.mxu0  ;;  %v9687_v63 = vld [vmem:[%s10285_s17 + $0x60] sm:$0xff]  ;;  %v5321_v6 = vmul.f32 %v11770_v35, %v5320_v61  ;;  %9847 = vpow2.f32 %v8768_v62 }
 0x42a   : > { %v8311_v0 = vld [vmem:[%s10274_s14 + $0x1078] sm:$0xf0] }
 0x42b   : > { %v9621_v54 = vld [vmem:[%s10274_s14 + $0x125c] sm:$0xf]  ;;  %v8314_v43 = vor.u32 %v9557_v36, %v8311_v0  ;;  %5238 = vmatpush.bf16.msrb.mxu1 %v8058_v7  ;;  %v9695_v36 = vld [vmem:[%s10285_s17 + $0xa0] sm:$0xff]  ;;  %v11807_v0 = vpop.f32.mrf.mxu1 }
 0x42c   : > { %v8567_v44 = vld [vmem:[%s10274_s14 + $0x1278] sm:$0xf0] }
 0x42d   : > { %v9421_v28 = vld [vmem:[%s10274_s14 + $0xc1c] sm:$0xf]  ;;  %v8570_v16 = vor.u32 %v9621_v54, %v8567_v44  ;;  %5251 = vmatpush.bf16.msrb.mxu2 %v8314_v43  ;;  %v9703_v54 = vld [vmem:[%s10285_s17 + $0xe0] sm:$0xff]  ;;  %v5306_v44 = vmul.f32 %v11768_v32, %v5305_v60  ;;  %v9678_v43 = vld [vmem:[%s10285_s17 + $0x18] sm:$0xff] }
 0x42e   : > { %v7767_v10 = vld [vmem:[%s10274_s14 + $0xc38] sm:$0xf0] }
 0x42f   : > { %v9485_v12 = vld [vmem:[%s10274_s14 + $0xe1c] sm:$0xf]  ;;  %v7770_v51 = vor.u32 %v9421_v28, %v7767_v10  ;;  %5264 = vmatpush.bf16.msrb.mxu3 %v8570_v16  ;;  %v5351_v28 = vmul.f32 %v11778_v53, %v5350_v39  ;;  %v9686_v10 = vld [vmem:[%s10285_s17 + $0x58] sm:$0xff]  ;;  %v11817_v16 = vpop.f32.mrf.mxu2 }
 0x430   : > { %v8023_v19 = vld [vmem:[%s10274_s14 + $0xe38] sm:$0xf0] }
 0x431   : > { %v9549_v22 = vld [vmem:[%s10274_s14 + $0x101c] sm:$0xf]  ;;  %v8026_v27 = vor.u32 %v9485_v12, %v8023_v19  ;;  %5226 = vmatpush.bf16.msrb.mxu0 %v7770_v51  ;;  %v9694_v12 = vld [vmem:[%s10285_s17 + $0x98] sm:$0xff]  ;;  %v5022_v51 = vpop.f32.mrf.mxu0 }
 0x432   : > { %v8279_v23 = vld [vmem:[%s10274_s14 + $0x1038] sm:$0xf0]  ;;  %v9702_v19 = vld [vmem:[%s10285_s17 + $0xd8] sm:$0xff] }
 0x433   : > { %v9613_v25 = vld [vmem:[%s10274_s14 + $0x121c] sm:$0xf]  ;;  %v8282_v29 = vor.u32 %v9549_v22, %v8279_v23  ;;  %5239 = vmatpush.bf16.msrb.mxu1 %v8026_v27  ;;  %v11822_v22 = vpop.f32.mrf.mxu3  ;;  %v5307_v23 = vadd.f32 %v11768_v32, %v5306_v44  ;;  %v9846_v27 = vpop.eup %9845 }
 0x434   : > { %v8535_v45 = vld [vmem:[%s10274_s14 + $0x1238] sm:$0xf0]  ;;  %5227 = vmatmul.bf16.vlgmr.msrb.gmra.mxu0 %v10451_v34  ;;  %v9848_v41 = vpop.eup %9847 }
 0x435   : > { %v8538_v50 = vor.u32 %v9613_v25, %v8535_v45  ;;  %5252 = vmatpush.bf16.msrb.mxu2 %v8282_v29  ;;  %5952 = vmatpush.bf16.msra.mxu0 %v9682_v33  ;;  %v9680_v34 = vld [vmem:[%s10285_s17 + $0x28] sm:$0xff]  ;;  %v5314_v25 = vand.u32 2147483648, %v11739_v42  ;;  %v5322_v45 = vadd.f32 %v11770_v35, %v5321_v6  ;;  %v5344_v33 = vand.u32 2147483648, %v11745_v18  ;;  %v9683_v6 = vld [vmem:[%s10285_s17 + $0x40] sm:$0xff] }
 0x436   : > { %5240 = vmatmul.bf16.vlgmr.msrb.gmra.mxu1 %v10457_v40  ;;  %v9688_v40 = vld [vmem:[%s10285_s17 + $0x68] sm:$0xff]  ;;  %v5311_v38 = vsel %vm11837_vm5, %v11768_v32, %v5307_v23  ;;  %v11893_v60 = vadd.f32 1.0, %v9848_v41  ;;  %v9722_v23 = vld [vmem:[%s10285_s17 + $0x178] sm:$0xff]  ;;  %v9719_v42 = vld [vmem:[%s10285_s17 + $0x160] sm:$0xff] }
 0x437   : > { %5265 = vmatpush.bf16.msrb.mxu3 %v8538_v50  ;;  %5965 = vmatpush.bf16.msra.mxu1 %v9690_v30  ;;  %v9704_v14 = vld [vmem:[%s10285_s17 + $0xe8] sm:$0xff]  ;;  %v5329_v50 = vand.u32 2147483648, %v11743_v3  ;;  %v5352_v30 = vadd.f32 %v11778_v53, %v5351_v28  ;;  %v5326_v32 = vsel %vm11851_vm7, %v11770_v35, %v5322_v45  ;;  %v5048_v61 = vpop.f32.mrf.mxu2 }
 0x438   : > { %5253 = vmatmul.bf16.vlgmr.msrb.gmra.mxu2 %v10524_v17  ;;  %v9696_v17 = vld [vmem:[%s10285_s17 + $0xa8] sm:$0xff]  ;;  %vm5383_vm4 = vweird.f32 %v11893_v60  ;;  %v9738_v61 = vld [vmem:[%s10285_s17 + $0x1f8] sm:$0xff] }
 0x439   : > { %5978 = vmatpush.bf16.msra.mxu2 %v9698_v31  ;;  %5953 = vmatpush.bf16.msra.mxu0 %v9681_v46  ;;  %v9685_v31 = vld [vmem:[%s10285_s17 + $0x50] sm:$0xff]  ;;  %v5327_v46 = vand.u32 2147483647, %v11743_v3  ;;  %v5356_v35 = vsel %vm11883_vm12, %v11778_v53, %v5352_v30  ;;  %v9692_v52 = vld [vmem:[%s10285_s17 + $0x88] sm:$0xff]  ;;  %v5072_v41 = vpop.f32.mrf.mxu0 }
 0x43a   : > { %5266 = vmatmul.bf16.vlgmr.msrb.gmra.mxu3 %v10529_v21  ;;  %v5335_v21 = vsub.f32 1.0, %v5334_v57  ;;  %v5315_v57 = vor.u32 1.1754944e-38, %v5314_v25 }
 0x43b   : > { %5991 = vmatpush.bf16.msra.mxu3 %v9706_v8  ;;  %5966 = vmatpush.bf16.msra.mxu1 %v9689_v11  ;;  %v5035_v8 = vpop.f32.mrf.mxu1  ;;  %v5342_v11 = vand.u32 2147483647, %v11745_v18  ;;  %v5357_v18 = vand.u32 2147483647, %v11747_v5  ;;  %vm5328_vm13 = vcmp.eq.f32.partialorder %v5327_v46, 8.507059e+37  ;;  %v5061_v39 = vpop.f32.mrf.mxu3 }
 0x43c   : > { %v5336_v7 = vmul.f32 %v11774_v49, %v5335_v21  ;;  %v5316_v21 = vsel %vm11863_vm9, %v5315_v57, %v5311_v38  ;;  %v9711_v8 = vld [vmem:[%s10285_s17 + $0x120] sm:$0xff]  ;;  %v9710_v38 = vld [vmem:[%s10285_s17 + $0x118] sm:$0xff] }
 0x43d   : > { %5979 = vmatpush.bf16.msra.mxu2 %v9697_v4  ;;  %5954 = vmatpush.bf16.msra.mxu0 %v9680_v34  ;;  %v5359_v4 = vand.u32 2147483648, %v11747_v5  ;;  %v9676_v5 = vld [vmem:[%s10285_s17 + $0x8] sm:$0xff]  ;;  %vm5343_vm14 = vcmp.eq.f32.partialorder %v5342_v11, 8.507059e+37  ;;  %vm5358_vm15 = vcmp.eq.f32.partialorder %v5357_v18, 8.507059e+37  ;;  %v5423_v44 = vmul.f32 %v5316_v21, %v10842_v48  ;;  %v9730_v18 = vld [vmem:[%s10285_s17 + $0x1b8] sm:$0xff]  ;;  %v9737_v21 = vld [vmem:[%s10285_s17 + $0x1f0] sm:$0xff] }
 0x43e   : > { %v5337_v13 = vadd.f32 %v11774_v49, %v5336_v7  ;;  %v9691_v7 = vld [vmem:[%s10285_s17 + $0x80] sm:$0xff] }
 0x43f   : > { %5992 = vmatpush.bf16.msra.mxu3 %v9705_v55  ;;  %5967 = vmatpush.bf16.msra.mxu1 %v9688_v40  ;;  %v9701_v55 = vld [vmem:[%s10285_s17 + $0xd0] sm:$0xff]  ;;  %v11887_v40 = vadd.f32 1.0, %v9846_v27  ;;  %v5360_v62 = vor.u32 1.1754944e-38, %v5359_v4  ;;  %v5432_v48 = vpack.c.bf16 %v5423_v44, %v5423_v44  ;;  %v5098_v3 = vpop.f32.mrf.mxu2 }
 0x440   : > { %v5341_v34 = vsel %vm11869_vm10, %v11774_v49, %v5337_v13  ;;  %v9684_v49 = vld [vmem:[%s10285_s17 + $0x48] sm:$0xff]  ;;  %v11923_v27 = vld [vmem:[%s10708_s8] ss:$2 sm:$0xff] }
 0x441   : > { %5980 = vmatpush.bf16.msra.mxu2 %v9696_v17  ;;  %5955 = vmatpush.bf16.msra.mxu0 %v9679_v2  ;;  %v5330_v17 = vor.u32 1.1754944e-38, %v5329_v50  ;;  %v9700_v2 = vld [vmem:[%s10285_s17 + $0xc8] sm:$0xff]  ;;  %9849 = vrcp.f32 %v11887_v40  ;;  %v1021_v29 = vperm.slane %v11923_v27, 6  ;;  %vm5368_vm2 = vweird.f32 %v11887_v40 }
 0x442   : > { %9851 = vrcp.f32 %v11893_v60  ;;  %v9712_v50 = vld [vmem:[%s10285_s17 + $0x128] sm:$0xff] }
 0x443   : > { %5993 = vmatpush.bf16.msra.mxu3 %v9704_v14  ;;  %5968 = vmatpush.bf16.msra.mxu1 %v9687_v63  ;;  %v5345_v14 = vor.u32 1.1754944e-38, %v5344_v33  ;;  %v5331_v53 = vsel %vm5328_vm13, %v5330_v17, %v5326_v32  ;;  %v9720_v33 = vld [vmem:[%s10285_s17 + $0x168] sm:$0xff]  ;;  %v5085_v46 = vpop.f32.mrf.mxu1  ;;  %v5374_v32 = vand.u32 2147483648, %v11887_v40  ;;  %v5372_v17 = vand.u32 2147483647, %v11887_v40 }
 0x445   : > { %5981 = vmatpush.bf16.msra.mxu2 %v9695_v36  ;;  %5956 = vmatpush.bf16.msra.mxu0 %v9678_v43  ;;  %v5346_v63 = vsel %vm5343_vm14, %v5345_v14, %v5341_v34  ;;  %v5361_v36 = vsel %vm5358_vm15, %v5360_v62, %v5356_v35  ;;  %v5424_v43 = vmul.f32 %v5331_v53, %v11000_v15  ;;  %v9713_v15 = vld [vmem:[%s10285_s17 + $0x130] sm:$0xff]  ;;  %v5389_v14 = vand.u32 2147483648, %v11893_v60 }
 0x446   : > { %v5425_v28 = vmul.f32 %v5346_v63, %v11203_v20  ;;  %v9717_v35 = vld [vmem:[%s10285_s17 + $0x150] sm:$0xff]  ;;  %v5375_v62 = vor.u32 1.1754944e-38, %v5374_v32  ;;  %vm5373_vm6 = vcmp.eq.f32.partialorder %v5372_v17, 8.507059e+37  ;;  %v9716_v63 = vld [vmem:[%s10285_s17 + $0x148] sm:$0xff] }
 0x447   : > { %5994 = vmatpush.bf16.msra.mxu3 %v9703_v54  ;;  %5969 = vmatpush.bf16.msra.mxu1 %v9686_v10  ;;  %v9675_v54 = vld [vmem:[%s10285_s17] sm:$0xff]  ;;  %v11912_v24 = vpop.eup %9849  ;;  %v5433_v25 = vpack.c.bf16 %v5424_v43, %v5424_v43  ;;  %v5390_v53 = vor.u32 1.1754944e-38, %v5389_v14 }
 0x448   : > { %v9699_v10 = vld [vmem:[%s10285_s17 + $0xc0] sm:$0xff]  ;;  %v5434_v45 = vpack.c.bf16 %v5425_v28, %v5425_v28  ;;  %v11915_v20 = vpop.eup %9851  ;;  %vm5369_vm0 = vweird.f32 %v11912_v24 }
 0x449   : > { %5982 = vmatpush.bf16.msra.mxu2 %v9694_v12  ;;  %5957 = vmatpush.bf16.msra.mxu0 %v9677_v26  ;;  %v9714_v12 = vld [vmem:[%s10285_s17 + $0x138] sm:$0xff]  ;;  %v5364_v26 = vmul.f32 %v11912_v24, %v11887_v40  ;;  %v5379_v51 = vmul.f32 %v11915_v20, %v11893_v60  ;;  %vm5384_vm1 = vweird.f32 %v11915_v20  ;;  %vm11951_vm3 = vmor %vm5368_vm2, %vm5369_vm0 }
 0x44a   : > { %vm11962_vm5 = vmor %vm5383_vm4, %vm5384_vm1 }
 0x44b   : > { %5995 = vmatpush.bf16.msra.mxu3 %v9702_v19  ;;  %5970 = vmatpush.bf16.msra.mxu1 %v9685_v31  ;;  %v5426_v19 = vmul.f32 %v5361_v36, %v11361_v59  ;;  %v9721_v59 = vld [vmem:[%s10285_s17 + $0x170] sm:$0xff]  ;;  %v5365_v30 = vsub.f32 1.0, %v5364_v26  ;;  %v5380_v31 = vsub.f32 1.0, %v5379_v51  ;;  %v5100_v36 = vpop.f32.mrf.mxu2  ;;  %v9723_v51 = vld [vmem:[%s10285_s17 + $0x180] sm:$0xff] }
 0x44d   : > { %5983 = vmatpush.bf16.msra.mxu2 %v9693_v47  ;;  %5958 = vmatpush.bf16.msra.mxu0 %v9676_v5  ;;  %v5435_v13 = vpack.c.bf16 %v5426_v19, %v5426_v19  ;;  %v5021_v47 = vadd.f32 %v11803_v37, %v1021_v29  ;;  %v5366_v11 = vmul.f32 %v11912_v24, %v5365_v30  ;;  %v5111_v37 = vpop.f32.mrf.mxu3  ;;  %v5074_v5 = vpop.f32.mrf.mxu0 }
 0x44e   : > { %v5381_v4 = vmul.f32 %v11915_v20, %v5380_v31  ;;  %v1022_v5 = vperm.slane %v11923_v27, 7 }
 0x44f   : > { %5996 = vmatpush.bf16.msra.mxu3 %v9701_v55  ;;  %5971 = vmatpush.bf16.msra.mxu1 %v9684_v49  ;;  %v5034_v55 = vadd.f32 %v11807_v0, %v5021_v47  ;;  %v5367_v57 = vadd.f32 %v11912_v24, %v5366_v11  ;;  %v5087_v49 = vpop.f32.mrf.mxu1 }
 0x450   : > { %v5382_v34 = vadd.f32 %v11915_v20, %v5381_v4 }
 0x451   : > { %5984 = vmatpush.bf16.msra.mxu2 %v9692_v52  ;;  %5959 = vmatpush.bf16.msra.mxu0 %v9675_v54  ;;  %v5047_v0 = vadd.f32 %v11817_v16, %v5034_v55  ;;  %v9729_v52 = vld [vmem:[%s10285_s17 + $0x1b0] sm:$0xff]  ;;  %v5387_v16 = vand.u32 2147483647, %v11893_v60  ;;  %v5371_v40 = vsel %vm11951_vm3, %v11912_v24, %v5367_v57  ;;  %v9708_v60 = vld [vmem:[%s10285_s17 + $0x108] sm:$0xff]  ;;  %v9726_v24 = vld [vmem:[%s10285_s17 + $0x198] sm:$0xff] }
 0x452   : > { %v9728_v54 = vld [vmem:[%s10285_s17 + $0x1a8] sm:$0xff]  ;;  %v5376_v44 = vsel %vm5373_vm6, %v5375_v62, %v5371_v40 }
 0x453   : > { %5997 = vmatpush.bf16.msra.mxu3 %v9700_v2  ;;  %5972 = vmatpush.bf16.msra.mxu1 %v9683_v6  ;;  %v5386_v2 = vsel %vm11962_vm5, %v11915_v20, %v5382_v34  ;;  %v5060_v39 = vadd.f32 %v11822_v22, %v5047_v0  ;;  %vm5388_vm7 = vcmp.eq.f32.partialorder %v5387_v16, 8.507059e+37  ;;  %v9707_v22 = vld [vmem:[%s10285_s17 + $0x100] sm:$0xff]  ;;  %v5427_v28 = vmul.f32 %v5376_v44, %v11564_v1  ;;  %v9725_v1 = vld [vmem:[%s10285_s17 + $0x190] sm:$0xff] }
 0x454   : > { %5960 = vmatmul.bf16.vlgmr.msra.gmra.mxu0 %v5432_v48  ;;  %v9733_v44 = vld [vmem:[%s10285_s17 + $0x1d0] sm:$0xff] }
 0x455   : > { %5985 = vmatpush.bf16.msra.mxu2 %v9691_v7  ;;  %6004 = vmatpush.bf16.msrb.mxu0 %v9714_v12  ;;  %v5113_v6 = vpop.f32.mrf.mxu3  ;;  %v5391_v7 = vsel %vm5388_vm7, %v5390_v53, %v5386_v2  ;;  %v5073_v43 = vadd.f32 %v5072_v41, %v5060_v39  ;;  %v9727_v12 = vld [vmem:[%s10285_s17 + $0x1a0] sm:$0xff]  ;;  %v5436_v48 = vpack.c.bf16 %v5427_v28, %v5427_v28  ;;  %v5124_v20 = vpop.f32.mrf.mxu0  ;;  %v9736_v39 = vld [vmem:[%s10285_s17 + $0x1e8] sm:$0xff] }
 0x456   : > { %5973 = vmatmul.bf16.vlgmr.msra.gmra.mxu1 %v5433_v25  ;;  %v5428_v19 = vmul.f32 %v5391_v7, %v11791_v9 }
 0x457   : > { %5998 = vmatpush.bf16.msra.mxu3 %v9699_v10  ;;  %6017 = vmatpush.bf16.msrb.mxu1 %v9722_v23  ;;  %v9715_v10 = vld [vmem:[%s10285_s17 + $0x140] sm:$0xff]  ;;  %v5086_v23 = vadd.f32 %v5085_v46, %v5073_v43  ;;  %v5137_v9 = vpop.f32.mrf.mxu1  ;;  %v9732_v43 = vld [vmem:[%s10285_s17 + $0x1c8] sm:$0xff] }
 0x458   : > { %5986 = vmatmul.bf16.vlgmr.msra.gmra.mxu2 %v5434_v45  ;;  %v5437_v25 = vpack.c.bf16 %v5428_v19, %v5428_v19 }
 0x459   : > { %6005 = vmatpush.bf16.msrb.mxu0 %v9713_v15  ;;  %6030 = vmatpush.bf16.msrb.mxu2 %v9730_v18  ;;  %v5099_v45 = vadd.f32 %v5098_v3, %v5086_v23  ;;  %v9731_v23 = vld [vmem:[%s10285_s17 + $0x1c0] sm:$0xff] }
 0x45a   : > { %5999 = vmatmul.bf16.vlgmr.msra.gmra.mxu3 %v5435_v13  ;;  %v9724_v13 = vld [vmem:[%s10285_s17 + $0x188] sm:$0xff] }
 0x45b   : > { %6018 = vmatpush.bf16.msrb.mxu1 %v9721_v59  ;;  %v5112_v15 = vadd.f32 %v5111_v37, %v5099_v45  ;;  %6043 = vmatpush.bf16.msrb.mxu3 %v9738_v61 }
 0x45d   : > { %6006 = vmatpush.bf16.msrb.mxu0 %v9712_v50  ;;  %6031 = vmatpush.bf16.msrb.mxu2 %v9729_v52  ;;  %v5125_v59 = vadd.f32 %v5124_v20, %v5112_v15  ;;  %v5150_v50 = vpop.f32.mrf.mxu2  ;;  %v5126_v30 = vpop.f32.mrf.mxu0 }
 0x45e   : > { %v5151_v49 = vadd.f32 %v5150_v50, %v1022_v5 }
 0x45f   : > { %6019 = vmatpush.bf16.msrb.mxu1 %v9720_v33  ;;  %v5138_v26 = vadd.f32 %v5137_v9, %v5125_v59  ;;  %v5163_v33 = vpop.f32.mrf.mxu3  ;;  %v5139_v31 = vpop.f32.mrf.mxu1  ;;  %6044 = vmatpush.bf16.msrb.mxu3 %v9737_v21 }
 0x460   : > { %v5164_v16 = vadd.f32 %v5163_v33, %v5151_v49  ;;  %v5431_v49 = vld [vmem:[#allocation11] sm:$0x3] }
 0x461   : > { %6007 = vmatpush.bf16.msrb.mxu0 %v9711_v8  ;;  %6032 = vmatpush.bf16.msrb.mxu2 %v9728_v54  ;;  %v8769_v29 = vmul.f32 -1.442695, %v5138_v26 }
 0x463   : > { %6020 = vmatpush.bf16.msrb.mxu1 %v9719_v42  ;;  %9853 = vpow2.f32 %v8769_v29  ;;  %6045 = vmatpush.bf16.msrb.mxu3 %v9736_v39 }
 0x465   : > { %6008 = vmatpush.bf16.msrb.mxu0 %v9710_v38  ;;  %6033 = vmatpush.bf16.msrb.mxu2 %v9727_v12  ;;  %v5152_v41 = vpop.f32.mrf.mxu2 }
 0x467   : > { %6021 = vmatpush.bf16.msrb.mxu1 %v9718_v56  ;;  %v5165_v42 = vpop.f32.mrf.mxu3 }
 0x469   : > { %6009 = vmatpush.bf16.msrb.mxu0 %v9709_v58  ;;  %6034 = vmatpush.bf16.msrb.mxu2 %v9726_v24  ;;  %v9854_v47 = vpop.eup %9853 }
 0x46a   : > { %v5301_v8 = vadd.f32 1.0, %v9854_v47 }
 0x46b   : > { %6022 = vmatpush.bf16.msrb.mxu1 %v9717_v35 }
 0x46c   : > { %9855 = vrcp.f32 %v5301_v8  ;;  %v5404_v55 = vand.u32 2147483648, %v5301_v8  ;;  %v5402_v56 = vand.u32 2147483647, %v5301_v8  ;;  %vm5398_vm9 = vweird.f32 %v5301_v8 }
 0x46d   : > { %6010 = vmatpush.bf16.msrb.mxu0 %v9708_v60  ;;  %6035 = vmatpush.bf16.msrb.mxu2 %v9725_v1  ;;  %v9735_v60 = vld [vmem:[%s10285_s17 + $0x1e0] sm:$0xff] }
 0x46e   : > { %v5405_v18 = vor.u32 1.1754944e-38, %v5404_v55  ;;  %vm5403_vm11 = vcmp.eq.f32.partialorder %v5402_v56, 8.507059e+37  ;;  %6046 = vmatpush.bf16.msrb.mxu3 %v9735_v60 }
 0x46f   : > { %6023 = vmatpush.bf16.msrb.mxu1 %v9716_v63  ;;  %v9734_v63 = vld [vmem:[%s10285_s17 + $0x1d8] sm:$0xff] }
 0x471   : > { %6011 = vmatpush.bf16.msrb.mxu0 %v9707_v22  ;;  %6036 = vmatpush.bf16.msrb.mxu2 %v9724_v13  ;;  %v5176_v57 = vpop.f32.mrf.mxu0 }
 0x472   : > { %v9856_v46 = vpop.eup %9855  ;;  %v5177_v2 = vadd.f32 %v5176_v57, %v5164_v16  ;;  %6047 = vmatpush.bf16.msrb.mxu3 %v9734_v63 }
 0x473   : > { %6024 = vmatpush.bf16.msrb.mxu1 %v9715_v10  ;;  %v5394_v11 = vmul.f32 %v9856_v46, %v5301_v8  ;;  %vm5399_vm8 = vweird.f32 %v9856_v46  ;;  %v5189_v34 = vpop.f32.mrf.mxu1 }
 0x474   : > { %6012 = vmatmul.bf16.vlgmr.msrb.gmra.mxu0 %v5436_v48  ;;  %vm5400_vm10 = vmor %vm5398_vm9, %vm5399_vm8  ;;  %v5190_v27 = vadd.f32 %v5189_v34, %v5177_v2 }
 0x475   : > { %6037 = vmatpush.bf16.msrb.mxu2 %v9723_v51  ;;  %v5395_v4 = vsub.f32 1.0, %v5394_v11 }
 0x476   : > { %6025 = vmatmul.bf16.vlgmr.msrb.gmra.mxu1 %v5437_v25  ;;  %6048 = vmatpush.bf16.msrb.mxu3 %v9733_v44 }
 0x477   : > { %v5396_v38 = vmul.f32 %v9856_v46, %v5395_v4 }
 0x479   : > { %v5397_v3 = vadd.f32 %v9856_v46, %v5396_v38  ;;  %v5178_v35 = vpop.f32.mrf.mxu0 }
 0x47a   : > { %6049 = vmatpush.bf16.msrb.mxu3 %v9732_v43 }
 0x47b   : > { %v5401_v37 = vsel %vm5400_vm10, %v9856_v46, %v5397_v3  ;;  %v5202_v17 = vpop.f32.mrf.mxu2  ;;  %v5191_v52 = vpop.f32.mrf.mxu1 }
 0x47c   : > { %v5406_v32 = vsel %vm5403_vm11, %v5405_v18, %v5401_v37  ;;  %v5203_v53 = vadd.f32 %v5202_v17, %v5190_v27 }
 0x47d   : > { %v5429_v0 = vmul.f32 %v5406_v32, %v5138_v26  ;;  %v5215_v14 = vpop.f32.mrf.mxu3 }
 0x47e   : > { %v5216_v36 = vadd.f32 %v5215_v14, %v5203_v53  ;;  %6050 = vmatpush.bf16.msrb.mxu3 %v9731_v23 }
 0x47f   : > { %v5438_v58 = vpack.c.bf16 %v5429_v0, %v5429_v0 }
 0x481   : > { %6038 = vmatmul.bf16.vlgmr.msrb.gmra.mxu2 %v5438_v58 }
 0x483   : > { %v5204_v40 = vpop.f32.mrf.mxu2 }
 0x485   : > { %v5217_v62 = vpop.f32.mrf.mxu3 }
 0x4b1   : > { %v5228_v54 = vpop.f32.mrf.mxu0 }
 0x4b2   : > { %v5229_v7 = vadd.f32 %v5228_v54, %v5216_v36 }
 0x4b3   : > { %v5241_v6 = vpop.f32.mrf.mxu1 }
 0x4b4   : > { %v5242_v22 = vadd.f32 %v5241_v6, %v5229_v7 }
 0x4b9   : > { %v5230_v19 = vpop.f32.mrf.mxu0 }
 0x4bb   : > { %v5254_v28 = vpop.f32.mrf.mxu2  ;;  %v5243_v48 = vpop.f32.mrf.mxu1 }
 0x4bc   : > { %v5255_v10 = vadd.f32 %v5254_v28, %v5242_v22 }
 0x4bd   : > { %v5267_v12 = vpop.f32.mrf.mxu3 }
 0x4be   : > { %v5268_v24 = vadd.f32 %v5267_v12, %v5255_v10 }
 0x4c0   : > { %v8770_v25 = vmul.f32 -1.442695, %v5268_v24 }
 0x4c2   : > { %9857 = vpow2.f32 %v8770_v25 }
 0x4c3   : > { %v5256_v45 = vpop.f32.mrf.mxu2 }
 0x4c5   : > { %v5269_v1 = vpop.f32.mrf.mxu3 }
 0x4c8   : > { %v9858_v15 = vpop.eup %9857 }
 0x4c9   : > { %v5302_v20 = vadd.f32 1.0, %v9858_v15 }
 0x4cb   : > { %9859 = vrcp.f32 %v5302_v20  ;;  %v5419_v50 = vand.u32 2147483648, %v5302_v20  ;;  %v5417_v30 = vand.u32 2147483647, %v5302_v20  ;;  %vm5413_vm13 = vweird.f32 %v5302_v20 }
 0x4cd   : > { %v5420_v8 = vor.u32 1.1754944e-38, %v5419_v50  ;;  %vm5418_vm15 = vcmp.eq.f32.partialorder %v5417_v30, 8.507059e+37 }
 0x4d1   : > { %v9860_v13 = vpop.eup %9859  ;;  %v5961_v59 = vpop.f32.mrf.mxu0 }
 0x4d2   : > { %v5409_v9 = vmul.f32 %v9860_v13, %v5302_v20  ;;  %vm5414_vm12 = vweird.f32 %v9860_v13 }
 0x4d3   : > { %v5974_v26 = vpop.f32.mrf.mxu1  ;;  %vm5415_vm14 = vmor %vm5413_vm13, %vm5414_vm12 }
 0x4d4   : > { %v5975_v51 = vadd.f32 %v5974_v26, %v5961_v59  ;;  %v5410_v29 = vsub.f32 1.0, %v5409_v9 }
 0x4d6   : > { %v5411_v33 = vmul.f32 %v9860_v13, %v5410_v29 }
 0x4d8   : > { %v5412_v31 = vadd.f32 %v9860_v13, %v5411_v33 }
 0x4d9   : > { %v5963_v46 = vpop.f32.mrf.mxu0 }
 0x4da   : > { %v5416_v11 = vsel %vm5415_vm14, %v9860_v13, %v5412_v31 }
 0x4db   : > { %v5987_v47 = vpop.f32.mrf.mxu2  ;;  %v5976_v4 = vpop.f32.mrf.mxu1  ;;  %v5421_v55 = vsel %vm5418_vm15, %v5420_v8, %v5416_v11 }
 0x4dc   : > { %v5988_v41 = vadd.f32 %v5987_v47, %v5975_v51  ;;  %v5430_v56 = vmul.f32 %v5421_v55, %v5268_v24 }
 0x4dd   : > { %v6000_v42 = vpop.f32.mrf.mxu3 }
 0x4de   : > { %v6001_v38 = vadd.f32 %v6000_v42, %v5988_v41  ;;  %v5439_v3 = vpack.c.bf16 %v5430_v56, %v5430_v56 }
 0x4e0   : > { %6051 = vmatmul.bf16.vlgmr.msrb.gmra.mxu3 %v5439_v3 }
 0x4e3   : > { %v5989_v18 = vpop.f32.mrf.mxu2 }
 0x4e5   : > { %v6002_v37 = vpop.f32.mrf.mxu3 }
 0x4f1   : > { %v6013_v57 = vpop.f32.mrf.mxu0 }
 0x4f2   : > { %v6014_v32 = vadd.f32 %v6013_v57, %v6001_v38 }
 0x4f3   : > { %v6026_v34 = vpop.f32.mrf.mxu1 }
 0x4f4   : > { %v6027_v0 = vadd.f32 %v6026_v34, %v6014_v32 }
 0x4f9   : > { %v6015_v58 = vpop.f32.mrf.mxu0 }
 0x4fb   : > { %v6028_v5 = vpop.f32.mrf.mxu1 }
 0x504   : > { %v6039_v17 = vpop.f32.mrf.mxu2 }
 0x505   : > { %v6040_v14 = vadd.f32 %v6039_v17, %v6027_v0 }
 0x50c   : > { %v6041_v35 = vpop.f32.mrf.mxu2 }
 0x563   : > { %v6052_v52 = vpop.f32.mrf.mxu3 }
 0x564   : > { %v6053_v61 = vadd.f32 %v6052_v52, %v6040_v14 }
 0x566   : > { %v6056_v16 = vadd.f32 %v6053_v61, %v5431_v49 }
 0x567   : > { %6061 = sbr.rel (%p9027_p5) target bundleno = 1395 (0x573), region = 68 }
 0x568   : > { %6057 = vst [vmem:[#allocation11] sm:$0x3] %v6056_v16 }
 0x56b   : > { %v6054_v40 = vpop.f32.mrf.mxu3 }
 0x56c   : > { %v9864_v62 = vld [vmem:[#allocation10] ss:$0 sm:$0xff] }
 0x56f   : > { %v6062_v21 = vld [vmem:[#allocation11] sm:$0x3] }
 0x570   : > { %v6067_v2 = vadd.f32 %v9864_v62, %v6062_v21 }
 0x572   : > { %6068 = vst [vmem:[#allocation11] sm:$0x3] %v6067_v2 }
 0x573 PF: > { %p9785_p8 = scmp.eq.s32.totalorder %s10158_s22, 1  ;;  %s10108_s18 = smov [#allocation11]  }
 0x574   : > { %s6075_s27 = sshll.u32 %s10108_s18, 4  ;;  %s6077_s6 = sshll.u32 %s12014_s5, 4  ;;  %s6076_s27 = int_to_ptr.vmem [resolvable:$true] %s6075_s27  ;;  %s6078_s6 = int_to_ptr.hbm [resolvable:$true] %s6077_s6 }
 0x575   : > { %9758 = dma.vmem_to_hbm [thread:$0]  (%p9785_p8), %s6076_s27, 32, %s6078_s6, [#allocation4]  }
 0x576   : > { %10080 = dma.done.wait (%p9785_p8), [#allocation4], 32  }
 0x577   : > { %10082 = vsyncadd (%p9785_p8), [#allocation4], 4294967264 }
 0x578 PF: > { %p20_p9 = scmp.ge.s32.totalorder %s10161_s23, 4   ;;  %s12040_s18 = smov %s10089_s19 }
 0x579   : > { %s12041_s19 = smov %s10093_s20  ;;  %s12042_s20 = smov %s10171_s26 }
 0x57a   : > { %s12043_s21 = smov %s10161_s23  ;;  %22 = sbr.rel (!%p20_p9) target bundleno = 11 (0xb), region = 113 }
 0x57f   :  { %6091 = vsyncpa [#allocation3], 1 }
 0x580   :  { %6093 = vsyncpa [#allocation3 + $0x1], 1 }
 0x581   :  { %6094 = vsyncpa [#allocation6], 1 }
 0x582   :  { %6096 = vsyncpa [#allocation6 + $0x1], 1 }
 0x583   :  { %6097 = vsyncpa [#allocation9], 1 }
 0x584   :  { %6099 = vsyncpa [#allocation9 + $0x1], 1 }
 0x585   :  { %6100 = vsyncpa [#allocation4], 1 }
 0x586   :  { %6102 = vsyncpa [#allocation4 + $0x1], 1 }

</bundles_post_ra>
